<compile_context>
chip_gen: v7x
topology: tpu7x:2x2x1
jax: 0.10.0
libtpu: 0.0.40
codegen_flags: <defaults>
</compile_context>

<pallas_src>
import functools

import jax
import jax.numpy as jnp
from jax import lax
from jax.experimental import pallas as pl
from jax.experimental.pallas import tpu as pltpu

VMEM = pltpu.MemorySpace.VMEM
_BN_EPS = 1e-5


def _rup(n, m=128):
    return ((n + m - 1) // m) * m


# ---------------------------------------------------------------------------
# Single fused Pallas kernel (encoder -> conv1 -> conv2 -> edge decoder)
# ---------------------------------------------------------------------------
def _fused_forward_kernel(
    # node features (padded, f32)
    xu_ref, xm_ref,
    # encoder Linear with BN folded in (W bf16, b f32)
    wlu_ref, blu_ref, wlm_ref, blm_ref,
    # conv1 SAGE packed weights [wl; wr] (2H, H) bf16 + bias f32
    c1r_w_ref, c1r_b_ref, c1b_w_ref, c1b_b_ref,
    # conv2 SAGE packed weights
    c2r_w_ref, c2r_b_ref, c2b_w_ref, c2b_b_ref,
    # edge-decoder MLP (d1 packed for [user_z | movie_z] input)
    d1w_ref, d1b_ref, d2w_ref, d2b_ref, d3w_ref, d3b_ref,
    # integer edge lists (padded with -1)
    dst_um_ref, src_um_ref, dst_mu_ref, src_mu_ref, eli_u_ref, eli_m_ref,
    # output: (E_label_pad, 128), score in column 0 (lane-dense store)
    o_ref,
):
    f32 = jnp.float32
    bf16 = jnp.bfloat16

    def onehot_rows(idx_col, n_cols):
        # idx_col: (E, 1) int32 -> (E, n_cols) bf16; padded idx=-1 -> zero row
        e = idx_col.shape[0]
        iota = lax.broadcasted_iota(jnp.int32, (e, n_cols), 1)
        return (iota == idx_col).astype(bf16)

    def onehot_cols(idx_row, n_rows):
        # idx_row: (1, E) int32 -> (n_rows, E) bf16; padded idx=-1 -> zero col
        e = idx_row.shape[1]
        iota = lax.broadcasted_iota(jnp.int32, (n_rows, e), 0)
        return (iota == idx_row).astype(bf16)

    def adj_and_invdeg(dst_row, src_col, n_dst, n_src):
        # Raw-count adjacency (exact small ints, safe in bf16) + 1/deg.
        dt = onehot_cols(dst_row, n_dst)                    # (n_dst, E)
        s = onehot_rows(src_col, n_src)                     # (E, n_src)
        a = jnp.dot(dt, s, preferred_element_type=f32)      # counts, f32
        deg = jnp.sum(a, axis=1, keepdims=True)
        inv = pl.reciprocal(jnp.maximum(deg, 1.0), approx=True)
        return a.astype(bf16), inv

    def sage(a_bf, inv_deg, x_src_b, x_dst_b, w_packed, b):
        # mean-aggregate neighbours, then one fused (N,2H)@(2H,H) matmul
        agg = jnp.dot(a_bf, x_src_b, preferred_element_type=f32) * inv_deg
        cat = jnp.concatenate([agg.astype(bf16), x_dst_b], axis=-1)
        return jnp.dot(cat, w_packed, preferred_element_type=f32) + b

    n_user = xu_ref.shape[0]
    n_movie = xm_ref.shape[0]

    # --- encoder: (Linear+BN folded) -> ReLU  (Dropout = identity) ---------
    h_user = jnp.maximum(
        jnp.dot(xu_ref[...].astype(bf16), wlu_ref[...],
                preferred_element_type=f32) + blu_ref[...], 0.0).astype(bf16)
    h_movie = jnp.maximum(
        jnp.dot(xm_ref[...].astype(bf16), wlm_ref[...],
                preferred_element_type=f32) + blm_ref[...], 0.0).astype(bf16)

    # --- dense count adjacencies + inv-degree, built once, reused twice ----
    a_um, inv_um = adj_and_invdeg(dst_um_ref[...], src_um_ref[...],
                                  n_movie, n_user)   # (movie, user)
    a_mu, inv_mu = adj_and_invdeg(dst_mu_ref[...], src_mu_ref[...],
                                  n_user, n_movie)   # (user, movie)

    # --- conv1 + ReLU (Dropout = identity) ---------------------------------
    movie1 = jnp.maximum(
        sage(a_um, inv_um, h_user, h_movie, c1r_w_ref[...], c1r_b_ref[...]),
        0.0).astype(bf16)
    user1 = jnp.maximum(
        sage(a_mu, inv_mu, h_movie, h_user, c1b_w_ref[...], c1b_b_ref[...]),
        0.0).astype(bf16)

    # --- conv2 (no activation) ----------------------------------------------
    movie2 = sage(a_um, inv_um, user1, movie1,
                  c2r_w_ref[...], c2r_b_ref[...]).astype(bf16)
    user2 = sage(a_mu, inv_mu, movie1, user1,
                 c2b_w_ref[...], c2b_b_ref[...]).astype(bf16)

    # --- decoder: one-hot endpoint gather + fused 3-layer MLP --------------
    gu = onehot_rows(eli_u_ref[...], n_user)      # (E_label, n_user) bf16
    gm = onehot_rows(eli_m_ref[...], n_movie)     # (E_label, n_movie) bf16
    uz = jnp.dot(gu, user2, preferred_element_type=f32)
    mz = jnp.dot(gm, movie2, preferred_element_type=f32)

    cat = jnp.concatenate([uz.astype(bf16), mz.astype(bf16)], axis=-1)
    h = jnp.maximum(
        jnp.dot(cat, d1w_ref[...], preferred_element_type=f32) + d1b_ref[...],
        0.0)
    h = jnp.maximum(
        jnp.dot(h.astype(bf16), d2w_ref[...], preferred_element_type=f32)
        + d2b_ref[...], 0.0)
    # final projection against a lane-padded (H2, 128) weight -> lane-dense
    # unmasked store; the real score lives in column 0.
    o_ref[...] = (jnp.dot(h.astype(bf16), d3w_ref[...],
                          preferred_element_type=f32) + d3b_ref[...])


# ---------------------------------------------------------------------------
# Parameter construction (deterministic, PyTorch-Linear-style uniform init)
# ---------------------------------------------------------------------------
def _init_linear(key, in_dim, out_dim, bias=True):
    kw, kb = jax.random.split(key)
    bound = 1.0 / (in_dim ** 0.5)
    w = jax.random.uniform(kw, (in_dim, out_dim), jnp.float32, -bound, bound)
    if not bias:
        return {"w": w}
    b = jax.random.uniform(kb, (1, out_dim), jnp.float32, -bound, bound)
    return {"w": w, "b": b}


def _init_bn(h):
    return {
        "gamma": jnp.ones((1, h), jnp.float32),
        "beta": jnp.zeros((1, h), jnp.float32),
        "mean": jnp.zeros((1, h), jnp.float32),
        "var": jnp.ones((1, h), jnp.float32),
    }


def _init_sage(key, in_src, in_dst, out):
    kl, kr = jax.random.split(key)
    lin_l = _init_linear(kl, in_src, out, bias=True)    # aggregated neighbors
    lin_r = _init_linear(kr, in_dst, out, bias=False)   # root / dst features
    return {"wl": lin_l["w"], "bl": lin_l["b"], "wr": lin_r["w"]}


def init_model_params(key, hidden, in_user, in_movie):
    ks = jax.random.split(key, 16)
    return {
        "lin_user": _init_linear(ks[0], in_user, hidden),
        "lin_movie": _init_linear(ks[1], in_movie, hidden),
        "bn_user": _init_bn(hidden),
        "bn_movie": _init_bn(hidden),
        "conv1_rates": _init_sage(ks[2], hidden, hidden, hidden),
        "conv1_rated_by": _init_sage(ks[3], hidden, hidden, hidden),
        "conv2_rates": _init_sage(ks[4], hidden, hidden, hidden),
        "conv2_rated_by": _init_sage(ks[5], hidden, hidden, hidden),
        "dec1": _init_linear(ks[6], 2 * hidden, 4 * hidden),
        "dec2": _init_linear(ks[7], 4 * hidden, 2 * hidden),
        "dec3": _init_linear(ks[8], 2 * hidden, 1),
    }


# ---------------------------------------------------------------------------
# One-time parameter prep: pad to lane-dense 128-multiples, fold BN into the
# encoder Linear, pack the paired matmul weights, pre-cast MXU operands to
# bf16.  Done ONCE, outside the per-call forward.
# ---------------------------------------------------------------------------
def _pad2(a, r, c, fill=0.0):
    a = jnp.asarray(a, jnp.float32)
    return jnp.pad(a, ((0, r - a.shape[0]), (0, c - a.shape[1])),
                   constant_values=fill)


def _pad_idx(idx, n):
    idx = jnp.asarray(idx, jnp.int32)
    return jnp.pad(idx, (0, n - idx.shape[0]), constant_values=-1)


def prepare_params(params):
    bf16 = jnp.bfloat16
    hidden = params["lin_user"]["w"].shape[1]
    in_user = params["lin_user"]["w"].shape[0]
    in_movie = params["lin_movie"]["w"].shape[0]
    H, H4, H2 = _rup(hidden), _rup(4 * hidden), _rup(2 * hidden)
    FU, FM = _rup(in_user), _rup(in_movie)
    OUT_W = 128

    def fold_bn_linear(lin, bn, fpad):
        scale = bn["gamma"] / jnp.sqrt(bn["var"] + _BN_EPS)        # (1, hidden)
        w = lin["w"] * scale
        b = (lin["b"] - bn["mean"]) * scale + bn["beta"]
        return _pad2(w, fpad, H).astype(bf16), _pad2(b, 1, H)

    def pack_sage(p):
        w = jnp.concatenate([_pad2(p["wl"], H, H), _pad2(p["wr"], H, H)],
                            axis=0)                                # (2H, H)
        return w.astype(bf16), _pad2(p["bl"], 1, H)

    wlu, blu = fold_bn_linear(params["lin_user"], params["bn_user"], FU)
    wlm, blm = fold_bn_linear(params["lin_movie"], params["bn_movie"], FM)
    c1r_w, c1r_b = pack_sage(params["conv1_rates"])
    c1b_w, c1b_b = pack_sage(params["conv1_rated_by"])
    c2r_w, c2r_b = pack_sage(params["conv2_rates"])
    c2b_w, c2b_b = pack_sage(params["conv2_rated_by"])

    d1 = jnp.asarray(params["dec1"]["w"], jnp.float32)             # (2h, 4h)
    d1w = jnp.concatenate([_pad2(d1[:hidden], H, H4),
                           _pad2(d1[hidden:], H, H4)], axis=0).astype(bf16)
    d1b = _pad2(params["dec1"]["b"], 1, H4)
    d2w = _pad2(params["dec2"]["w"], H4, H2).astype(bf16)
    d2b = _pad2(params["dec2"]["b"], 1, H2)
    d3w = _pad2(params["dec3"]["w"], H2, OUT_W).astype(bf16)
    d3b = _pad2(params["dec3"]["b"], 1, OUT_W)

    return (wlu, blu, wlm, blm,
            c1r_w, c1r_b, c1b_w, c1b_b,
            c2r_w, c2r_b, c2b_w, c2b_b,
            d1w, d1b, d2w, d2b, d3w, d3b)


# ---------------------------------------------------------------------------
# Per-call forward: pad features/edges, launch the single fused kernel
# ---------------------------------------------------------------------------
def model_forward(weights, x_dict, edge_index_dict, edge_label_index):
    (wlu, blu, wlm, blm,
     c1r_w, c1r_b, c1b_w, c1b_b,
     c2r_w, c2r_b, c2b_w, c2b_b,
     d1w, d1b, d2w, d2b, d3w, d3b) = weights

    H = wlu.shape[1]
    FU, FM = wlu.shape[0], wlm.shape[0]
    H4, H2, OUT_W = d1b.shape[1], d2b.shape[1], d3b.shape[1]

    xu, xm = x_dict["user"], x_dict["movie"]
    n_user, _ = xu.shape
    n_movie, _ = xm.shape
    NU, NM = _rup(n_user), _rup(n_movie)

    ei_um = edge_index_dict[("user", "rates", "movie")]    # row0=user row1=movie
    ei_mu = edge_index_dict[("movie", "rated_by", "user")]  # row0=movie row1=user
    eli = edge_label_index
    E1, E2, EL = ei_um.shape[1], ei_mu.shape[1], eli.shape[1]
    E1P, E2P = _rup(E1), _rup(E2)      # lane dims -> 128-multiple
    ELP = _rup(EL, 8)                  # sublane-only dim -> 8-multiple

    args = (
        _pad2(xu, NU, FU), _pad2(xm, NM, FM),
        wlu, blu, wlm, blm,
        c1r_w, c1r_b, c1b_w, c1b_b,
        c2r_w, c2r_b, c2b_w, c2b_b,
        d1w, d1b, d2w, d2b, d3w, d3b,
        _pad_idx(ei_um[1], E1P).reshape(1, E1P),   # rates:    dst (movie) row
        _pad_idx(ei_um[0], E1P).reshape(E1P, 1),   # rates:    src (user)  col
        _pad_idx(ei_mu[1], E2P).reshape(1, E2P),   # rated_by: dst (user)  row
        _pad_idx(ei_mu[0], E2P).reshape(E2P, 1),   # rated_by: src (movie) col
        _pad_idx(eli[0], ELP).reshape(ELP, 1),     # label edge user endpoints
        _pad_idx(eli[1], ELP).reshape(ELP, 1),     # label edge movie endpoints
    )

    flops = int(2 * (
        NU * FU * H + NM * FM * H                        # encoder linears
        + NM * E1P * NU + NU * E2P * NM                  # adjacency builds
        + 2 * (NM * NU * H + NM * 2 * H * H)             # conv1+conv2, movie dst
        + 2 * (NU * NM * H + NU * 2 * H * H)             # conv1+conv2, user dst
        + ELP * (NU + NM) * H                            # endpoint gathers
        + ELP * (2 * H * H4 + H4 * H2 + H2 * OUT_W)      # decoder MLP
    ))
    arg_bytes = int(sum(int(a.size) * a.dtype.itemsize for a in args)
                    + ELP * OUT_W * 4)
    act_bytes = int(4 * (2 * NU * NM + 6 * (NU + NM) * H
                         + ELP * (2 * H4 + 4 * H)))
    vmem_limit = int(min(64 << 20, max(32 << 20, 2 * (arg_bytes + act_bytes))))

    out = pl.pallas_call(
        _fused_forward_kernel,
        out_shape=jax.ShapeDtypeStruct((ELP, OUT_W), jnp.float32),
        in_specs=[pl.BlockSpec(memory_space=VMEM) for _ in args],
        out_specs=pl.BlockSpec(memory_space=VMEM),
        compiler_params=pltpu.CompilerParams(vmem_limit_bytes=vmem_limit),
        cost_estimate=pl.CostEstimate(flops=flops,
                                      transcendentals=NU + NM,
                                      bytes_accessed=arg_bytes),
    )(*args)
    return out[:EL, 0]   # real scores live in column 0  (== .squeeze(-1))


# TODO(synk): training-mode Dropout(0.2) and BatchNorm batch-statistics are not
# reproduced (eval-mode semantics: Dropout=identity, BN folded into Linear).
# TODO(synk): for realistic graph sizes the dense one-hot adjacency/gather and
# the grid-less all-VMEM layout must be replaced by a scalar-prefetch, tiled
# variant (edge lists in SMEM, pl.Element/pl.ds row gathers, grid over dst
# nodes / label edges); at this toy scale everything is one 128-tile.

# ---------------------------------------------------------------------------
if __name__ == "__main__":
    hidden = 32
    in_user, in_movie = 8, 16
    num_users, num_movies = 16, 24
    num_edges, num_label_edges = 40, 12

    key = jax.random.PRNGKey(0)
    (k_feat_u, k_feat_m, k_e1, k_e2, k_e3, k_e4,
     k_l1, k_l2, k_params) = jax.random.split(key, 9)

    x_dict = {
        "user": jax.random.normal(k_feat_u, (num_users, in_user), jnp.float32),
        "movie": jax.random.normal(k_feat_m, (num_movies, in_movie), jnp.float32),
    }
    edge_index_dict = {
        ("user", "rates", "movie"): jnp.stack([
            jax.random.randint(k_e1, (num_edges,), 0, num_users),
            jax.random.randint(k_e2, (num_edges,), 0, num_movies),
        ]),
        ("movie", "rated_by", "user"): jnp.stack([
            jax.random.randint(k_e3, (num_edges,), 0, num_movies),
            jax.random.randint(k_e4, (num_edges,), 0, num_users),
        ]),
    }
    edge_label_index = jnp.stack([
        jax.random.randint(k_l1, (num_label_edges,), 0, num_users),
        jax.random.randint(k_l2, (num_label_edges,), 0, num_movies),
    ])

    params = init_model_params(k_params, hidden, in_user, in_movie)
    weights = prepare_params(params)          # one-time: pad / fold BN / bf16

    fwd = jax.jit(model_forward)
    out = fwd(weights, x_dict, edge_index_dict, edge_label_index)
    out = jax.block_until_ready(out)
    assert out.shape == (num_label_edges,), out.shape
    print("KERNEL_OK")
</pallas_src>

<mosaic_0001>
module attributes {stable_mosaic.version = 11 : i64} {
  func.func @_fused_forward_kernel(%arg0: memref<128x128xf32, #tpu.memory_space<vmem>>, %arg1: memref<128x128xf32, #tpu.memory_space<vmem>>, %arg2: memref<128x128xbf16, #tpu.memory_space<vmem>>, %arg3: memref<1x128xf32, #tpu.memory_space<vmem>>, %arg4: memref<128x128xbf16, #tpu.memory_space<vmem>>, %arg5: memref<1x128xf32, #tpu.memory_space<vmem>>, %arg6: memref<256x128xbf16, #tpu.memory_space<vmem>>, %arg7: memref<1x128xf32, #tpu.memory_space<vmem>>, %arg8: memref<256x128xbf16, #tpu.memory_space<vmem>>, %arg9: memref<1x128xf32, #tpu.memory_space<vmem>>, %arg10: memref<256x128xbf16, #tpu.memory_space<vmem>>, %arg11: memref<1x128xf32, #tpu.memory_space<vmem>>, %arg12: memref<256x128xbf16, #tpu.memory_space<vmem>>, %arg13: memref<1x128xf32, #tpu.memory_space<vmem>>, %arg14: memref<256x128xbf16, #tpu.memory_space<vmem>>, %arg15: memref<1x128xf32, #tpu.memory_space<vmem>>, %arg16: memref<128x128xbf16, #tpu.memory_space<vmem>>, %arg17: memref<1x128xf32, #tpu.memory_space<vmem>>, %arg18: memref<128x128xbf16, #tpu.memory_space<vmem>>, %arg19: memref<1x128xf32, #tpu.memory_space<vmem>>, %arg20: memref<1x128xi32, #tpu.memory_space<vmem>>, %arg21: memref<128x1xi32, #tpu.memory_space<vmem>>, %arg22: memref<1x128xi32, #tpu.memory_space<vmem>>, %arg23: memref<128x1xi32, #tpu.memory_space<vmem>>, %arg24: memref<16x1xi32, #tpu.memory_space<vmem>>, %arg25: memref<16x1xi32, #tpu.memory_space<vmem>>, %arg26: memref<16x128xf32, #tpu.memory_space<vmem>>) attributes {dimension_semantics = [], scalar_prefetch = 0 : i64, scratch_operands = 0 : i64, tpu.core_type = #tpu.core_type<tc>} {
    %c0 = arith.constant 0 : index
    %c0_0 = arith.constant 0 : index
    %0 = vector.load %arg0[%c0, %c0_0] : memref<128x128xf32, #tpu.memory_space<vmem>>, vector<128x128xf32>
    %1 = arith.truncf %0 : vector<128x128xf32> to vector<128x128xbf16>
    %c0_1 = arith.constant 0 : index
    %c0_2 = arith.constant 0 : index
    %2 = vector.load %arg2[%c0_1, %c0_2] : memref<128x128xbf16, #tpu.memory_space<vmem>>, vector<128x128xbf16>
    %cst = arith.constant dense<0.000000e+00> : vector<128x128xf32>
    %3 = tpu.matmul %1, %2, %cst {dimension_numbers = #tpu.dot_dimension_numbers<[1], [0], [0], [1], [0, 0, 1, 1], [], []>} : vector<128x128xbf16>, vector<128x128xbf16>, vector<128x128xf32> -> vector<128x128xf32>
    %c0_3 = arith.constant 0 : index
    %c0_4 = arith.constant 0 : index
    %4 = vector.load %arg3[%c0_3, %c0_4] : memref<1x128xf32, #tpu.memory_space<vmem>>, vector<1x128xf32>
    %5 = vector.broadcast %4 : vector<1x128xf32> to vector<128x128xf32>
    %6 = arith.addf %3, %5 : vector<128x128xf32>
    %cst_5 = arith.constant 0.000000e+00 : f32
    %7 = vector.broadcast %cst_5 : f32 to vector<128x128xf32>
    %8 = arith.maximumf %6, %7 : vector<128x128xf32>
    %9 = arith.truncf %8 : vector<128x128xf32> to vector<128x128xbf16>
    %c0_6 = arith.constant 0 : index
    %c0_7 = arith.constant 0 : index
    %10 = vector.load %arg1[%c0_6, %c0_7] : memref<128x128xf32, #tpu.memory_space<vmem>>, vector<128x128xf32>
    %11 = arith.truncf %10 : vector<128x128xf32> to vector<128x128xbf16>
    %c0_8 = arith.constant 0 : index
    %c0_9 = arith.constant 0 : index
    %12 = vector.load %arg4[%c0_8, %c0_9] : memref<128x128xbf16, #tpu.memory_space<vmem>>, vector<128x128xbf16>
    %cst_10 = arith.constant dense<0.000000e+00> : vector<128x128xf32>
    %13 = tpu.matmul %11, %12, %cst_10 {dimension_numbers = #tpu.dot_dimension_numbers<[1], [0], [0], [1], [0, 0, 1, 1], [], []>} : vector<128x128xbf16>, vector<128x128xbf16>, vector<128x128xf32> -> vector<128x128xf32>
    %c0_11 = arith.constant 0 : index
    %c0_12 = arith.constant 0 : index
    %14 = vector.load %arg5[%c0_11, %c0_12] : memref<1x128xf32, #tpu.memory_space<vmem>>, vector<1x128xf32>
    %15 = vector.broadcast %14 : vector<1x128xf32> to vector<128x128xf32>
    %16 = arith.addf %13, %15 : vector<128x128xf32>
    %cst_13 = arith.constant 0.000000e+00 : f32
    %17 = vector.broadcast %cst_13 : f32 to vector<128x128xf32>
    %18 = arith.maximumf %16, %17 : vector<128x128xf32>
    %19 = arith.truncf %18 : vector<128x128xf32> to vector<128x128xbf16>
    %c0_14 = arith.constant 0 : index
    %c0_15 = arith.constant 0 : index
    %20 = vector.load %arg20[%c0_14, %c0_15] : memref<1x128xi32, #tpu.memory_space<vmem>>, vector<1x128xi32>
    %c0_16 = arith.constant 0 : index
    %c0_17 = arith.constant 0 : index
    %21 = vector.load %arg21[%c0_16, %c0_17] : memref<128x1xi32, #tpu.memory_space<vmem>>, vector<128x1xi32>
    %22 = tpu.iota {dimensions = array<i32: 0>} : vector<128x128xi32>
    %23 = vector.broadcast %20 : vector<1x128xi32> to vector<128x128xi32>
    %24 = arith.cmpi eq, %22, %23 : vector<128x128xi32>
    %25 = arith.extui %24 : vector<128x128xi1> to vector<128x128xi32>
    %26 = arith.sitofp %25 : vector<128x128xi32> to vector<128x128xf32>
    %27 = arith.truncf %26 : vector<128x128xf32> to vector<128x128xbf16>
    %28 = tpu.iota {dimensions = array<i32: 1>} : vector<128x128xi32>
    %29 = vector.broadcast %21 : vector<128x1xi32> to vector<128x128xi32>
    %30 = arith.cmpi eq, %28, %29 : vector<128x128xi32>
    %31 = arith.extui %30 : vector<128x128xi1> to vector<128x128xi32>
    %32 = arith.sitofp %31 : vector<128x128xi32> to vector<128x128xf32>
    %33 = arith.truncf %32 : vector<128x128xf32> to vector<128x128xbf16>
    %cst_18 = arith.constant dense<0.000000e+00> : vector<128x128xf32>
    %34 = tpu.matmul %27, %33, %cst_18 {dimension_numbers = #tpu.dot_dimension_numbers<[1], [0], [0], [1], [0, 0, 1, 1], [], []>} : vector<128x128xbf16>, vector<128x128xbf16>, vector<128x128xf32> -> vector<128x128xf32>
    %cst_19 = arith.constant dense<0.000000e+00> : vector<128xf32>
    %35 = vector.multi_reduction <add>, %34, %cst_19 [1] : vector<128x128xf32> to vector<128xf32>
    %36 = vector.shape_cast %35 : vector<128xf32> to vector<128x1xf32>
    %cst_20 = arith.constant 1.000000e+00 : f32
    %37 = vector.broadcast %cst_20 : f32 to vector<128x1xf32>
    %38 = arith.maximumf %36, %37 : vector<128x1xf32>
    %39 = tpu.reciprocal %38 {approx = true} : vector<128x1xf32> -> vector<128x1xf32>
    %40 = arith.truncf %34 : vector<128x128xf32> to vector<128x128xbf16>
    %c0_21 = arith.constant 0 : index
    %c0_22 = arith.constant 0 : index
    %41 = vector.load %arg22[%c0_21, %c0_22] : memref<1x128xi32, #tpu.memory_space<vmem>>, vector<1x128xi32>
    %c0_23 = arith.constant 0 : index
    %c0_24 = arith.constant 0 : index
    %42 = vector.load %arg23[%c0_23, %c0_24] : memref<128x1xi32, #tpu.memory_space<vmem>>, vector<128x1xi32>
    %43 = tpu.iota {dimensions = array<i32: 0>} : vector<128x128xi32>
    %44 = vector.broadcast %41 : vector<1x128xi32> to vector<128x128xi32>
    %45 = arith.cmpi eq, %43, %44 : vector<128x128xi32>
    %46 = arith.extui %45 : vector<128x128xi1> to vector<128x128xi32>
    %47 = arith.sitofp %46 : vector<128x128xi32> to vector<128x128xf32>
    %48 = arith.truncf %47 : vector<128x128xf32> to vector<128x128xbf16>
    %49 = tpu.iota {dimensions = array<i32: 1>} : vector<128x128xi32>
    %50 = vector.broadcast %42 : vector<128x1xi32> to vector<128x128xi32>
    %51 = arith.cmpi eq, %49, %50 : vector<128x128xi32>
    %52 = arith.extui %51 : vector<128x128xi1> to vector<128x128xi32>
    %53 = arith.sitofp %52 : vector<128x128xi32> to vector<128x128xf32>
    %54 = arith.truncf %53 : vector<128x128xf32> to vector<128x128xbf16>
    %cst_25 = arith.constant dense<0.000000e+00> : vector<128x128xf32>
    %55 = tpu.matmul %48, %54, %cst_25 {dimension_numbers = #tpu.dot_dimension_numbers<[1], [0], [0], [1], [0, 0, 1, 1], [], []>} : vector<128x128xbf16>, vector<128x128xbf16>, vector<128x128xf32> -> vector<128x128xf32>
    %cst_26 = arith.constant dense<0.000000e+00> : vector<128xf32>
    %56 = vector.multi_reduction <add>, %55, %cst_26 [1] : vector<128x128xf32> to vector<128xf32>
    %57 = vector.shape_cast %56 : vector<128xf32> to vector<128x1xf32>
    %cst_27 = arith.constant 1.000000e+00 : f32
    %58 = vector.broadcast %cst_27 : f32 to vector<128x1xf32>
    %59 = arith.maximumf %57, %58 : vector<128x1xf32>
    %60 = tpu.reciprocal %59 {approx = true} : vector<128x1xf32> -> vector<128x1xf32>
    %61 = arith.truncf %55 : vector<128x128xf32> to vector<128x128xbf16>
    %c0_28 = arith.constant 0 : index
    %c0_29 = arith.constant 0 : index
    %62 = vector.load %arg6[%c0_28, %c0_29] : memref<256x128xbf16, #tpu.memory_space<vmem>>, vector<256x128xbf16>
    %c0_30 = arith.constant 0 : index
    %c0_31 = arith.constant 0 : index
    %63 = vector.load %arg7[%c0_30, %c0_31] : memref<1x128xf32, #tpu.memory_space<vmem>>, vector<1x128xf32>
    %cst_32 = arith.constant dense<0.000000e+00> : vector<128x128xf32>
    %64 = tpu.matmul %40, %9, %cst_32 {dimension_numbers = #tpu.dot_dimension_numbers<[1], [0], [0], [1], [0, 0, 1, 1], [], []>} : vector<128x128xbf16>, vector<128x128xbf16>, vector<128x128xf32> -> vector<128x128xf32>
    %65 = vector.broadcast %39 : vector<128x1xf32> to vector<128x128xf32>
    %66 = arith.mulf %64, %65 : vector<128x128xf32>
    %67 = arith.truncf %66 : vector<128x128xf32> to vector<128x128xbf16>
    %68 = tpu.concatenate %67, %19 in 1 : vector<128x128xbf16>, vector<128x128xbf16> -> vector<128x256xbf16>
    %cst_33 = arith.constant dense<0.000000e+00> : vector<128x128xf32>
    %69 = tpu.matmul %68, %62, %cst_33 {dimension_numbers = #tpu.dot_dimension_numbers<[1], [0], [0], [1], [0, 0, 1, 1], [], []>} : vector<128x256xbf16>, vector<256x128xbf16>, vector<128x128xf32> -> vector<128x128xf32>
    %70 = vector.broadcast %63 : vector<1x128xf32> to vector<128x128xf32>
    %71 = arith.addf %69, %70 : vector<128x128xf32>
    %cst_34 = arith.constant 0.000000e+00 : f32
    %72 = vector.broadcast %cst_34 : f32 to vector<128x128xf32>
    %73 = arith.maximumf %71, %72 : vector<128x128xf32>
    %74 = arith.truncf %73 : vector<128x128xf32> to vector<128x128xbf16>
    %c0_35 = arith.constant 0 : index
    %c0_36 = arith.constant 0 : index
    %75 = vector.load %arg8[%c0_35, %c0_36] : memref<256x128xbf16, #tpu.memory_space<vmem>>, vector<256x128xbf16>
    %c0_37 = arith.constant 0 : index
    %c0_38 = arith.constant 0 : index
    %76 = vector.load %arg9[%c0_37, %c0_38] : memref<1x128xf32, #tpu.memory_space<vmem>>, vector<1x128xf32>
    %cst_39 = arith.constant dense<0.000000e+00> : vector<128x128xf32>
    %77 = tpu.matmul %61, %19, %cst_39 {dimension_numbers = #tpu.dot_dimension_numbers<[1], [0], [0], [1], [0, 0, 1, 1], [], []>} : vector<128x128xbf16>, vector<128x128xbf16>, vector<128x128xf32> -> vector<128x128xf32>
    %78 = vector.broadcast %60 : vector<128x1xf32> to vector<128x128xf32>
    %79 = arith.mulf %77, %78 : vector<128x128xf32>
    %80 = arith.truncf %79 : vector<128x128xf32> to vector<128x128xbf16>
    %81 = tpu.concatenate %80, %9 in 1 : vector<128x128xbf16>, vector<128x128xbf16> -> vector<128x256xbf16>
    %cst_40 = arith.constant dense<0.000000e+00> : vector<128x128xf32>
    %82 = tpu.matmul %81, %75, %cst_40 {dimension_numbers = #tpu.dot_dimension_numbers<[1], [0], [0], [1], [0, 0, 1, 1], [], []>} : vector<128x256xbf16>, vector<256x128xbf16>, vector<128x128xf32> -> vector<128x128xf32>
    %83 = vector.broadcast %76 : vector<1x128xf32> to vector<128x128xf32>
    %84 = arith.addf %82, %83 : vector<128x128xf32>
    %cst_41 = arith.constant 0.000000e+00 : f32
    %85 = vector.broadcast %cst_41 : f32 to vector<128x128xf32>
    %86 = arith.maximumf %84, %85 : vector<128x128xf32>
    %87 = arith.truncf %86 : vector<128x128xf32> to vector<128x128xbf16>
    %c0_42 = arith.constant 0 : index
    %c0_43 = arith.constant 0 : index
    %88 = vector.load %arg10[%c0_42, %c0_43] : memref<256x128xbf16, #tpu.memory_space<vmem>>, vector<256x128xbf16>
    %c0_44 = arith.constant 0 : index
    %c0_45 = arith.constant 0 : index
    %89 = vector.load %arg11[%c0_44, %c0_45] : memref<1x128xf32, #tpu.memory_space<vmem>>, vector<1x128xf32>
    %cst_46 = arith.constant dense<0.000000e+00> : vector<128x128xf32>
    %90 = tpu.matmul %40, %87, %cst_46 {dimension_numbers = #tpu.dot_dimension_numbers<[1], [0], [0], [1], [0, 0, 1, 1], [], []>} : vector<128x128xbf16>, vector<128x128xbf16>, vector<128x128xf32> -> vector<128x128xf32>
    %91 = vector.broadcast %39 : vector<128x1xf32> to vector<128x128xf32>
    %92 = arith.mulf %90, %91 : vector<128x128xf32>
    %93 = arith.truncf %92 : vector<128x128xf32> to vector<128x128xbf16>
    %94 = tpu.concatenate %93, %74 in 1 : vector<128x128xbf16>, vector<128x128xbf16> -> vector<128x256xbf16>
    %cst_47 = arith.constant dense<0.000000e+00> : vector<128x128xf32>
    %95 = tpu.matmul %94, %88, %cst_47 {dimension_numbers = #tpu.dot_dimension_numbers<[1], [0], [0], [1], [0, 0, 1, 1], [], []>} : vector<128x256xbf16>, vector<256x128xbf16>, vector<128x128xf32> -> vector<128x128xf32>
    %96 = vector.broadcast %89 : vector<1x128xf32> to vector<128x128xf32>
    %97 = arith.addf %95, %96 : vector<128x128xf32>
    %98 = arith.truncf %97 : vector<128x128xf32> to vector<128x128xbf16>
    %c0_48 = arith.constant 0 : index
    %c0_49 = arith.constant 0 : index
    %99 = vector.load %arg12[%c0_48, %c0_49] : memref<256x128xbf16, #tpu.memory_space<vmem>>, vector<256x128xbf16>
    %c0_50 = arith.constant 0 : index
    %c0_51 = arith.constant 0 : index
    %100 = vector.load %arg13[%c0_50, %c0_51] : memref<1x128xf32, #tpu.memory_space<vmem>>, vector<1x128xf32>
    %cst_52 = arith.constant dense<0.000000e+00> : vector<128x128xf32>
    %101 = tpu.matmul %61, %74, %cst_52 {dimension_numbers = #tpu.dot_dimension_numbers<[1], [0], [0], [1], [0, 0, 1, 1], [], []>} : vector<128x128xbf16>, vector<128x128xbf16>, vector<128x128xf32> -> vector<128x128xf32>
    %102 = vector.broadcast %60 : vector<128x1xf32> to vector<128x128xf32>
    %103 = arith.mulf %101, %102 : vector<128x128xf32>
    %104 = arith.truncf %103 : vector<128x128xf32> to vector<128x128xbf16>
    %105 = tpu.concatenate %104, %87 in 1 : vector<128x128xbf16>, vector<128x128xbf16> -> vector<128x256xbf16>
    %cst_53 = arith.constant dense<0.000000e+00> : vector<128x128xf32>
    %106 = tpu.matmul %105, %99, %cst_53 {dimension_numbers = #tpu.dot_dimension_numbers<[1], [0], [0], [1], [0, 0, 1, 1], [], []>} : vector<128x256xbf16>, vector<256x128xbf16>, vector<128x128xf32> -> vector<128x128xf32>
    %107 = vector.broadcast %100 : vector<1x128xf32> to vector<128x128xf32>
    %108 = arith.addf %106, %107 : vector<128x128xf32>
    %109 = arith.truncf %108 : vector<128x128xf32> to vector<128x128xbf16>
    %c0_54 = arith.constant 0 : index
    %c0_55 = arith.constant 0 : index
    %110 = vector.load %arg24[%c0_54, %c0_55] : memref<16x1xi32, #tpu.memory_space<vmem>>, vector<16x1xi32>
    %111 = tpu.iota {dimensions = array<i32: 1>} : vector<16x128xi32>
    %112 = vector.broadcast %110 : vector<16x1xi32> to vector<16x128xi32>
    %113 = arith.cmpi eq, %111, %112 : vector<16x128xi32>
    %114 = arith.extui %113 : vector<16x128xi1> to vector<16x128xi32>
    %115 = arith.sitofp %114 : vector<16x128xi32> to vector<16x128xf32>
    %116 = arith.truncf %115 : vector<16x128xf32> to vector<16x128xbf16>
    %c0_56 = arith.constant 0 : index
    %c0_57 = arith.constant 0 : index
    %117 = vector.load %arg25[%c0_56, %c0_57] : memref<16x1xi32, #tpu.memory_space<vmem>>, vector<16x1xi32>
    %118 = tpu.iota {dimensions = array<i32: 1>} : vector<16x128xi32>
    %119 = vector.broadcast %117 : vector<16x1xi32> to vector<16x128xi32>
    %120 = arith.cmpi eq, %118, %119 : vector<16x128xi32>
    %121 = arith.extui %120 : vector<16x128xi1> to vector<16x128xi32>
    %122 = arith.sitofp %121 : vector<16x128xi32> to vector<16x128xf32>
    %123 = arith.truncf %122 : vector<16x128xf32> to vector<16x128xbf16>
    %cst_58 = arith.constant dense<0.000000e+00> : vector<16x128xf32>
    %124 = tpu.matmul %116, %109, %cst_58 {dimension_numbers = #tpu.dot_dimension_numbers<[1], [0], [0], [1], [0, 0, 1, 1], [], []>} : vector<16x128xbf16>, vector<128x128xbf16>, vector<16x128xf32> -> vector<16x128xf32>
    %cst_59 = arith.constant dense<0.000000e+00> : vector<16x128xf32>
    %125 = tpu.matmul %123, %98, %cst_59 {dimension_numbers = #tpu.dot_dimension_numbers<[1], [0], [0], [1], [0, 0, 1, 1], [], []>} : vector<16x128xbf16>, vector<128x128xbf16>, vector<16x128xf32> -> vector<16x128xf32>
    %126 = arith.truncf %124 : vector<16x128xf32> to vector<16x128xbf16>
    %127 = arith.truncf %125 : vector<16x128xf32> to vector<16x128xbf16>
    %128 = tpu.concatenate %126, %127 in 1 : vector<16x128xbf16>, vector<16x128xbf16> -> vector<16x256xbf16>
    %c0_60 = arith.constant 0 : index
    %c0_61 = arith.constant 0 : index
    %129 = vector.load %arg14[%c0_60, %c0_61] : memref<256x128xbf16, #tpu.memory_space<vmem>>, vector<256x128xbf16>
    %cst_62 = arith.constant dense<0.000000e+00> : vector<16x128xf32>
    %130 = tpu.matmul %128, %129, %cst_62 {dimension_numbers = #tpu.dot_dimension_numbers<[1], [0], [0], [1], [0, 0, 1, 1], [], []>} : vector<16x256xbf16>, vector<256x128xbf16>, vector<16x128xf32> -> vector<16x128xf32>
    %c0_63 = arith.constant 0 : index
    %c0_64 = arith.constant 0 : index
    %131 = vector.load %arg15[%c0_63, %c0_64] : memref<1x128xf32, #tpu.memory_space<vmem>>, vector<1x128xf32>
    %132 = vector.broadcast %131 : vector<1x128xf32> to vector<16x128xf32>
    %133 = arith.addf %130, %132 : vector<16x128xf32>
    %cst_65 = arith.constant 0.000000e+00 : f32
    %134 = vector.broadcast %cst_65 : f32 to vector<16x128xf32>
    %135 = arith.maximumf %133, %134 : vector<16x128xf32>
    %136 = arith.truncf %135 : vector<16x128xf32> to vector<16x128xbf16>
    %c0_66 = arith.constant 0 : index
    %c0_67 = arith.constant 0 : index
    %137 = vector.load %arg16[%c0_66, %c0_67] : memref<128x128xbf16, #tpu.memory_space<vmem>>, vector<128x128xbf16>
    %cst_68 = arith.constant dense<0.000000e+00> : vector<16x128xf32>
    %138 = tpu.matmul %136, %137, %cst_68 {dimension_numbers = #tpu.dot_dimension_numbers<[1], [0], [0], [1], [0, 0, 1, 1], [], []>} : vector<16x128xbf16>, vector<128x128xbf16>, vector<16x128xf32> -> vector<16x128xf32>
    %c0_69 = arith.constant 0 : index
    %c0_70 = arith.constant 0 : index
    %139 = vector.load %arg17[%c0_69, %c0_70] : memref<1x128xf32, #tpu.memory_space<vmem>>, vector<1x128xf32>
    %140 = vector.broadcast %139 : vector<1x128xf32> to vector<16x128xf32>
    %141 = arith.addf %138, %140 : vector<16x128xf32>
    %cst_71 = arith.constant 0.000000e+00 : f32
    %142 = vector.broadcast %cst_71 : f32 to vector<16x128xf32>
    %143 = arith.maximumf %141, %142 : vector<16x128xf32>
    %144 = arith.truncf %143 : vector<16x128xf32> to vector<16x128xbf16>
    %c0_72 = arith.constant 0 : index
    %c0_73 = arith.constant 0 : index
    %145 = vector.load %arg18[%c0_72, %c0_73] : memref<128x128xbf16, #tpu.memory_space<vmem>>, vector<128x128xbf16>
    %cst_74 = arith.constant dense<0.000000e+00> : vector<16x128xf32>
    %146 = tpu.matmul %144, %145, %cst_74 {dimension_numbers = #tpu.dot_dimension_numbers<[1], [0], [0], [1], [0, 0, 1, 1], [], []>} : vector<16x128xbf16>, vector<128x128xbf16>, vector<16x128xf32> -> vector<16x128xf32>
    %c0_75 = arith.constant 0 : index
    %c0_76 = arith.constant 0 : index
    %147 = vector.load %arg19[%c0_75, %c0_76] : memref<1x128xf32, #tpu.memory_space<vmem>>, vector<1x128xf32>
    %148 = vector.broadcast %147 : vector<1x128xf32> to vector<16x128xf32>
    %149 = arith.addf %146, %148 : vector<16x128xf32>
    %c0_77 = arith.constant 0 : index
    %c0_78 = arith.constant 0 : index
    %150 = vector.load %arg26[%c0_77, %c0_78] : memref<16x128xf32, #tpu.memory_space<vmem>>, vector<16x128xf32>
    tpu.vector_store %arg26[%c0_77, %c0_78], %149 {strides = array<i32>} : memref<16x128xf32, #tpu.memory_space<vmem>>, vector<16x128xf32>,
    return
  }
}

</mosaic_0001>

<bundles_post_ra>
// kernel: model_forward.1
= control target key start
LH: loop header
LB: loop body
LE: loop exit
PB: predicated region body
PF: predicated region fallthrough
CT: control target
= control target key end

     0   :  { %s6439_s0 = inlined_call_operand.vmem [shape: f32[128,128], index: 0, kind: input, shape index: {}]   ;;  %s6440_s1 = inlined_call_operand.vmem [shape: f32[128,128], index: 1, kind: input, shape index: {}]   ;;  %s6441_s2 = inlined_call_operand.vmem [shape: bf16[128,128], index: 2, kind: input, shape index: {}]   ;;  %s6442_s3 = inlined_call_operand.hbm [shape: f32[1,128], index: 3, kind: input, shape index: {}]   ;;  %s6443_s4 = inlined_call_operand.hbm [shape: bf16[128,128], index: 4, kind: input, shape index: {}]   ;;  %s6444_s5 = inlined_call_operand.hbm [shape: f32[1,128], index: 5, kind: input, shape index: {}]   ;;  %s6445_s6 = inlined_call_operand.vmem [shape: bf16[256,128], index: 6, kind: input, shape index: {}]   ;;  %s6446_s7 = inlined_call_operand.hbm [shape: f32[1,128], index: 7, kind: input, shape index: {}]   ;;  %s6447_s8 = inlined_call_operand.vmem [shape: bf16[256,128], index: 8, kind: input, shape index: {}]   ;;  %s6448_s9 = inlined_call_operand.hbm [shape: f32[1,128], index: 9, kind: input, shape index: {}]   ;;  %s6449_s10 = inlined_call_operand.vmem [shape: bf16[256,128], index: 10, kind: input, shape index: {}]   ;;  %s6450_s11 = inlined_call_operand.hbm [shape: f32[1,128], index: 11, kind: input, shape index: {}]   ;;  %s6451_s12 = inlined_call_operand.vmem [shape: bf16[256,128], index: 12, kind: input, shape index: {}]   ;;  %s6452_s13 = inlined_call_operand.hbm [shape: f32[1,128], index: 13, kind: input, shape index: {}]   ;;  %s6453_s14 = inlined_call_operand.vmem [shape: bf16[256,128], index: 14, kind: input, shape index: {}]   ;;  %s6454_s15 = inlined_call_operand.hbm [shape: f32[1,128], index: 15, kind: input, shape index: {}]   ;;  %s6455_s16 = inlined_call_operand.vmem [shape: bf16[128,128], index: 16, kind: input, shape index: {}]   ;;  %s6456_s17 = inlined_call_operand.vmem [shape: f32[1,128], index: 17, kind: input, shape index: {}]   ;;  %s6457_s18 = inlined_call_operand.hbm [shape: bf16[128,128], index: 18, kind: input, shape index: {}]   ;;  %s6458_s19 = inlined_call_operand.hbm [shape: f32[1,128], index: 19, kind: input, shape index: {}]   ;;  %s6459_s20 = inlined_call_operand.vmem [shape: s32[1,128], index: 20, kind: input, shape index: {}]   ;;  %s6460_s21 = inlined_call_operand.vmem [shape: s32[128,1], index: 21, kind: input, shape index: {}]   ;;  %s6461_s22 = inlined_call_operand.vmem [shape: s32[1,128], index: 22, kind: input, shape index: {}]   ;;  %s6462_s23 = inlined_call_operand.vmem [shape: s32[128,1], index: 23, kind: input, shape index: {}]   ;;  %s6463_s24 = inlined_call_operand.vmem [shape: s32[16,1], index: 24, kind: input, shape index: {}]   ;;  %s6464_s25 = inlined_call_operand.vmem [shape: s32[16,1], index: 25, kind: input, shape index: {}]   ;;  %s6465_s26 = inlined_call_operand.vmem [shape: f32[16,128], index: 26, kind: output, shape index: {}]  }
   0x1   :  { %6496 = sst [smem:[#allocation38_spill]] %s6439_s0 }
   0x2   :  { %6497 = sst [smem:[#allocation39_spill]] %s6440_s1 }
   0x3   :  { %6498 = sst [smem:[#allocation40_spill]] %s6441_s2 }
   0x4   :  { %6499 = sst [smem:[#allocation41_spill]] %s6442_s3 }
   0x5   :  { %6500 = sst [smem:[#allocation42_spill]] %s6443_s4 }
   0x6   :  { %6501 = sst [smem:[#allocation43_spill]] %s6444_s5 }
   0x7   :  { %6502 = sst [smem:[#allocation44_spill]] %s6445_s6 }
   0x8   :  { %6503 = sst [smem:[#allocation45_spill]] %s6446_s7 }
   0x9   :  { %6504 = sst [smem:[#allocation46_spill]] %s6447_s8 }
   0xa   :  { %6505 = sst [smem:[#allocation47_spill]] %s6448_s9 }
   0xb   :  { %6506 = sst [smem:[#allocation48_spill]] %s6449_s10 }
   0xc   :  { %6507 = sst [smem:[#allocation49_spill]] %s6455_s16 }
   0xd   :  { %6508 = sst [smem:[#allocation50_spill]] %s6456_s17 }
   0xe   :  { %6509 = sst [smem:[#allocation51_spill]] %s6465_s26 }
   0xf   :  { %31 = vsyncpa [#allocation3], 0 }
  0x10   :  { %32 = vsyncpa [#allocation5], 0 }
  0x11   :  { %33 = vsyncpa [#allocation8], 0 }
  0x12   :  { %34 = vsyncpa [#allocation11], 0 }
  0x13   :  { %35 = vsyncpa [#allocation14], 0 }
  0x14   :  { %36 = vsyncpa [#allocation17], 0  ;;  %s4826_s27 = smov [#allocation4]   ;;  %s6510_s8 = sld [smem:[#allocation42_spill]] }
  0x15   :  { %s58_s3 = sshll.u32 %s4826_s27, 4  ;;  %s59_s3 = int_to_ptr.vmem [resolvable:$true] %s58_s3 }
  0x1a   :  { %s4594_s4 = scalar_lea.hbm %s6510_s8, 1024 }
  0x1b   :  { %p4595_p0 = scmp.ne.s32.totalorder %s6510_s8, %s4594_s4  ;;  %p4598_p1 = scmp.lt.u32.totalorder %s4594_s4, %s6510_s8 }
  0x1d   :  { %p4600_p2 = pnand %p4598_p1, %p4595_p0 }
  0x1f   :  { %4603 = shalt.err (!%p4600_p2)
}
  0x20   :  { %s4604_s2 = scalar_lea.vmem %s59_s3, 1024  ;;  %p4609_p4 = scmp.lt.s32.totalorder %s59_s3, %s59_s3 }
  0x21   :  { %p4605_p3 = scmp.ne.s32.totalorder %s59_s3, %s4604_s2  ;;  %p4610_p5 = scmp.lt.s32.totalorder %s4604_s2, %s4604_s2 }
  0x23   :  { %p4611_p6 = por %p4610_p5, %p4609_p4 }
  0x25   :  { %p4612_p7 = pnand %p4611_p6, %p4605_p3 }
  0x27   :  { %4615 = shalt.err (!%p4612_p7)
}
  0x28   :  { %s4827_s5 = smov 64   ;;  %s4828_s10 = smov 4  }
  0x29   :  { %64 = dma.hbm_to_vmem [thread:$0]  %s6510_s8, 1024, %s59_s3, [#allocation5], %s4827_s5, %s4827_s5, %s4828_s10  }
  0x2a   :  { %s4829_s27 = smov [#allocation7]   ;;  %s4830_s28 = smov [#allocation10]  }
  0x2b   :  { %s83_s7 = sshll.u32 %s4829_s27, 4  ;;  %s107_s4 = sshll.u32 %s4830_s28, 4  ;;  %s84_s7 = int_to_ptr.vmem [resolvable:$true] %s83_s7  ;;  %s108_s4 = int_to_ptr.vmem [resolvable:$true] %s107_s4 }
  0x2c   :  { %s6511_s9 = sld [smem:[#allocation45_spill]] }
  0x32   :  { %s4616_s30 = scalar_lea.hbm %s6511_s9, 16 }
  0x33   :  { %p4617_p8 = scmp.ne.s32.totalorder %s6511_s9, %s4616_s30  ;;  %p4620_p9 = scmp.lt.u32.totalorder %s4616_s30, %s6511_s9 }
  0x35   :  { %p4622_p10 = pnand %p4620_p9, %p4617_p8 }
  0x37   :  { %4625 = shalt.err (!%p4622_p10)
}
  0x38   :  { %s4626_s3 = scalar_lea.vmem %s84_s7, 16  ;;  %s4630_s8 = scalar_lea.vmem %s84_s7, 32 }
  0x39   :  { %p4627_p11 = scmp.ne.s32.totalorder %s84_s7, %s4626_s3  ;;  %p4631_p12 = scmp.lt.s32.totalorder %s84_s7, %s84_s7 }
  0x3a   :  { %p4632_p13 = scmp.lt.s32.totalorder %s4630_s8, %s4626_s3 }
  0x3c   :  { %p4633_p0 = por %p4632_p13, %p4631_p12 }
  0x3e   :  { %p4634_p1 = pnand %p4633_p0, %p4627_p11 }
  0x40   :  { %4637 = shalt.err (!%p4634_p1)
}
  0x41   :  { %86 = dma.hbm_to_vmem [thread:$0]  %s6511_s9, 16, %s84_s7, [#allocation8]  }
  0x42   :  { %s4638_s16 = scalar_lea.hbm %s6450_s11, 16 }
  0x43   :  { %p4639_p2 = scmp.ne.s32.totalorder %s6450_s11, %s4638_s16  ;;  %p4642_p3 = scmp.lt.u32.totalorder %s4638_s16, %s6450_s11 }
  0x45   :  { %p4644_p4 = pnand %p4642_p3, %p4639_p2 }
  0x47   :  { %4647 = shalt.err (!%p4644_p4)
}
  0x48   :  { %s4648_s30 = scalar_lea.vmem %s108_s4, 16  ;;  %s4652_s2 = scalar_lea.vmem %s108_s4, 32 }
  0x49   :  { %p4649_p5 = scmp.ne.s32.totalorder %s108_s4, %s4648_s30  ;;  %p4653_p6 = scmp.lt.s32.totalorder %s108_s4, %s108_s4 }
  0x4a   :  { %p4654_p7 = scmp.lt.s32.totalorder %s4652_s2, %s4648_s30 }
  0x4c   :  { %p4655_p8 = por %p4654_p7, %p4653_p6 }
  0x4e   :  { %p4656_p9 = pnand %p4655_p8, %p4649_p5 }
  0x50   :  { %4659 = shalt.err (!%p4656_p9)
}
  0x51   :  { %110 = dma.hbm_to_vmem [thread:$0]  %s6450_s11, 16, %s108_s4, [#allocation11]  }
  0x52   :  { %s4831_s3 = smov [#allocation13]   ;;  %s4832_s6 = smov [#allocation2]  }
  0x53   :  { %s131_s8 = sshll.u32 %s4831_s3, 4  ;;  %s49_s1 = sshll.u32 %s4832_s6, 4  ;;  %s132_s8 = int_to_ptr.vmem [resolvable:$true] %s131_s8  ;;  %s50_s1 = int_to_ptr.vmem [resolvable:$true] %s49_s1 }
  0x54   :  { %s4660_s16 = scalar_lea.hbm %s6454_s15, 16 }
  0x55   :  { %p4661_p10 = scmp.ne.s32.totalorder %s6454_s15, %s4660_s16  ;;  %p4664_p11 = scmp.lt.u32.totalorder %s4660_s16, %s6454_s15 }
  0x57   :  { %p4666_p12 = pnand %p4664_p11, %p4661_p10 }
  0x59   :  { %4669 = shalt.err (!%p4666_p12)
}
  0x5a   :  { %s4670_s11 = scalar_lea.vmem %s132_s8, 16  ;;  %s4674_s4 = scalar_lea.vmem %s132_s8, 32 }
  0x5b   :  { %p4671_p13 = scmp.ne.s32.totalorder %s132_s8, %s4670_s11  ;;  %p4675_p0 = scmp.lt.s32.totalorder %s132_s8, %s132_s8 }
  0x5c   :  { %p4676_p1 = scmp.lt.s32.totalorder %s4674_s4, %s4670_s11 }
  0x5e   :  { %p4677_p2 = por %p4676_p1, %p4675_p0 }
  0x60   :  { %p4678_p3 = pnand %p4677_p2, %p4671_p13 }
  0x62   :  { %4681 = shalt.err (!%p4678_p3)
}
  0x63   :  { %134 = dma.hbm_to_vmem [thread:$0]  %s6454_s15, 16, %s132_s8, [#allocation14]  }
  0x64   :  { %s6512_s3 = sld [smem:[#allocation41_spill]] }
  0x6a   :  { %s4682_s6 = scalar_lea.hbm %s6512_s3, 16 }
  0x6b   :  { %p4683_p4 = scmp.ne.s32.totalorder %s6512_s3, %s4682_s6  ;;  %p4686_p5 = scmp.lt.u32.totalorder %s4682_s6, %s6512_s3 }
  0x6d   :  { %p4688_p6 = pnand %p4686_p5, %p4683_p4 }
  0x6f   :  { %4691 = shalt.err (!%p4688_p6)
}
  0x70   :  { %s4692_s28 = scalar_lea.vmem %s50_s1, 16  ;;  %s4696_s29 = scalar_lea.vmem %s50_s1, 32 }
  0x71   :  { %p4693_p7 = scmp.ne.s32.totalorder %s50_s1, %s4692_s28  ;;  %p4697_p8 = scmp.lt.s32.totalorder %s50_s1, %s50_s1 }
  0x72   :  { %p4698_p9 = scmp.lt.s32.totalorder %s4696_s29, %s4692_s28 }
  0x74   :  { %p4699_p10 = por %p4698_p9, %p4697_p8 }
  0x76   :  { %p4700_p11 = pnand %p4699_p10, %p4693_p7 }
  0x78   :  { %4703 = shalt.err (!%p4700_p11)
}
  0x79   :  { %52 = dma.hbm_to_vmem [thread:$0]  %s6512_s3, 16, %s50_s1, [#allocation3]  }
  0x7a   :  { %s4833_s0 = smov [#allocation6]   ;;  %s4834_s4 = smov [#allocation9]  }
  0x7b   :  { %s71_s11 = sshll.u32 %s4833_s0, 4  ;;  %s95_s30 = sshll.u32 %s4834_s4, 4  ;;  %s72_s11 = int_to_ptr.vmem [resolvable:$true] %s71_s11  ;;  %s96_s30 = int_to_ptr.vmem [resolvable:$true] %s95_s30 }
  0x7c   :  { %s6513_s9 = sld [smem:[#allocation43_spill]] }
  0x82   :  { %s4704_s6 = scalar_lea.hbm %s6513_s9, 16 }
  0x83   :  { %p4705_p12 = scmp.ne.s32.totalorder %s6513_s9, %s4704_s6  ;;  %p4708_p13 = scmp.lt.u32.totalorder %s4704_s6, %s6513_s9 }
  0x85   :  { %p4710_p0 = pnand %p4708_p13, %p4705_p12 }
  0x87   :  { %4713 = shalt.err (!%p4710_p0)
}
  0x88   :  { %s4714_s1 = scalar_lea.vmem %s72_s11, 16  ;;  %s4718_s3 = scalar_lea.vmem %s72_s11, 32 }
  0x89   :  { %p4715_p1 = scmp.ne.s32.totalorder %s72_s11, %s4714_s1  ;;  %p4719_p2 = scmp.lt.s32.totalorder %s72_s11, %s72_s11 }
  0x8a   :  { %p4720_p3 = scmp.lt.s32.totalorder %s4718_s3, %s4714_s1 }
  0x8c   :  { %p4721_p4 = por %p4720_p3, %p4719_p2 }
  0x8e   :  { %p4722_p5 = pnand %p4721_p4, %p4715_p1 }
  0x90   :  { %4725 = shalt.err (!%p4722_p5)
}
  0x91   :  { %74 = dma.hbm_to_vmem [thread:$0]  %s6513_s9, 16, %s72_s11, [#allocation5]  }
  0x92   :  { %s6514_s0 = sld [smem:[#allocation47_spill]] }
  0x98   :  { %s4726_s4 = scalar_lea.hbm %s6514_s0, 16 }
  0x99   :  { %p4727_p6 = scmp.ne.s32.totalorder %s6514_s0, %s4726_s4  ;;  %p4730_p7 = scmp.lt.u32.totalorder %s4726_s4, %s6514_s0 }
  0x9b   :  { %p4732_p8 = pnand %p4730_p7, %p4727_p6 }
  0x9d   :  { %4735 = shalt.err (!%p4732_p8)
}
  0x9e   :  { %s4736_s27 = scalar_lea.vmem %s96_s30, 16  ;;  %s4740_s16 = scalar_lea.vmem %s96_s30, 32 }
  0x9f   :  { %p4737_p9 = scmp.ne.s32.totalorder %s96_s30, %s4736_s27  ;;  %p4741_p10 = scmp.lt.s32.totalorder %s96_s30, %s96_s30 }
  0xa0   :  { %p4742_p11 = scmp.lt.s32.totalorder %s4740_s16, %s4736_s27 }
  0xa2   :  { %p4743_p12 = por %p4742_p11, %p4741_p10 }
  0xa4   :  { %p4744_p13 = pnand %p4743_p12, %p4737_p9 }
  0xa6   :  { %4747 = shalt.err (!%p4744_p13)
}
  0xa7   :  { %98 = dma.hbm_to_vmem [thread:$0]  %s6514_s0, 16, %s96_s30, [#allocation8]  }
  0xa8   :  { %s4835_s17 = smov [#allocation12]   ;;  %s4836_s3 = smov [#allocation15]  }
  0xa9   :  { %s119_s1 = sshll.u32 %s4835_s17, 4  ;;  %s144_s28 = sshll.u32 %s4836_s3, 4  ;;  %s120_s1 = int_to_ptr.vmem [resolvable:$true] %s119_s1  ;;  %s145_s28 = int_to_ptr.vmem [resolvable:$true] %s144_s28 }
  0xaa   :  { %s4748_s8 = scalar_lea.hbm %s6452_s13, 16 }
  0xab   :  { %p4749_p0 = scmp.ne.s32.totalorder %s6452_s13, %s4748_s8  ;;  %p4752_p1 = scmp.lt.u32.totalorder %s4748_s8, %s6452_s13 }
  0xad   :  { %p4754_p2 = pnand %p4752_p1, %p4749_p0 }
  0xaf   :  { %4757 = shalt.err (!%p4754_p2)
}
  0xb0   :  { %s4758_s30 = scalar_lea.vmem %s120_s1, 16  ;;  %s4762_s0 = scalar_lea.vmem %s120_s1, 32 }
  0xb1   :  { %p4759_p3 = scmp.ne.s32.totalorder %s120_s1, %s4758_s30  ;;  %p4763_p4 = scmp.lt.s32.totalorder %s120_s1, %s120_s1 }
  0xb2   :  { %p4764_p5 = scmp.lt.s32.totalorder %s4762_s0, %s4758_s30 }
  0xb4   :  { %p4765_p6 = por %p4764_p5, %p4763_p4 }
  0xb6   :  { %p4766_p7 = pnand %p4765_p6, %p4759_p3 }
  0xb8   :  { %4769 = shalt.err (!%p4766_p7)
}
  0xb9   :  { %122 = dma.hbm_to_vmem [thread:$0]  %s6452_s13, 16, %s120_s1, [#allocation11]  }
  0xba   :  { %s4770_s9 = scalar_lea.hbm %s6457_s18, 1024 }
  0xbb   :  { %p4771_p8 = scmp.ne.s32.totalorder %s6457_s18, %s4770_s9  ;;  %p4774_p9 = scmp.lt.u32.totalorder %s4770_s9, %s6457_s18 }
  0xbd   :  { %p4776_p10 = pnand %p4774_p9, %p4771_p8 }
  0xbf   :  { %4779 = shalt.err (!%p4776_p10)
}
  0xc0   :  { %s4780_s8 = scalar_lea.vmem %s145_s28, 1024  ;;  %p4785_p12 = scmp.lt.s32.totalorder %s145_s28, %s145_s28 }
  0xc1   :  { %p4781_p11 = scmp.ne.s32.totalorder %s145_s28, %s4780_s8  ;;  %p4786_p13 = scmp.lt.s32.totalorder %s4780_s8, %s4780_s8 }
  0xc3   :  { %p4787_p0 = por %p4786_p13, %p4785_p12 }
  0xc5   :  { %p4788_p1 = pnand %p4787_p0, %p4781_p11 }
  0xc7   :  { %4791 = shalt.err (!%p4788_p1)
}
  0xc8   :  { %150 = dma.hbm_to_vmem [thread:$0]  %s6457_s18, 1024, %s145_s28, [#allocation14], %s4827_s5, %s4827_s5, %s4828_s10  }
  0xc9   :  { %s4837_s4 = smov [#allocation16]   ;;  %s4792_s30 = scalar_lea.hbm %s6458_s19, 16 }
  0xca   :  { %s157_s2 = sshll.u32 %s4837_s4, 4  ;;  %p4793_p2 = scmp.ne.s32.totalorder %s6458_s19, %s4792_s30  ;;  %s158_s2 = int_to_ptr.vmem [resolvable:$true] %s157_s2 }
  0xcb   :  { %p4796_p3 = scmp.lt.u32.totalorder %s4792_s30, %s6458_s19 }
  0xcd   :  { %p4798_p4 = pnand %p4796_p3, %p4793_p2 }
  0xcf   :  { %4801 = shalt.err (!%p4798_p4)
}
  0xd0   :  { %s4802_s11 = scalar_lea.vmem %s158_s2, 16  ;;  %s4806_s18 = scalar_lea.vmem %s158_s2, 32 }
  0xd1   :  { %p4803_p5 = scmp.ne.s32.totalorder %s158_s2, %s4802_s11  ;;  %p4807_p6 = scmp.lt.s32.totalorder %s158_s2, %s158_s2 }
  0xd2   :  { %p4808_p7 = scmp.lt.s32.totalorder %s4806_s18, %s4802_s11 }
  0xd4   :  { %p4809_p8 = por %p4808_p7, %p4807_p6 }
  0xd6   :  { %p4810_p9 = pnand %p4809_p8, %p4803_p5 }
  0xd8   :  { %4813 = shalt.err (!%p4810_p9)
}
  0xd9   :  { %160 = dma.hbm_to_vmem [thread:$0]  %s6458_s19, 16, %s158_s2, [#allocation17]  }
  0xda   :  { %4814 = dma.done.wait [#allocation3], 16  }
  0xdb   :  { %4815 = vsyncadd [#allocation3], 4294967280 }
  0xdc   :  { %4816 = dma.done.wait [#allocation5], 1040  }
  0xdd   :  { %4817 = vsyncadd [#allocation5], 4294966256 }
  0xde   :  { %4818 = dma.done.wait [#allocation8], 32  }
  0xdf   :  { %4819 = vsyncadd [#allocation8], 4294967264 }
  0xe0   :  { %4820 = dma.done.wait [#allocation11], 32  }
  0xe1   :  { %4821 = vsyncadd [#allocation11], 4294967264 }
  0xe2   :  { %4822 = dma.done.wait [#allocation14], 1040  }
  0xe3   :  { %4823 = vsyncadd [#allocation14], 4294966256 }
  0xe4   :  { %4824 = dma.done.wait [#allocation17], 16  }
  0xe5   :  { %4825 = vsyncadd [#allocation17], 4294967280  ;;  %v4838_v0 = vmov 0   ;;  %v639_v1 = vld [vmem:[%s6460_s21 + $0x10] sm:$0xff]  ;;  %v637_v2 = vld [vmem:[%s6460_s21] sm:$0xff]  ;;  %s6515_s16 = sld [smem:[#allocation40_spill]]  ;;  %v653_v33 = vlaneseq }
  0xe6   :  { %4417 = vset.pattern.permute.xlu1 %v4838_v0  ;;  %4416 = vset.pattern.permute.xlu0 %v4838_v0  ;;  %v640_v3 = vld [vmem:[%s6460_s21 + $0x18] sm:$0xff]  ;;  %v638_v4 = vld [vmem:[%s6460_s21 + $0x8] sm:$0xff]  ;;  %v641_v6 = vld [vmem:[%s6460_s21 + $0x20] sm:$0xff]  ;;  %s6516_s4 = sld [smem:[#allocation38_spill]]  ;;  %s6517_s0 = sld [smem:[#allocation39_spill]] }
  0xe7   :  { %739 = vperm.xlu1 %4417, %v639_v1   ;;  %733 = vperm.xlu0 %4416, %v637_v2   ;;  %v642_v5 = vld [vmem:[%s6460_s21 + $0x28] sm:$0xff]  ;;  %v644_v7 = vld [vmem:[%s6460_s21 + $0x38] sm:$0xff]  ;;  %v643_v8 = vld [vmem:[%s6460_s21 + $0x30] sm:$0xff]  ;;  %v5197_v39 = vshrl.u32 %v653_v33, 7  ;;  %s6559_s2 = sld [smem:[#allocation44_spill]]  ;;  %s6560_s3 = sld [smem:[#allocation46_spill]] }
  0xe8   :  { %v646_v11 = vld [vmem:[%s6460_s21 + $0x48] sm:$0xff]  ;;  %v645_v12 = vld [vmem:[%s6460_s21 + $0x40] sm:$0xff]  ;;  %v648_v14 = vld [vmem:[%s6460_s21 + $0x58] sm:$0xff]  ;;  %s6577_s15 = sld [smem:[#allocation48_spill]]  ;;  %s6593_s1 = sld [smem:[#allocation49_spill]] }
  0xe9   :  { %v647_v15 = vld [vmem:[%s6460_s21 + $0x50] sm:$0xff]  ;;  %v4426_v20 = vld [vmem:[#allocation4] sm:$0xff]   ;;  %v652_v26 = vld [vmem:[%s6460_s21 + $0x78] sm:$0xff]  ;;  %v5214_v46 = vadd.s32 16, %v5197_v39  ;;  %v5217_v47 = vadd.s32 24, %v5197_v39  ;;  %v5246_v59 = vadd.s32 32, %v5197_v39 }
  0xea   :  { %v650_v21 = vld [vmem:[%s6460_s21 + $0x68] sm:$0xff]  ;;  %v649_v22 = vld [vmem:[%s6460_s21 + $0x60] sm:$0xff]  ;;  %4096 = vmatprep.subr.bf16.mxu1 %v4426_v20  ;;  %v4428_v25 = vld [vmem:[#allocation4 + $0x10] sm:$0xff]   ;;  %v5249_v60 = vadd.s32 40, %v5197_v39  ;;  %v5258_v63 = vadd.s32 48, %v5197_v39  ;;  %v5261_v0 = vadd.s32 56, %v5197_v39 }
  0xeb   :  { %742 = vperm.xlu1 %4417, %v640_v3   ;;  %736 = vperm.xlu0 %4416, %v638_v4   ;;  %v4418_v9 = vld [vmem:[%s6515_s16] sm:$0xff]   ;;  %v4419_v10 = vld [vmem:[%s6515_s16 + $0x8] sm:$0xff]   ;;  %v4420_v13 = vld [vmem:[%s6515_s16 + $0x10] sm:$0xff]   ;;  %s6594_s19 = sld [smem:[#allocation50_spill]]  ;;  %s6595_s29 = sld [smem:[#allocation51_spill]] }
  0xec   :  { %4064 = vmatprep.subr.bf16.mxu0 %v4418_v9  ;;  %v204_v16 = vld [vmem:[%s6516_s4] sm:$0xff]  ;;  %v4421_v17 = vld [vmem:[%s6515_s16 + $0x18] sm:$0xff]   ;;  %v205_v18 = vld [vmem:[%s6516_s4 + $0x8] sm:$0xff]  ;;  %4097 = vmatpush3.bf16.msra.mxu1 %v4426_v20 }
  0xed   :  { %4065 = vmatpush3.bf16.msra.mxu0 %v4418_v9  ;;  %v220_v19 = vpack.c.bf16 %v205_v18, %v204_v16  ;;  %v4427_v23 = vld [vmem:[#allocation4 + $0x8] sm:$0xff]   ;;  %v4422_v24 = vld [vmem:[%s6515_s16 + $0x20] sm:$0xff]   ;;  %v1009_v34 = vld [vmem:[%s6462_s23 + $0x18] sm:$0xff]  ;;  %v5313_v18 = vadd.s32 72, %v5197_v39 }
  0xee   :  { %4066 = vmatprep.subr.bf16.mxu0 %v4419_v10  ;;  %v651_v27 = vld [vmem:[%s6460_s21 + $0x70] sm:$0xff]  ;;  %4098 = vmatprep.subr.bf16.mxu1 %v4427_v23  ;;  %v4423_v28 = vld [vmem:[%s6515_s16 + $0x28] sm:$0xff]   ;;  %v4429_v29 = vld [vmem:[#allocation4 + $0x18] sm:$0xff]  }
  0xef   :  { %748 = vperm.xlu1 %4417, %v642_v5   ;;  %745 = vperm.xlu0 %4416, %v641_v6   ;;  %v1007_v30 = vld [vmem:[%s6462_s23 + $0x8] sm:$0xff]  ;;  %v1006_v31 = vld [vmem:[%s6462_s23] sm:$0xff]  ;;  %v4424_v32 = vld [vmem:[%s6515_s16 + $0x30] sm:$0xff]  }
  0xf0   :  { %4080 = vmatprep.mubr.bf16.mxu0 %v220_v19  ;;  %4099 = vmatpush3.bf16.msra.mxu1 %v4427_v23  ;;  %v4430_v35 = vld [vmem:[#allocation4 + $0x20] sm:$0xff]   ;;  %v1008_v38 = vld [vmem:[%s6462_s23 + $0x10] sm:$0xff]  ;;  %v4425_v40 = vld [vmem:[%s6515_s16 + $0x38] sm:$0xff]  }
  0xf1   :  { %4067 = vmatpush3.bf16.msra.mxu0 %v4419_v10  ;;  %4100 = vmatprep.subr.bf16.mxu1 %v4428_v25  ;;  %v420_v36 = vld [vmem:[%s6517_s0] sm:$0xff]  ;;  %v421_v37 = vld [vmem:[%s6517_s0 + $0x8] sm:$0xff]  ;;  %v206_v48 = vld [vmem:[%s6516_s4 + $0x10] sm:$0xff] }
  0xf2   :  { %4068 = vmatprep.subr.bf16.mxu0 %v4420_v13  ;;  %v436_v41 = vpack.c.bf16 %v421_v37, %v420_v36  ;;  %v4431_v42 = vld [vmem:[#allocation4 + $0x28] sm:$0xff]   ;;  %v1010_v44 = vld [vmem:[%s6462_s23 + $0x20] sm:$0xff]  ;;  %v207_v49 = vld [vmem:[%s6516_s4 + $0x18] sm:$0xff] }
  0xf3   :  { %754 = vperm.xlu1 %4417, %v644_v7   ;;  %751 = vperm.xlu0 %4416, %v643_v8   ;;  %v1011_v43 = vld [vmem:[%s6462_s23 + $0x28] sm:$0xff]  ;;  %v5211_v45 = vld [vmem:[%s6459_s20] ss:$0 sm:$0xff]  ;;  %v4432_v52 = vld [vmem:[#allocation4 + $0x30] sm:$0xff]   ;;  %v221_v56 = vpack.c.bf16 %v207_v49, %v206_v48  ;;  %v669_v48 = vadd.s32 120, %v5197_v39 }
  0xf4   :  { %4101 = vmatpush3.bf16.msra.mxu1 %v4428_v25  ;;  %v208_v50 = vld [vmem:[%s6516_s4 + $0x20] sm:$0xff]  ;;  %4112 = vmatprep.mubr.bf16.mxu1 %v436_v41  ;;  %vm676_vm0 = vcmp.eq.s32.totalorder %v5214_v46, %v5211_v45  ;;  %vm677_vm1 = vcmp.eq.s32.totalorder %v5217_v47, %v5211_v45  ;;  %v209_v51 = vld [vmem:[%s6516_s4 + $0x28] sm:$0xff]  ;;  %v1013_v54 = vld [vmem:[%s6462_s23 + $0x38] sm:$0xff]  ;;  %vm678_vm3 = vcmp.eq.s32.totalorder %v5246_v59, %v5211_v45 }
  0xf5   :  { %4069 = vmatpush3.bf16.msra.mxu0 %v4420_v13  ;;  %4102 = vmatprep.subr.bf16.mxu1 %v4429_v29  ;;  %vm5235_vm2 = vmpackc.low %vm677_vm1, %vm676_vm0  ;;  %v1012_v55 = vld [vmem:[%s6462_s23 + $0x30] sm:$0xff]  ;;  %v4433_v57 = vld [vmem:[#allocation4 + $0x38] sm:$0xff]   ;;  %v222_v58 = vpack.c.bf16 %v209_v51, %v208_v50  ;;  %vm679_vm4 = vcmp.eq.s32.totalorder %v5249_v60, %v5211_v45  ;;  %vm680_vm6 = vcmp.eq.s32.totalorder %v5258_v63, %v5211_v45 }
  0xf6   :  { %4070 = vmatprep.subr.bf16.mxu0 %v4421_v17  ;;  %v1015_v61 = vld [vmem:[%s6462_s23 + $0x48] sm:$0xff]  ;;  %v1014_v62 = vld [vmem:[%s6462_s23 + $0x40] sm:$0xff]  ;;  %v210_v1 = vld [vmem:[%s6516_s4 + $0x30] sm:$0xff]  ;;  %vm681_vm7 = vcmp.eq.s32.totalorder %v5261_v0, %v5211_v45  ;;  %vm683_vm10 = vcmp.eq.s32.totalorder %v5313_v18, %v5211_v45 }
  0xf7   :  { %760 = vperm.xlu1 %4417, %v646_v11   ;;  %757 = vperm.xlu0 %4416, %v645_v12   ;;  %v211_v2 = vld [vmem:[%s6516_s4 + $0x38] sm:$0xff]  ;;  %v212_v3 = vld [vmem:[%s6516_s4 + $0x40] sm:$0xff]  ;;  %v213_v4 = vld [vmem:[%s6516_s4 + $0x48] sm:$0xff] }
  0xf8   :  { %4103 = vmatpush3.bf16.msra.mxu1 %v4429_v29  ;;  %v422_v5 = vld [vmem:[%s6517_s0 + $0x10] sm:$0xff]  ;;  %v423_v6 = vld [vmem:[%s6517_s0 + $0x18] sm:$0xff]  ;;  %vm5285_vm5 = vmpackc.low %vm679_vm4, %vm678_vm3  ;;  %v223_v13 = vpack.c.bf16 %v211_v2, %v210_v1  ;;  %vm689_vm4 = vcmp.eq.s32.totalorder %v669_v48, %v5211_v45 }
  0xf9   :  { %4071 = vmatpush3.bf16.msra.mxu0 %v4421_v17  ;;  %4104 = vmatprep.subr.bf16.mxu1 %v4430_v35  ;;  %v424_v8 = vld [vmem:[%s6517_s0 + $0x20] sm:$0xff]  ;;  %v425_v9 = vld [vmem:[%s6517_s0 + $0x28] sm:$0xff]  ;;  %vm5299_vm8 = vmpackc.low %vm681_vm7, %vm680_vm6  ;;  %v5310_v17 = vadd.s32 64, %v5197_v39  ;;  %vm674_vm6 = vcmp.eq.s32.totalorder %v5197_v39, %v5211_v45 }
  0xfa   :  { %4072 = vmatprep.subr.bf16.mxu0 %v4422_v24  ;;  %v1017_v11 = vld [vmem:[%s6462_s23 + $0x58] sm:$0xff]  ;;  %v1016_v12 = vld [vmem:[%s6462_s23 + $0x50] sm:$0xff]  ;;  %v438_v16 = vpack.c.bf16 %v425_v9, %v424_v8  ;;  %v1019_v19 = vld [vmem:[%s6462_s23 + $0x68] sm:$0xff] }
  0xfb   :  { %766 = vperm.xlu1 %4417, %v648_v14   ;;  %763 = vperm.xlu0 %4416, %v647_v15   ;;  %v437_v14 = vpack.c.bf16 %v423_v6, %v422_v5  ;;  %v224_v15 = vpack.c.bf16 %v213_v4, %v212_v3  ;;  %v1018_v20 = vld [vmem:[%s6462_s23 + $0x60] sm:$0xff]  ;;  %v214_v23 = vld [vmem:[%s6516_s4 + $0x50] sm:$0xff]  ;;  %vm682_vm9 = vcmp.eq.s32.totalorder %v5310_v17, %v5211_v45  ;;  %v219_v50 = vld [vmem:[%s6516_s4 + $0x78] sm:$0xff]  ;;  %v6479_v3 = vmov 1.0|1.0  }
  0xfc   :  { %4105 = vmatpush3.bf16.msra.mxu1 %v4430_v35  ;;  %v216_v25 = vld [vmem:[%s6516_s4 + $0x60] sm:$0xff]  ;;  %vm5349_vm11 = vmpackc.low %vm683_vm10, %vm682_vm9  ;;  %v1021_v35 = vld [vmem:[%s6462_s23 + $0x78] sm:$0xff]  ;;  %v6544_v4 = vmov 0  ;;  %v6546_v5 = vmov 0  ;;  %v6548_v6 = vmov 0 }
  0xfd   :  { %4073 = vmatpush3.bf16.msra.mxu0 %v4422_v24  ;;  %4106 = vmatprep.subr.bf16.mxu1 %v4431_v42  ;;  %v215_v24 = vld [vmem:[%s6516_s4 + $0x58] sm:$0xff]  ;;  %v1020_v36 = vld [vmem:[%s6462_s23 + $0x70] sm:$0xff] }
  0xfe   :  { %4074 = vmatprep.subr.bf16.mxu0 %v4423_v28  ;;  %v225_v37 = vpack.c.bf16 %v215_v24, %v214_v23  ;;  %v218_v49 = vld [vmem:[%s6516_s4 + $0x70] sm:$0xff] }
  0xff   :  { %772 = vperm.xlu1 %4417, %v650_v21   ;;  %769 = vperm.xlu0 %4416, %v649_v22   ;;  %v5322_v21 = vadd.s32 80, %v5197_v39  ;;  %v5325_v22 = vadd.s32 88, %v5197_v39  ;;  %v430_v51 = vld [vmem:[%s6517_s0 + $0x50] sm:$0xff] }
 0x100   :  { %4107 = vmatpush3.bf16.msra.mxu1 %v4431_v42  ;;  %v666_v42 = vadd.s32 96, %v5197_v39 }
 0x101   :  { %4075 = vmatpush3.bf16.msra.mxu0 %v4423_v28  ;;  %4108 = vmatprep.subr.bf16.mxu1 %v4432_v52  ;;  %v427_v28 = vld [vmem:[%s6517_s0 + $0x38] sm:$0xff]  ;;  %vm684_vm12 = vcmp.eq.s32.totalorder %v5322_v21, %v5211_v45  ;;  %vm685_vm13 = vcmp.eq.s32.totalorder %v5325_v22, %v5211_v45 }
 0x102   :  { %4076 = vmatprep.subr.bf16.mxu0 %v4424_v32  ;;  %vm5364_vm14 = vmpackc.low %vm685_vm13, %vm684_vm12  ;;  %vm686_vm15 = vcmp.eq.s32.totalorder %v666_v42, %v5211_v45 }
 0x103   :  { %778 = vperm.xlu1 %4417, %v652_v26   ;;  %775 = vperm.xlu0 %4416, %v651_v27   ;;  %v217_v26 = vld [vmem:[%s6516_s4 + $0x68] sm:$0xff]  ;;  %v426_v27 = vld [vmem:[%s6517_s0 + $0x30] sm:$0xff] }
 0x104   :  { %4109 = vmatpush3.bf16.msra.mxu1 %v4432_v52  ;;  %v431_v52 = vld [vmem:[%s6517_s0 + $0x58] sm:$0xff] }
 0x105   :  { %4077 = vmatpush3.bf16.msra.mxu0 %v4424_v32  ;;  %4110 = vmatprep.subr.bf16.mxu1 %v4433_v57  ;;  %v429_v32 = vld [vmem:[%s6517_s0 + $0x48] sm:$0xff] }
 0x106   :  { %4078 = vmatprep.subr.bf16.mxu0 %v4425_v40 }
 0x107   :  { %1086 = vperm.xlu1 %4417, %v1007_v30   ;;  %1083 = vperm.xlu0 %4416, %v1006_v31   ;;  %v655_v30 = vadd.s32 8, %v5197_v39  ;;  %v428_v31 = vld [vmem:[%s6517_s0 + $0x40] sm:$0xff] }
 0x108   :  { %4111 = vmatpush3.bf16.msra.mxu1 %v4433_v57  ;;  %v440_v41 = vpack.c.bf16 %v429_v32, %v428_v31  ;;  %v6530_v57 = vmov 0 }
 0x109   :  { %4079 = vmatpush3.bf16.msra.mxu0 %v4425_v40  ;;  %v226_v40 = vpack.c.bf16 %v217_v26, %v216_v25  ;;  %vm675_vm7 = vcmp.eq.s32.totalorder %v655_v30, %v5211_v45 }
 0x10b   :  { %1092 = vperm.xlu1 %4417, %v1009_v34   ;;  %1089 = vperm.xlu0 %4416, %v1008_v38   ;;  %v6526_v34 = vmov 0  ;;  %v439_v38 = vpack.c.bf16 %v427_v28, %v426_v27 }
 0x10c   :  { %4081 = vmatmul.mubr.bf16.vlgmr.msra.gmra.mrb[0].mxu0 %v221_v56  ;;  %4113 = vmatmul.mubr.bf16.vlgmr.msra.gmra.mrb[0].mxu1 %v437_v14  ;;  %v6527_v34 = vsel %vm5364_vm14, 4294967295, %v6526_v34  ;;  %v6528_v56 = vmov 0 }
 0x10d   :  { %4084 = vmatprep.mubr.bf16.mxu0 %v222_v58  ;;  %4116 = vmatprep.mubr.bf16.mxu1 %v438_v16  ;;  %v3446_v58 = vld [vmem:[%s6461_s22] ss:$0 sm:$0xff] }
 0x10e   :  { %vm1026_vm10 = vcmp.eq.s32.totalorder %v5197_v39, %v3446_v58  ;;  %vm1027_vm12 = vcmp.eq.s32.totalorder %v655_v30, %v3446_v58  ;;  %vm1028_vm13 = vcmp.eq.s32.totalorder %v5214_v46, %v3446_v58 }
 0x10f   :  { %1098 = vperm.xlu1 %4417, %v1011_v43   ;;  %1095 = vperm.xlu0 %4416, %v1010_v44   ;;  %v667_v43 = vadd.s32 104, %v5197_v39  ;;  %v668_v44 = vadd.s32 112, %v5197_v39 }
 0x111   :  { %vm687_vm0 = vcmp.eq.s32.totalorder %v667_v43, %v5211_v45  ;;  %vm688_vm3 = vcmp.eq.s32.totalorder %v668_v44, %v5211_v45  ;;  %v441_v45 = vpack.c.bf16 %v431_v52, %v430_v51 }
 0x112   :  { %vm5398_vm1 = vmpackc.low %vm687_vm0, %vm686_vm15  ;;  %vm1029_vm15 = vcmp.eq.s32.totalorder %v5217_v47, %v3446_v58  ;;  %v434_v47 = vld [vmem:[%s6517_s0 + $0x70] sm:$0xff] }
 0x113   :  { %1104 = vperm.xlu1 %4417, %v1013_v54   ;;  %1101 = vperm.xlu0 %4416, %v1012_v55   ;;  %v432_v54 = vld [vmem:[%s6517_s0 + $0x60] sm:$0xff]  ;;  %v433_v55 = vld [vmem:[%s6517_s0 + $0x68] sm:$0xff]  ;;  %v6529_v56 = vsel %vm5398_vm1, 4294967295, %v6528_v56  ;;  %vm5407_vm9 = vmpackc.low %vm689_vm4, %vm688_vm3  ;;  %vm1030_vm4 = vcmp.eq.s32.totalorder %v5246_v59, %v3446_v58 }
 0x114   :  { %4085 = vmatmul.mubr.bf16.gmra.mrb[4].mxu0 %v223_v13  ;;  %4117 = vmatmul.mubr.bf16.gmra.mrb[4].mxu1 %v439_v38  ;;  %v6531_v57 = vsel %vm5407_vm9, 4294967295, %v6530_v57  ;;  %vm5417_vm0 = vmpackc.low %vm675_vm7, %vm674_vm6  ;;  %v442_v1 = vpack.c.bf16 %v433_v55, %v432_v54  ;;  %vm1031_vm9 = vcmp.eq.s32.totalorder %v5249_v60, %v3446_v58  ;;  %vm1032_vm6 = vcmp.eq.s32.totalorder %v5258_v63, %v3446_v58  ;;  %v435_v59 = vld [vmem:[%s6517_s0 + $0x78] sm:$0xff] }
 0x115   :  { %4088 = vmatprep.mubr.bf16.mxu0 %v224_v15  ;;  %4120 = vmatprep.mubr.bf16.mxu1 %v440_v41  ;;  %vm5421_vm3 = vmpackc.low %vm1029_vm15, %vm1028_vm13  ;;  %vm1033_vm7 = vcmp.eq.s32.totalorder %v5261_v0, %v3446_v58  ;;  %v6540_v60 = vmov 0  ;;  %v443_v63 = vpack.c.bf16 %v435_v59, %v434_v47  ;;  %v6542_v0 = vmov 0 }
 0x116   :  { %vm5427_vm1 = vmpackc.low %vm1027_vm12, %vm1026_vm10  ;;  %vm1035_vm12 = vcmp.eq.s32.totalorder %v5313_v18, %v3446_v58  ;;  %vm1036_vm15 = vcmp.eq.s32.totalorder %v5322_v21, %v3446_v58 }
 0x117   :  { %1110 = vperm.xlu1 %4417, %v1015_v61   ;;  %1107 = vperm.xlu0 %4416, %v1014_v62   ;;  %v227_v61 = vpack.c.bf16 %v219_v50, %v218_v49  ;;  %vm5431_vm14 = vmpackc.low %vm1031_vm9, %vm1030_vm4  ;;  %vm1034_vm9 = vcmp.eq.s32.totalorder %v5310_v17, %v3446_v58  ;;  %vm1037_vm4 = vcmp.eq.s32.totalorder %v5325_v22, %v3446_v58 }
 0x118   :  { %vm5443_vm10 = vmpackc.low %vm1033_vm7, %vm1032_vm6  ;;  %vm1039_vm7 = vcmp.eq.s32.totalorder %v667_v43, %v3446_v58 }
 0x119   :  { %v6541_v60 = vsel %vm5443_vm10, 4294967295, %v6540_v60  ;;  %vm5452_vm13 = vmpackc.low %vm1035_vm12, %vm1034_vm9  ;;  %vm1040_vm9 = vcmp.eq.s32.totalorder %v668_v44, %v3446_v58  ;;  %vm1041_vm12 = vcmp.eq.s32.totalorder %v669_v48, %v3446_v58 }
 0x11a   :  { %v6543_v0 = vsel %vm5452_vm13, 4294967295, %v6542_v0  ;;  %vm5458_vm6 = vmpackc.low %vm1037_vm4, %vm1036_vm15 }
 0x11b   :  { %1116 = vperm.xlu1 %4417, %v1017_v11   ;;  %1113 = vperm.xlu0 %4416, %v1016_v12   ;;  %v6545_v4 = vsel %vm5458_vm6, 4294967295, %v6544_v4  ;;  %vm5469_vm13 = vmpackc.low %vm1041_vm12, %vm1040_vm9  ;;  %v5474_v11 = vand.u32 127, %v653_v33 }
 0x11c   :  { %4089 = vmatmul.mubr.bf16.gmra.mrb[8].mxu0 %v225_v37  ;;  %4121 = vmatmul.mubr.bf16.gmra.mrb[8].mxu1 %v441_v45  ;;  %v6549_v6 = vsel %vm5469_vm13, 4294967295, %v6548_v6 }
 0x11d   :  { %4092 = vmatprep.mubr.bf16.mxu0 %v226_v40  ;;  %4124 = vmatprep.mubr.bf16.mxu1 %v442_v1  ;;  %6550 = vst [vmem:[#allocation24_spill] sm:$0xff] %v5474_v11 }
 0x11f   :  { %1122 = vperm.xlu1 %4417, %v1019_v19   ;;  %1119 = vperm.xlu0 %4416, %v1018_v20  }
 0x123   :  { %1128 = vperm.xlu1 %4417, %v1021_v35   ;;  %1125 = vperm.xlu0 %4416, %v1020_v36  }
 0x124   :  { %4093 = vmatmul.mubr.bf16.gmra.mrb[12].mxu0 %v227_v61  ;;  %4125 = vmatmul.mubr.bf16.gmra.mrb[12].mxu1 %v443_v63 }
 0x125   :  { %4144 = vmatprep.mubr.msk.bf16.mxu0 %vm5417_vm0, %v6479_v3  ;;  %4176 = vmatprep.mubr.msk.bf16.mxu1 %vm5427_vm1, %v6479_v3  ;;  %vm1038_vm0 = vcmp.eq.s32.totalorder %v666_v42, %v3446_v58 }
 0x126   :  { %vm5465_vm10 = vmpackc.low %vm1039_vm7, %vm1038_vm0 }
 0x127   :  { %v6547_v5 = vsel %vm5465_vm10, 4294967295, %v6546_v5 }
 0x166   :  { %v740_v8 = vpop.permute.xlu1 %739  ;;  %v734_v9 = vpop.permute.xlu0 %733 }
 0x167   :  { %vm782_vm15 = vcmp.eq.s32.totalorder %v5474_v11, %v740_v8  ;;  %vm780_vm4 = vcmp.eq.s32.totalorder %v5474_v11, %v734_v9 }
 0x16a   :  { %v743_v12 = vpop.permute.xlu1 %742  ;;  %v737_v13 = vpop.permute.xlu0 %736 }
 0x16b   :  { %vm781_vm1 = vcmp.eq.s32.totalorder %v5474_v11, %v737_v13  ;;  %vm783_vm0 = vcmp.eq.s32.totalorder %v5474_v11, %v743_v12 }
 0x16c   :  { %vm3414_vm7 = vmpackc.low %vm781_vm1, %vm780_vm4 }
 0x16d   :  { %4128 = vmatprep.subr.msk.bf16.mxu0 %vm3414_vm7, %v6479_v3  ;;  %vm3416_vm9 = vmpackc.low %vm783_vm0, %vm782_vm15 }
 0x16e   :  { %v749_v14 = vpop.permute.xlu1 %748  ;;  %v746_v15 = vpop.permute.xlu0 %745  ;;  %4129 = vmatpush3.bf16.msk.msra.mxu0 %vm3414_vm7, %v6479_v3 }
 0x16f   :  { %vm785_vm12 = vcmp.eq.s32.totalorder %v5474_v11, %v749_v14  ;;  %vm784_vm13 = vcmp.eq.s32.totalorder %v5474_v11, %v746_v15  ;;  %4130 = vmatprep.subr.msk.bf16.mxu0 %vm3416_vm9, %v6479_v3 }
 0x170   :  { %vm3418_vm10 = vmpackc.low %vm785_vm12, %vm784_vm13 }
 0x172   :  { %v755_v33 = vpop.permute.xlu1 %754  ;;  %v752_v16 = vpop.permute.xlu0 %751  ;;  %4131 = vmatpush3.bf16.msk.msra.mxu0 %vm3416_vm9, %v6479_v3 }
 0x173   :  { %vm787_vm1 = vcmp.eq.s32.totalorder %v5474_v11, %v755_v33  ;;  %vm786_vm4 = vcmp.eq.s32.totalorder %v5474_v11, %v752_v16  ;;  %4132 = vmatprep.subr.msk.bf16.mxu0 %vm3418_vm10, %v6479_v3 }
 0x174   :  { %vm3420_vm15 = vmpackc.low %vm787_vm1, %vm786_vm4 }
 0x176   :  { %v761_v17 = vpop.permute.xlu1 %760  ;;  %v758_v18 = vpop.permute.xlu0 %757  ;;  %4133 = vmatpush3.bf16.msk.msra.mxu0 %vm3418_vm10, %v6479_v3 }
 0x177   :  { %vm789_vm0 = vcmp.eq.s32.totalorder %v5474_v11, %v761_v17  ;;  %vm788_vm7 = vcmp.eq.s32.totalorder %v5474_v11, %v758_v18  ;;  %4134 = vmatprep.subr.msk.bf16.mxu0 %vm3420_vm15, %v6479_v3 }
 0x178   :  { %vm3422_vm13 = vmpackc.low %vm789_vm0, %vm788_vm7 }
 0x17a   :  { %v767_v19 = vpop.permute.xlu1 %766  ;;  %v764_v20 = vpop.permute.xlu0 %763  ;;  %4135 = vmatpush3.bf16.msk.msra.mxu0 %vm3420_vm15, %v6479_v3 }
 0x17b   :  { %vm791_vm9 = vcmp.eq.s32.totalorder %v5474_v11, %v767_v19  ;;  %vm790_vm12 = vcmp.eq.s32.totalorder %v5474_v11, %v764_v20  ;;  %4136 = vmatprep.subr.msk.bf16.mxu0 %vm3422_vm13, %v6479_v3 }
 0x17c   :  { %vm3424_vm10 = vmpackc.low %vm791_vm9, %vm790_vm12 }
 0x17e   :  { %v773_v21 = vpop.permute.xlu1 %772  ;;  %v770_v22 = vpop.permute.xlu0 %769  ;;  %4137 = vmatpush3.bf16.msk.msra.mxu0 %vm3422_vm13, %v6479_v3 }
 0x17f   :  { %vm793_vm1 = vcmp.eq.s32.totalorder %v5474_v11, %v773_v21  ;;  %vm792_vm4 = vcmp.eq.s32.totalorder %v5474_v11, %v770_v22  ;;  %4138 = vmatprep.subr.msk.bf16.mxu0 %vm3424_vm10, %v6479_v3 }
 0x180   :  { %vm3426_vm15 = vmpackc.low %vm793_vm1, %vm792_vm4 }
 0x182   :  { %v779_v23 = vpop.permute.xlu1 %778  ;;  %v776_v24 = vpop.permute.xlu0 %775  ;;  %4139 = vmatpush3.bf16.msk.msra.mxu0 %vm3424_vm10, %v6479_v3 }
 0x183   :  { %vm795_vm0 = vcmp.eq.s32.totalorder %v5474_v11, %v779_v23  ;;  %vm794_vm7 = vcmp.eq.s32.totalorder %v5474_v11, %v776_v24  ;;  %4140 = vmatprep.subr.msk.bf16.mxu0 %vm3426_vm15, %v6479_v3 }
 0x184   :  { %vm3428_vm13 = vmpackc.low %vm795_vm0, %vm794_vm7 }
 0x186   :  { %v1087_v25 = vpop.permute.xlu1 %1086  ;;  %v1084_v26 = vpop.permute.xlu0 %1083  ;;  %4141 = vmatpush3.bf16.msk.msra.mxu0 %vm3426_vm15, %v6479_v3 }
 0x187   :  { %vm1131_vm9 = vcmp.eq.s32.totalorder %v5474_v11, %v1087_v25  ;;  %vm1130_vm12 = vcmp.eq.s32.totalorder %v5474_v11, %v1084_v26  ;;  %4142 = vmatprep.subr.msk.bf16.mxu0 %vm3428_vm13, %v6479_v3 }
 0x188   :  { %vm3479_vm6 = vmpackc.low %vm1131_vm9, %vm1130_vm12 }
 0x189   :  { %4160 = vmatprep.subr.msk.bf16.mxu1 %vm3479_vm6, %v6479_v3 }
 0x18a   :  { %v1093_v27 = vpop.permute.xlu1 %1092  ;;  %v1090_v28 = vpop.permute.xlu0 %1089  ;;  %4161 = vmatpush3.bf16.msk.msra.mxu1 %vm3479_vm6, %v6479_v3  ;;  %4143 = vmatpush3.bf16.msk.msra.mxu0 %vm3428_vm13, %v6479_v3 }
 0x18b   :  { %vm1133_vm10 = vcmp.eq.s32.totalorder %v5474_v11, %v1093_v27  ;;  %vm1132_vm1 = vcmp.eq.s32.totalorder %v5474_v11, %v1090_v28 }
 0x18c   :  { %vm3481_vm4 = vmpackc.low %vm1133_vm10, %vm1132_vm1 }
 0x18d   :  { %4162 = vmatprep.subr.msk.bf16.mxu1 %vm3481_vm4, %v6479_v3  ;;  %4145 = vmatmul.mubr.msk.bf16.vlgmr.msra.gmra.mrb[16].mxu0 %vm5235_vm2, %v6479_v3 }
 0x18e   :  { %v1099_v30 = vpop.permute.xlu1 %1098  ;;  %v1096_v31 = vpop.permute.xlu0 %1095  ;;  %4163 = vmatpush3.bf16.msk.msra.mxu1 %vm3481_vm4, %v6479_v3  ;;  %4148 = vmatprep.mubr.msk.bf16.mxu0 %vm5285_vm5, %v6479_v3  ;;  %vm6551_vm4 = vnez %v6527_v34  ;;  %v5582_v34 = vld [vmem:[#allocation2] ss:$0 sm:$0xff] }
 0x18f   :  { %vm1135_vm15 = vcmp.eq.s32.totalorder %v5474_v11, %v1099_v30  ;;  %vm1134_vm6 = vcmp.eq.s32.totalorder %v5474_v11, %v1096_v31 }
 0x190   :  { %vm3483_vm0 = vmpackc.low %vm1135_vm15, %vm1134_vm6  ;;  %vm6552_vm6 = vnez %v6529_v56 }
 0x191   :  { %4164 = vmatprep.subr.msk.bf16.mxu1 %vm3483_vm0, %v6479_v3 }
 0x192   :  { %v1105_v32 = vpop.permute.xlu1 %1104  ;;  %v1102_v35 = vpop.permute.xlu0 %1101  ;;  %4165 = vmatpush3.bf16.msk.msra.mxu1 %vm3483_vm0, %v6479_v3 }
 0x193   :  { %vm1137_vm2 = vcmp.eq.s32.totalorder %v5474_v11, %v1105_v32  ;;  %vm1136_vm7 = vcmp.eq.s32.totalorder %v5474_v11, %v1102_v35 }
 0x194   :  { %vm3485_vm13 = vmpackc.low %vm1137_vm2, %vm1136_vm7 }
 0x195   :  { %4166 = vmatprep.subr.msk.bf16.mxu1 %vm3485_vm13, %v6479_v3  ;;  %4149 = vmatmul.mubr.msk.bf16.gmra.mrb[20].mxu0 %vm5299_vm8, %v6479_v3 }
 0x196   :  { %v1111_v53 = vpop.permute.xlu1 %1110  ;;  %v1108_v7 = vpop.permute.xlu0 %1107  ;;  %4167 = vmatpush3.bf16.msk.msra.mxu1 %vm3485_vm13, %v6479_v3  ;;  %4152 = vmatprep.mubr.msk.bf16.mxu0 %vm5349_vm11, %v6479_v3 }
 0x197   :  { %vm1139_vm5 = vcmp.eq.s32.totalorder %v5474_v11, %v1111_v53  ;;  %vm1138_vm9 = vcmp.eq.s32.totalorder %v5474_v11, %v1108_v7 }
 0x198   :  { %vm3487_vm12 = vmpackc.low %vm1139_vm5, %vm1138_vm9  ;;  %vm6553_vm5 = vnez %v6531_v57  ;;  %vm6554_vm9 = vnez %v6541_v60  ;;  %v5588_v57 = vld [vmem:[#allocation6] ss:$0 sm:$0xff] }
 0x199   :  { %4168 = vmatprep.subr.msk.bf16.mxu1 %vm3487_vm12, %v6479_v3 }
 0x19a   :  { %v1117_v36 = vpop.permute.xlu1 %1116  ;;  %v1114_v37 = vpop.permute.xlu0 %1113  ;;  %4169 = vmatpush3.bf16.msk.msra.mxu1 %vm3487_vm12, %v6479_v3  ;;  %vm6555_vm12 = vnez %v6543_v0 }
 0x19b   :  { %vm1141_vm8 = vcmp.eq.s32.totalorder %v5474_v11, %v1117_v36  ;;  %vm1140_vm10 = vcmp.eq.s32.totalorder %v5474_v11, %v1114_v37 }
 0x19c   :  { %vm3489_vm1 = vmpackc.low %vm1141_vm8, %vm1140_vm10  ;;  %vm6556_vm8 = vnez %v6545_v4  ;;  %vm6557_vm10 = vnez %v6547_v5 }
 0x19d   :  { %4170 = vmatprep.subr.msk.bf16.mxu1 %vm3489_vm1, %v6479_v3  ;;  %4153 = vmatmul.mubr.msk.bf16.gmra.mrb[24].mxu0 %vm6551_vm4, %v6479_v3 }
 0x19e   :  { %v1123_v10 = vpop.permute.xlu1 %1122  ;;  %v1120_v29 = vpop.permute.xlu0 %1119  ;;  %4171 = vmatpush3.bf16.msk.msra.mxu1 %vm3489_vm1, %v6479_v3  ;;  %4156 = vmatprep.mubr.msk.bf16.mxu0 %vm6552_vm6, %v6479_v3 }
 0x19f   :  { %vm1143_vm11 = vcmp.eq.s32.totalorder %v5474_v11, %v1123_v10  ;;  %vm1142_vm15 = vcmp.eq.s32.totalorder %v5474_v11, %v1120_v29 }
 0x1a0   :  { %vm3491_vm0 = vmpackc.low %vm1143_vm11, %vm1142_vm15 }
 0x1a1   :  { %4172 = vmatprep.subr.msk.bf16.mxu1 %vm3491_vm0, %v6479_v3 }
 0x1a2   :  { %v1129_v38 = vpop.permute.xlu1 %1128  ;;  %v1126_v40 = vpop.permute.xlu0 %1125  ;;  %4173 = vmatpush3.bf16.msk.msra.mxu1 %vm3491_vm0, %v6479_v3 }
 0x1a3   :  { %vm1145_vm2 = vcmp.eq.s32.totalorder %v5474_v11, %v1129_v38  ;;  %vm1144_vm7 = vcmp.eq.s32.totalorder %v5474_v11, %v1126_v40 }
 0x1a4   :  { %vm3493_vm13 = vmpackc.low %vm1145_vm2, %vm1144_vm7 }
 0x1a5   :  { %4174 = vmatprep.subr.msk.bf16.mxu1 %vm3493_vm13, %v6479_v3  ;;  %4157 = vmatmul.mubr.msk.bf16.gmra.mrb[28].mxu0 %vm6553_vm5, %v6479_v3 }
 0x1a6   :  { %4175 = vmatpush3.bf16.msk.msra.mxu1 %vm3493_vm13, %v6479_v3 }
 0x1a9   :  { %4177 = vmatmul.mubr.msk.bf16.vlgmr.msra.gmra.mrb[16].mxu1 %vm5421_vm3, %v6479_v3  ;;  %vm6558_vm3 = vnez %v6549_v6 }
 0x1aa   :  { %4180 = vmatprep.mubr.msk.bf16.mxu1 %vm5431_vm14, %v6479_v3  ;;  %vm4841_vm14 = vmmov 0  }
 0x1b1   :  { %4181 = vmatmul.mubr.msk.bf16.gmra.mrb[20].mxu1 %vm6554_vm9, %v6479_v3 }
 0x1b2   :  { %4184 = vmatprep.mubr.msk.bf16.mxu1 %vm6555_vm12, %v6479_v3 }
 0x1b9   :  { %4185 = vmatmul.mubr.msk.bf16.gmra.mrb[24].mxu1 %vm6556_vm8, %v6479_v3 }
 0x1ba   :  { %4188 = vmatprep.mubr.msk.bf16.mxu1 %vm6557_vm10, %v6479_v3 }
 0x1c1   :  { %4189 = vmatmul.mubr.msk.bf16.gmra.mrb[28].mxu1 %vm6558_vm3, %v6479_v3 }
 0x1df   :  { %v4082_v41 = vpop.f32.mrb[0].mxu0  ;;  %v4114_v45 = vpop.f32.mrb[0].mxu1 }
 0x1e0   :  { %v342_v42 = vadd.f32 %v4082_v41, %v5582_v34  ;;  %v333_v43 = vpop.f32.mrb[1].mxu0  ;;  %v558_v39 = vadd.f32 %v4114_v45, %v5588_v57  ;;  %v549_v46 = vpop.f32.mrb[1].mxu1 }
 0x1e1   :  { %v334_v44 = vadd.f32 %v5582_v34, %v333_v43  ;;  %v4083_v48 = vpop.f32.mrb[2].mxu0  ;;  %v550_v60 = vadd.f32 %v5588_v57, %v549_v46  ;;  %v4115_v63 = vpop.f32.mrb[2].mxu1 }
 0x1e2   :  { %v398_v49 = vmax.f32 %v342_v42, 0.0  ;;  %v345_v50 = vadd.f32 %v4083_v48, %v5582_v34  ;;  %v336_v51 = vpop.f32.mrb[3].mxu0  ;;  %v614_v6 = vmax.f32 %v558_v39, 0.0  ;;  %v561_v8 = vadd.f32 %v4115_v63, %v5588_v57  ;;  %v552_v9 = vpop.f32.mrb[3].mxu1 }
 0x1e3   :  { %v396_v52 = vmax.f32 %v334_v44, 0.0  ;;  %v337_v54 = vadd.f32 %v5582_v34, %v336_v51  ;;  %v612_v14 = vmax.f32 %v550_v60, 0.0  ;;  %v553_v15 = vadd.f32 %v5588_v57, %v552_v9 }
 0x1e4   :  { %v399_v55 = vmax.f32 %v345_v50, 0.0  ;;  %v615_v16 = vmax.f32 %v561_v8, 0.0 }
 0x1e5   :  { %v397_v56 = vmax.f32 %v337_v54, 0.0  ;;  %v613_v18 = vmax.f32 %v553_v15, 0.0 }
 0x1e6   :  { %v5590_v58 = vpack.c.bf16 %v399_v55, %v398_v49  ;;  %v5608_v20 = vpack.c.bf16 %v615_v16, %v614_v6 }
 0x1e7   :  { %v5592_v61 = vpack.c.bf16 %v397_v56, %v396_v52  ;;  %v4086_v62 = vpop.f32.mrb[4].mxu0  ;;  %v5612_v23 = vpack.c.bf16 %v613_v18, %v612_v14  ;;  %v4118_v24 = vpop.f32.mrb[4].mxu1 }
 0x1e8   :  { %v358_v1 = vadd.f32 %v4086_v62, %v5582_v34  ;;  %v349_v2 = vpop.f32.mrb[5].mxu0  ;;  %v574_v27 = vadd.f32 %v4118_v24, %v5588_v57  ;;  %v565_v28 = vpop.f32.mrb[5].mxu1 }
 0x1e9   :  { %v350_v47 = vadd.f32 %v5582_v34, %v349_v2  ;;  %v4087_v59 = vpop.f32.mrb[6].mxu0  ;;  %4192 = vmatprep.subr.bf16.mxu0 %v5592_v61  ;;  %v566_v32 = vadd.f32 %v5588_v57, %v565_v28  ;;  %v4119_v35 = vpop.f32.mrb[6].mxu1  ;;  %1643 = vmatprep.mubr.bf16.mxu1 %v5612_v23 }
 0x1ea   :  { %v402_v0 = vmax.f32 %v358_v1, 0.0  ;;  %v361_v4 = vadd.f32 %v4087_v59, %v5582_v34  ;;  %v352_v5 = vpop.f32.mrb[7].mxu0  ;;  %4193 = vmatpush3.bf16.msra.mxu0 %v5592_v61  ;;  %v618_v37 = vmax.f32 %v574_v27, 0.0  ;;  %v577_v10 = vadd.f32 %v4119_v35, %v5588_v57  ;;  %v568_v29 = vpop.f32.mrb[7].mxu1 }
 0x1eb   :  { %v400_v12 = vmax.f32 %v350_v47, 0.0  ;;  %v353_v13 = vadd.f32 %v5582_v34, %v352_v5  ;;  %4194 = vmatprep.subr.bf16.mxu0 %v5590_v58  ;;  %v616_v41 = vmax.f32 %v566_v32, 0.0  ;;  %v569_v42 = vadd.f32 %v5588_v57, %v568_v29 }
 0x1ec   :  { %v403_v33 = vmax.f32 %v361_v4, 0.0  ;;  %v619_v44 = vmax.f32 %v577_v10, 0.0 }
 0x1ed   :  { %v401_v17 = vmax.f32 %v353_v13, 0.0  ;;  %v617_v49 = vmax.f32 %v569_v42, 0.0 }
 0x1ee   :  { %v5605_v19 = vpack.c.bf16 %v403_v33, %v402_v0  ;;  %4195 = vmatpush3.bf16.msra.mxu0 %v5590_v58  ;;  %v5629_v51 = vpack.c.bf16 %v619_v44, %v618_v37 }
 0x1ef   :  { %v5610_v21 = vpack.c.bf16 %v401_v17, %v400_v12  ;;  %v4090_v22 = vpop.f32.mrb[8].mxu0  ;;  %v5633_v55 = vpack.c.bf16 %v617_v49, %v616_v41  ;;  %v4122_v56 = vpop.f32.mrb[8].mxu1 }
 0x1f0   :  { %v374_v25 = vadd.f32 %v4090_v22, %v5582_v34  ;;  %v365_v26 = vpop.f32.mrb[9].mxu0  ;;  %v590_v1 = vadd.f32 %v4122_v56, %v5588_v57  ;;  %v581_v2 = vpop.f32.mrb[9].mxu1 }
 0x1f1   :  { %v366_v30 = vadd.f32 %v5582_v34, %v365_v26  ;;  %v4091_v31 = vpop.f32.mrb[10].mxu0  ;;  %4196 = vmatprep.subr.bf16.mxu0 %v5610_v21  ;;  %v582_v47 = vadd.f32 %v5588_v57, %v581_v2  ;;  %v4123_v59 = vpop.f32.mrb[10].mxu1 }
 0x1f2   :  { %v406_v53 = vmax.f32 %v374_v25, 0.0  ;;  %v377_v7 = vadd.f32 %v4091_v31, %v5582_v34  ;;  %v368_v36 = vpop.f32.mrb[11].mxu0  ;;  %4197 = vmatpush3.bf16.msra.mxu0 %v5610_v21  ;;  %v622_v4 = vmax.f32 %v590_v1, 0.0  ;;  %v593_v5 = vadd.f32 %v4123_v59, %v5588_v57  ;;  %v584_v6 = vpop.f32.mrb[11].mxu1 }
 0x1f3   :  { %v404_v38 = vmax.f32 %v366_v30, 0.0  ;;  %v369_v40 = vadd.f32 %v5582_v34, %v368_v36  ;;  %4198 = vmatprep.subr.bf16.mxu0 %v5605_v19  ;;  %v620_v12 = vmax.f32 %v582_v47, 0.0  ;;  %v585_v13 = vadd.f32 %v5588_v57, %v584_v6 }
 0x1f4   :  { %v407_v43 = vmax.f32 %v377_v7, 0.0  ;;  %v623_v15 = vmax.f32 %v593_v5, 0.0 }
 0x1f5   :  { %v405_v48 = vmax.f32 %v369_v40, 0.0  ;;  %v621_v16 = vmax.f32 %v585_v13, 0.0 }
 0x1f6   :  { %v5626_v50 = vpack.c.bf16 %v407_v43, %v406_v53  ;;  %4199 = vmatpush3.bf16.msra.mxu0 %v5605_v19  ;;  %v5649_v18 = vpack.c.bf16 %v623_v15, %v622_v4 }
 0x1f7   :  { %v5631_v52 = vpack.c.bf16 %v405_v48, %v404_v38  ;;  %v4094_v54 = vpop.f32.mrb[12].mxu0  ;;  %v5653_v24 = vpack.c.bf16 %v621_v16, %v620_v12 }
 0x1f8   :  { %v390_v62 = vadd.f32 %v4094_v54, %v5582_v34  ;;  %v381_v45 = vpop.f32.mrb[13].mxu0 }
 0x1f9   :  { %v382_v39 = vadd.f32 %v5582_v34, %v381_v45  ;;  %v4095_v46 = vpop.f32.mrb[14].mxu0  ;;  %4200 = vmatprep.subr.bf16.mxu0 %v5631_v52 }
 0x1fa   :  { %v410_v60 = vmax.f32 %v390_v62, 0.0  ;;  %v393_v63 = vadd.f32 %v4095_v46, %v5582_v34  ;;  %v384_v0 = vpop.f32.mrb[15].mxu0  ;;  %4201 = vmatpush3.bf16.msra.mxu0 %v5631_v52 }
 0x1fb   :  { %v408_v8 = vmax.f32 %v382_v39, 0.0  ;;  %v385_v9 = vadd.f32 %v5582_v34, %v384_v0  ;;  %4202 = vmatprep.subr.bf16.mxu0 %v5626_v50  ;;  %v4126_v34 = vpop.f32.mrb[12].mxu1 }
 0x1fc   :  { %v411_v14 = vmax.f32 %v393_v63, 0.0  ;;  %v606_v25 = vadd.f32 %v4126_v34, %v5588_v57  ;;  %v597_v26 = vpop.f32.mrb[13].mxu1 }
 0x1fd   :  { %v409_v33 = vmax.f32 %v385_v9, 0.0  ;;  %v598_v27 = vadd.f32 %v5588_v57, %v597_v26  ;;  %v4127_v28 = vpop.f32.mrb[14].mxu1 }
 0x1fe   :  { %v5646_v17 = vpack.c.bf16 %v411_v14, %v410_v60  ;;  %4203 = vmatpush3.bf16.msra.mxu0 %v5626_v50  ;;  %v626_v30 = vmax.f32 %v606_v25, 0.0  ;;  %v609_v31 = vadd.f32 %v4127_v28, %v5588_v57  ;;  %v600_v32 = vpop.f32.mrb[15].mxu1 }
 0x1ff   :  { %v5651_v22 = vpack.c.bf16 %v409_v33, %v408_v8  ;;  %v624_v35 = vmax.f32 %v598_v27, 0.0  ;;  %v601_v53 = vadd.f32 %v5588_v57, %v600_v32 }
 0x200   :  { %v627_v7 = vmax.f32 %v609_v31, 0.0 }
 0x201   :  { %4204 = vmatprep.subr.bf16.mxu0 %v5651_v22  ;;  %v625_v36 = vmax.f32 %v601_v53, 0.0 }
 0x202   :  { %4205 = vmatpush3.bf16.msra.mxu0 %v5651_v22  ;;  %v5663_v37 = vpack.c.bf16 %v627_v7, %v626_v30 }
 0x203   :  { %4206 = vmatprep.subr.bf16.mxu0 %v5646_v17  ;;  %v5666_v10 = vpack.c.bf16 %v625_v36, %v624_v35 }
 0x206   :  { %4207 = vmatpush3.bf16.msra.mxu0 %v5646_v17 }
 0x207   :  { %4224 = vmatprep.subr.bf16.mxu0 %v5612_v23 }
 0x260   :  { %v4146_v29 = vpop.f32.mrb[16].mxu0 }
 0x261   :  { %v870_v38 = vpop.f32.mrb[17].mxu0 }
 0x262   :  { %933 = vadd.xlane.f32.xlu0 %v870_v38  ;;  %v4147_v40 = vpop.f32.mrb[18].mxu0 }
 0x263   :  { %v5668_v41 = vpack.c.bf16 %v4147_v40, %v4146_v29  ;;  %v873_v42 = vpop.f32.mrb[19].mxu0 }
 0x264   :  { %v5670_v43 = vpack.c.bf16 %v873_v42, %v870_v38  ;;  %935 = vadd.xlane.f32.xlu1 %v873_v42  ;;  %v4434_v38 = vld [vmem:[%s6559_s2 + $0x40] sm:$0xff]   ;;  %v4436_v42 = vld [vmem:[%s6559_s2 + $0x48] sm:$0xff]  }
 0x265   :  { %3702 = vmatprep.subr.bf16.mxu1 %v4434_v38  ;;  %v4462_v38 = vld [vmem:[%s6560_s3 + $0x70] sm:$0xff]  }
 0x266   :  { %937 = vadd.xlane.f32.xlu0 %v4146_v29  ;;  %4208 = vmatprep.mubr.bf16.mxu0 %v5670_v43 }
 0x267   :  { %4209 = vmatmul.mubr.bf16.vlgmr.msra.gmra.mrb[32].mxu0 %v5668_v41 }
 0x268   :  { %4225 = vmatpush3.bf16.msra.mxu0 %v5612_v23  ;;  %v4150_v57 = vpop.f32.mrb[20].mxu0 }
 0x269   :  { %4226 = vmatprep.subr.bf16.mxu0 %v5608_v20  ;;  %v886_v44 = vpop.f32.mrb[21].mxu0 }
 0x26a   :  { %939 = vadd.xlane.f32.xlu0 %v4147_v40  ;;  %941 = vadd.xlane.f32.xlu1 %v886_v44  ;;  %v4151_v48 = vpop.f32.mrb[22].mxu0  ;;  %v4435_v40 = vld [vmem:[%s6559_s2] sm:$0xff]  }
 0x26b   :  { %v5676_v49 = vpack.c.bf16 %v4151_v48, %v4150_v57  ;;  %v889_v54 = vpop.f32.mrb[23].mxu0  ;;  %3703 = vmatpush3.bf16.msra.mxu1 %v4435_v40  ;;  %v4463_v40 = vld [vmem:[%s6560_s3 + $0x30] sm:$0xff]  }
 0x26c   :  { %v5678_v56 = vpack.c.bf16 %v889_v54, %v886_v44  ;;  %4227 = vmatpush3.bf16.msra.mxu0 %v5608_v20  ;;  %3704 = vmatprep.subr.bf16.mxu1 %v4436_v42  ;;  %v4439_v44 = vld [vmem:[%s6559_s2 + $0x10] sm:$0xff]   ;;  %v4464_v42 = vld [vmem:[%s6560_s3 + $0x78] sm:$0xff]  }
 0x26d   :  { %4228 = vmatprep.subr.bf16.mxu0 %v5633_v55 }
 0x26e   :  { %945 = vadd.xlane.f32.xlu1 %v4150_v57  ;;  %943 = vadd.xlane.f32.xlu0 %v889_v54  ;;  %v4438_v57 = vld [vmem:[%s6559_s2 + $0x50] sm:$0xff]   ;;  %v4441_v54 = vld [vmem:[%s6559_s2 + $0x18] sm:$0xff]  }
 0x26f   :  { %4212 = vmatprep.mubr.bf16.mxu0 %v5678_v56 }
 0x270   :  { %4213 = vmatmul.mubr.bf16.gmra.mrb[36].mxu0 %v5676_v49  ;;  %v4154_v23 = vpop.f32.mrb[24].mxu0 }
 0x271   :  { %4229 = vmatpush3.bf16.msra.mxu0 %v5633_v55  ;;  %v902_v62 = vpop.f32.mrb[25].mxu0 }
 0x272   :  { %4230 = vmatprep.subr.bf16.mxu0 %v5629_v51  ;;  %947 = vadd.xlane.f32.xlu0 %v4151_v48  ;;  %v4155_v45 = vpop.f32.mrb[26].mxu0  ;;  %v4440_v48 = vld [vmem:[%s6559_s2 + $0x58] sm:$0xff]  }
 0x273   :  { %v5686_v1 = vpack.c.bf16 %v4155_v45, %v4154_v23  ;;  %v905_v2 = vpop.f32.mrb[27].mxu0 }
 0x274   :  { %v5688_v39 = vpack.c.bf16 %v905_v2, %v902_v62 }
 0x275   :  { %4231 = vmatpush3.bf16.msra.mxu0 %v5629_v51 }
 0x276   :  { %4232 = vmatprep.subr.bf16.mxu0 %v5653_v24  ;;  %4216 = vmatprep.mubr.bf16.mxu0 %v5688_v39 }
 0x278   :  { %4217 = vmatmul.mubr.bf16.gmra.mrb[40].mxu0 %v5686_v1  ;;  %v4158_v46 = vpop.f32.mrb[28].mxu0 }
 0x279   :  { %4233 = vmatpush3.bf16.msra.mxu0 %v5653_v24  ;;  %v918_v47 = vpop.f32.mrb[29].mxu0 }
 0x27a   :  { %4234 = vmatprep.subr.bf16.mxu0 %v5649_v18  ;;  %v4159_v59 = vpop.f32.mrb[30].mxu0 }
 0x27b   :  { %v5696_v60 = vpack.c.bf16 %v4159_v59, %v4158_v46  ;;  %v921_v63 = vpop.f32.mrb[31].mxu0 }
 0x27c   :  { %v4178_v0 = vpop.f32.mrb[16].mxu1  ;;  %v5698_v4 = vpack.c.bf16 %v921_v63, %v918_v47 }
 0x27d   :  { %v1220_v5 = vpop.f32.mrb[17].mxu1  ;;  %4235 = vmatpush3.bf16.msra.mxu0 %v5649_v18 }
 0x27e   :  { %v4179_v6 = vpop.f32.mrb[18].mxu1  ;;  %1283 = vadd.xlane.f32.xlu1 %v1220_v5  ;;  %4236 = vmatprep.subr.bf16.mxu0 %v5666_v10 }
 0x27f   :  { %v5702_v8 = vpack.c.bf16 %v4179_v6, %v4178_v0  ;;  %4220 = vmatprep.mubr.bf16.mxu0 %v5698_v4  ;;  %v1223_v9 = vpop.f32.mrb[19].mxu1 }
 0x280   :  { %v5705_v12 = vpack.c.bf16 %v1223_v9, %v1220_v5  ;;  %1285 = vadd.xlane.f32.xlu0 %v1223_v9  ;;  %4221 = vmatmul.mubr.bf16.gmra.mrb[44].mxu0 %v5696_v60  ;;  %v4448_v5 = vld [vmem:[%s6559_s2 + $0x78] sm:$0xff]  }
 0x281   :  { %4237 = vmatpush3.bf16.msra.mxu0 %v5666_v10  ;;  %v4449_v9 = vld [vmem:[%s6559_s2 + $0x38] sm:$0xff]  }
 0x282   :  { %949 = vadd.xlane.f32.xlu1 %v902_v62  ;;  %4238 = vmatprep.subr.bf16.mxu0 %v5663_v37  ;;  %v4443_v62 = vld [vmem:[%s6559_s2 + $0x20] sm:$0xff]  }
 0x283   :  { %4240 = vmatprep.mubr.bf16.mxu0 %v5705_v12 }
 0x284   :  { %951 = vadd.xlane.f32.xlu0 %v905_v2  ;;  %v4182_v13 = vpop.f32.mrb[20].mxu1  ;;  %v4445_v2 = vld [vmem:[%s6559_s2 + $0x28] sm:$0xff]  }
 0x285   :  { %v1236_v14 = vpop.f32.mrb[21].mxu1  ;;  %4239 = vmatpush3.bf16.msra.mxu0 %v5663_v37 }
 0x286   :  { %953 = vadd.xlane.f32.xlu1 %v4154_v23  ;;  %v4183_v15 = vpop.f32.mrb[22].mxu1  ;;  %v4442_v23 = vld [vmem:[%s6559_s2 + $0x60] sm:$0xff]  }
 0x287   :  { %v5712_v33 = vpack.c.bf16 %v4183_v15, %v4182_v13  ;;  %v1239_v16 = vpop.f32.mrb[23].mxu1 }
 0x288   :  { %955 = vadd.xlane.f32.xlu0 %v4155_v45  ;;  %v5714_v34 = vpack.c.bf16 %v1239_v16, %v1236_v14  ;;  %4241 = vmatmul.mubr.bf16.vlgmr.msra.gmra.mrb[48].mxu0 %v5702_v8  ;;  %v4444_v45 = vld [vmem:[%s6559_s2 + $0x68] sm:$0xff]  }
 0x28a   :  { %1287 = vadd.xlane.f32.xlu1 %v4178_v0  ;;  %4244 = vmatprep.mubr.bf16.mxu0 %v5714_v34  ;;  %v2832_v0 = vld [vmem:[%s6463_s24 + $0x8] sm:$0xff] }
 0x28c   :  { %1289 = vadd.xlane.f32.xlu0 %v4179_v6  ;;  %v4186_v25 = vpop.f32.mrb[24].mxu1  ;;  %v2847_v6 = vld [vmem:[%s6464_s25 + $0x8] sm:$0xff] }
 0x28d   :  { %v1252_v26 = vpop.f32.mrb[25].mxu1 }
 0x28e   :  { %1291 = vadd.xlane.f32.xlu1 %v1236_v14  ;;  %v4187_v27 = vpop.f32.mrb[26].mxu1  ;;  %v4451_v14 = vld [vmem:[%s6560_s3] sm:$0xff]  }
 0x28f   :  { %v5718_v28 = vpack.c.bf16 %v4187_v27, %v4186_v25  ;;  %v1255_v30 = vpop.f32.mrb[27].mxu1 }
 0x290   :  { %1293 = vadd.xlane.f32.xlu0 %v1239_v16  ;;  %v5720_v31 = vpack.c.bf16 %v1255_v30, %v1252_v26  ;;  %4245 = vmatmul.mubr.bf16.gmra.mrb[52].mxu0 %v5712_v33  ;;  %v4453_v16 = vld [vmem:[%s6560_s3 + $0x8] sm:$0xff]  }
 0x292   :  { %957 = vadd.xlane.f32.xlu1 %v918_v47  ;;  %4248 = vmatprep.mubr.bf16.mxu0 %v5720_v31  ;;  %v4446_v47 = vld [vmem:[%s6559_s2 + $0x70] sm:$0xff]  }
 0x294   :  { %959 = vadd.xlane.f32.xlu0 %v921_v63  ;;  %v4190_v32 = vpop.f32.mrb[28].mxu1  ;;  %v4447_v63 = vld [vmem:[%s6559_s2 + $0x30] sm:$0xff]  }
 0x295   :  { %v1268_v35 = vpop.f32.mrb[29].mxu1 }
 0x296   :  { %961 = vadd.xlane.f32.xlu1 %v4158_v46  ;;  %v4191_v53 = vpop.f32.mrb[30].mxu1  ;;  %v2831_v46 = vld [vmem:[%s6463_s24] sm:$0xff] }
 0x297   :  { %v5724_v7 = vpack.c.bf16 %v4191_v53, %v4190_v32  ;;  %v1271_v36 = vpop.f32.mrb[31].mxu1 }
 0x298   :  { %963 = vadd.xlane.f32.xlu0 %v4159_v59  ;;  %v5726_v29 = vpack.c.bf16 %v1271_v36, %v1268_v35  ;;  %4249 = vmatmul.mubr.bf16.gmra.mrb[56].mxu0 %v5718_v28  ;;  %v2846_v59 = vld [vmem:[%s6464_s25] sm:$0xff] }
 0x29a   :  { %1295 = vadd.xlane.f32.xlu1 %v4182_v13  ;;  %4252 = vmatprep.mubr.bf16.mxu0 %v5726_v29  ;;  %v4450_v13 = vld [vmem:[%s6560_s3 + $0x40] sm:$0xff]  }
 0x29b   :  { %3782 = vmatprep.subr.bf16.mxu0 %v4450_v13 }
 0x29c   :  { %1297 = vadd.xlane.f32.xlu0 %v4183_v15  ;;  %3783 = vmatpush3.bf16.msra.mxu0 %v4451_v14  ;;  %v4452_v15 = vld [vmem:[%s6560_s3 + $0x48] sm:$0xff]  }
 0x29d   :  { %3784 = vmatprep.subr.bf16.mxu0 %v4452_v15 }
 0x29e   :  { %1299 = vadd.xlane.f32.xlu1 %v1252_v26  ;;  %v4455_v26 = vld [vmem:[%s6560_s3 + $0x10] sm:$0xff]  }
 0x2a0   :  { %1301 = vadd.xlane.f32.xlu0 %v1255_v30  ;;  %4253 = vmatmul.mubr.bf16.gmra.mrb[60].mxu0 %v5724_v7  ;;  %v4457_v30 = vld [vmem:[%s6560_s3 + $0x18] sm:$0xff]  }
 0x2a1   :  { %2020 = vmatprep.mubr.bf16.mxu0 %v5592_v61  ;;  %v4437_v61 = vld [vmem:[%s6559_s2 + $0x8] sm:$0xff]   ;;  %3785 = vmatpush3.bf16.msra.mxu0 %v4453_v16 }
 0x2a2   :  { %1303 = vadd.xlane.f32.xlu1 %v4186_v25  ;;  %3705 = vmatpush3.bf16.msra.mxu1 %v4437_v61  ;;  %v4454_v25 = vld [vmem:[%s6560_s3 + $0x50] sm:$0xff]   ;;  %v4465_v61 = vld [vmem:[%s6560_s3 + $0x38] sm:$0xff]  }
 0x2a3   :  { %3706 = vmatprep.subr.bf16.mxu1 %v4438_v57  ;;  %3786 = vmatprep.subr.bf16.mxu0 %v4454_v25 }
 0x2a4   :  { %1305 = vadd.xlane.f32.xlu0 %v4187_v27  ;;  %v4456_v27 = vld [vmem:[%s6560_s3 + $0x58] sm:$0xff]  }
 0x2a5   :  { %3787 = vmatpush3.bf16.msra.mxu0 %v4455_v26 }
 0x2a6   :  { %1307 = vadd.xlane.f32.xlu1 %v1268_v35  ;;  %3707 = vmatpush3.bf16.msra.mxu1 %v4439_v44  ;;  %v4459_v35 = vld [vmem:[%s6560_s3 + $0x20] sm:$0xff]  }
 0x2a7   :  { %3708 = vmatprep.subr.bf16.mxu1 %v4440_v48  ;;  %3788 = vmatprep.subr.bf16.mxu0 %v4456_v27 }
 0x2a8   :  { %1309 = vadd.xlane.f32.xlu0 %v1271_v36  ;;  %v4461_v36 = vld [vmem:[%s6560_s3 + $0x28] sm:$0xff]  }
 0x2a9   :  { %3789 = vmatpush3.bf16.msra.mxu0 %v4457_v30 }
 0x2aa   :  { %1311 = vadd.xlane.f32.xlu1 %v4190_v32  ;;  %3709 = vmatpush3.bf16.msra.mxu1 %v4441_v54  ;;  %v4458_v32 = vld [vmem:[%s6560_s3 + $0x60] sm:$0xff]  }
 0x2ab   :  { %3710 = vmatprep.subr.bf16.mxu1 %v4442_v23  ;;  %3790 = vmatprep.subr.bf16.mxu0 %v4458_v32 }
 0x2ac   :  { %1313 = vadd.xlane.f32.xlu0 %v4191_v53  ;;  %v4460_v53 = vld [vmem:[%s6560_s3 + $0x68] sm:$0xff]  }
 0x2ad   :  { %3791 = vmatpush3.bf16.msra.mxu0 %v4459_v35 }
 0x2ae   :  { %3711 = vmatpush3.bf16.msra.mxu1 %v4443_v62  ;;  %3792 = vmatprep.subr.bf16.mxu0 %v4460_v53 }
 0x2af   :  { %3712 = vmatprep.subr.bf16.mxu1 %v4444_v45 }
 0x2b1   :  { %3793 = vmatpush3.bf16.msra.mxu0 %v4461_v36 }
 0x2b2   :  { %3713 = vmatpush3.bf16.msra.mxu1 %v4445_v2  ;;  %3794 = vmatprep.subr.bf16.mxu0 %v4462_v38 }
 0x2b3   :  { %3714 = vmatprep.subr.bf16.mxu1 %v4446_v47 }
 0x2b5   :  { %3795 = vmatpush3.bf16.msra.mxu0 %v4463_v40 }
 0x2b6   :  { %3715 = vmatpush3.bf16.msra.mxu1 %v4447_v63  ;;  %3796 = vmatprep.subr.bf16.mxu0 %v4464_v42 }
 0x2b7   :  { %3716 = vmatprep.subr.bf16.mxu1 %v4448_v5 }
 0x2b9   :  { %3797 = vmatpush3.bf16.msra.mxu0 %v4465_v61 }
 0x2ba   :  { %3717 = vmatpush3.bf16.msra.mxu1 %v4449_v9 }
 0x2bb   :  { %2834 = vperm.xlu1 %4417, %v2831_v46  }
 0x2bf   :  { %2849 = vperm.xlu1 %4417, %v2846_v59  }
 0x2c2   :  { %2837 = vperm.xlu0 %4416, %v2832_v0  }
 0x2c3   :  { %2852 = vperm.xlu1 %4417, %v2847_v6  }
 0x2ef   :  { %v934_v57 = vpop.xlane.xlu0 %933 }
 0x2f0   :  { %v965_v5 = vmax.f32 %v934_v57, 1.0 }
 0x2f1   :  { %v936_v54 = vpop.xlane.xlu1 %935 }
 0x2f2   :  { %v966_v14 = vmax.f32 %v936_v54, 1.0  ;;  %4530 = vrcp.f32 %v965_v5 }
 0x2f3   :  { %v938_v44 = vpop.xlane.xlu0 %937 }
 0x2f4   :  { %v967_v9 = vmax.f32 %v938_v44, 1.0 }
 0x2f6   :  { %4532 = vrcp.f32 %v967_v9 }
 0x2f7   :  { %v940_v48 = vpop.xlane.xlu0 %939  ;;  %v942_v23 = vpop.xlane.xlu1 %941 }
 0x2f8   :  { %v968_v13 = vmax.f32 %v940_v48, 1.0  ;;  %v969_v25 = vmax.f32 %v942_v23, 1.0 }
 0x2fa   :  { %4534 = vrcp.f32 %v968_v13 }
 0x2fb   :  { %v944_v62 = vpop.xlane.xlu0 %943  ;;  %v946_v45 = vpop.xlane.xlu1 %945  ;;  %4536 = vrcp.f32 %v966_v14 }
 0x2fc   :  { %v971_v26 = vmax.f32 %v946_v45, 1.0  ;;  %v970_v32 = vmax.f32 %v944_v62, 1.0  ;;  %4538 = vrcp.f32 %v969_v25  ;;  %v5852_v53 = vpop.eup %4530 }
 0x2fe   :  { %4540 = vrcp.f32 %v971_v26 }
 0x2ff   :  { %v948_v2 = vpop.xlane.xlu0 %947 }
 0x300   :  { %v972_v27 = vmax.f32 %v948_v2, 1.0  ;;  %v5854_v38 = vpop.eup %4532 }
 0x302   :  { %4542 = vrcp.f32 %v972_v27 }
 0x303   :  { %4544 = vrcp.f32 %v970_v32 }
 0x304   :  { %v5856_v42 = vpop.eup %4534 }
 0x305   :  { %v5858_v57 = vpop.eup %4536 }
 0x30b   :  { %v5840_v46 = vpop.xlane.xlu1 %1283 }
 0x30d   :  { %v5842_v47 = vpop.xlane.xlu0 %1285 }
 0x30f   :  { %v950_v59 = vpop.xlane.xlu1 %949 }
 0x310   :  { %v973_v44 = vmax.f32 %v950_v59, 1.0  ;;  %v5864_v59 = vpop.eup %4538 }
 0x311   :  { %v952_v63 = vpop.xlane.xlu0 %951 }
 0x312   :  { %v974_v25 = vmax.f32 %v952_v63, 1.0  ;;  %4546 = vrcp.f32 %v973_v44 }
 0x313   :  { %v954_v0 = vpop.xlane.xlu1 %953 }
 0x314   :  { %v975_v45 = vmax.f32 %v954_v0, 1.0  ;;  %v5867_v0 = vpop.eup %4540 }
 0x315   :  { %v956_v6 = vpop.xlane.xlu0 %955 }
 0x316   :  { %v976_v13 = vmax.f32 %v956_v6, 1.0  ;;  %4548 = vrcp.f32 %v975_v45 }
 0x317   :  { %v5844_v15 = vpop.xlane.xlu1 %1287 }
 0x318   :  { %4550 = vrcp.f32 %v976_v13 }
 0x319   :  { %v5846_v16 = vpop.xlane.xlu0 %1289  ;;  %4552 = vrcp.f32 %v974_v25 }
 0x31b   :  { %v5848_v30 = vpop.xlane.xlu1 %1291 }
 0x31d   :  { %v5850_v35 = vpop.xlane.xlu0 %1293 }
 0x31f   :  { %v958_v48 = vpop.xlane.xlu1 %957 }
 0x320   :  { %v977_v6 = vmax.f32 %v958_v48, 1.0 }
 0x321   :  { %v960_v2 = vpop.xlane.xlu0 %959 }
 0x322   :  { %v978_v13 = vmax.f32 %v960_v2, 1.0  ;;  %4554 = vrcp.f32 %v977_v6  ;;  %v1315_v2 = vmax.f32 %v5840_v46, 1.0 }
 0x323   :  { %v962_v27 = vpop.xlane.xlu1 %961 }
 0x324   :  { %v979_v44 = vmax.f32 %v962_v27, 1.0 }
 0x326   :  { %4556 = vrcp.f32 %v979_v44 }
 0x33a   :  { %v4210_v36 = vpop.f32.mrb[32].mxu0 }
 0x33b   :  { %v1422_v40 = vpop.f32.mrb[33].mxu0  ;;  %v1487_v54 = vmul.f32 %v5854_v38, %v4210_v36  ;;  %v964_v36 = vpop.xlane.xlu0 %963 }
 0x33c   :  { %v4211_v61 = vpop.f32.mrb[34].mxu0  ;;  %v1485_v5 = vmul.f32 %v5852_v53, %v1422_v40 }
 0x33d   :  { %v1488_v23 = vmul.f32 %v5856_v42, %v4211_v61  ;;  %v1425_v62 = vpop.f32.mrb[35].mxu0  ;;  %v5869_v61 = vpop.eup %4542 }
 0x33e   :  { %v1486_v9 = vmul.f32 %v5858_v57, %v1425_v62 }
 0x33f   :  { %v1502_v14 = vpack.c.bf16 %v1488_v23, %v1487_v54  ;;  %v5871_v54 = vpop.eup %4544  ;;  %v1298_v44 = vpop.xlane.xlu0 %1297 }
 0x340   :  { %v1501_v26 = vpack.c.bf16 %v1486_v9, %v1485_v5  ;;  %6561 = vst [vmem:[#allocation25_spill] sm:$0xff] %v5871_v54 }
 0x342   :  { %1644 = vmatmul.mubr.bf16.vlgmr.msra.gmra.mrb[32].mxu1 %v1501_v26  ;;  %v5883_v26 = vpop.eup %4546 }
 0x343   :  { %v4214_v32 = vpop.f32.mrb[36].mxu0  ;;  %1651 = vmatprep.mubr.bf16.mxu1 %v5608_v20  ;;  %v980_v20 = vmax.f32 %v964_v36, 1.0  ;;  %6562 = vst [vmem:[#allocation26_spill] sm:$0xff] %v5883_v26 }
 0x344   :  { %v1438_v40 = vpop.f32.mrb[37].mxu0  ;;  %v5874_v23 = vmul.f32 %v5867_v0, %v4214_v32  ;;  %v5886_v32 = vpop.eup %4548 }
 0x345   :  { %v4215_v63 = vpop.f32.mrb[38].mxu0  ;;  %v1489_v5 = vmul.f32 %v5864_v59, %v1438_v40  ;;  %4558 = vrcp.f32 %v980_v20  ;;  %6563 = vst [vmem:[#allocation27_spill] sm:$0xff] %v5886_v32  ;;  %v5888_v40 = vpop.eup %4550  ;;  %v1318_v20 = vmax.f32 %v5846_v16, 1.0 }
 0x346   :  { %v5877_v62 = vmul.f32 %v5869_v61, %v4215_v63  ;;  %v1441_v45 = vpop.f32.mrb[39].mxu0  ;;  %4560 = vrcp.f32 %v978_v13  ;;  %6564 = vst [vmem:[#allocation28_spill] sm:$0xff] %v5888_v40  ;;  %v1296_v63 = vpop.xlane.xlu1 %1295  ;;  %v1319_v13 = vmax.f32 %v5848_v30, 1.0  ;;  %v1320_v30 = vmax.f32 %v5850_v35, 1.0 }
 0x347   :  { %v1490_v9 = vmul.f32 %v5871_v54, %v1441_v45  ;;  %v5891_v6 = vpop.eup %4552  ;;  %4562 = vrcp.f32 %v1315_v2 }
 0x348   :  { %v1504_v48 = vpack.c.bf16 %v5877_v62, %v5874_v23  ;;  %6565 = vst [vmem:[#allocation29_spill] sm:$0xff] %v5891_v6 }
 0x349   :  { %v1503_v25 = vpack.c.bf16 %v1490_v9, %v1489_v5  ;;  %v1316_v9 = vmax.f32 %v5842_v47, 1.0 }
 0x34a   :  { %1652 = vmatmul.mubr.bf16.gmra.mrb[36].mxu1 %v1502_v14  ;;  %v1317_v14 = vmax.f32 %v5844_v15, 1.0 }
 0x34b   :  { %v4218_v27 = vpop.f32.mrb[40].mxu0  ;;  %1659 = vmatprep.mubr.bf16.mxu1 %v5633_v55 }
 0x34c   :  { %v1454_v36 = vpop.f32.mrb[41].mxu0  ;;  %v5895_v62 = vmul.f32 %v5886_v32, %v4218_v27  ;;  %4564 = vrcp.f32 %v1317_v14  ;;  %v5906_v27 = vpop.eup %4554 }
 0x34d   :  { %v4219_v23 = vpop.f32.mrb[42].mxu0  ;;  %v1493_v5 = vmul.f32 %v5883_v26, %v1454_v36  ;;  %6566 = vst [vmem:[#allocation30_spill] sm:$0xff] %v5906_v27  ;;  %4566 = vrcp.f32 %v1318_v20  ;;  %v5909_v16 = vpop.eup %4556 }
 0x34e   :  { %v5898_v55 = vmul.f32 %v5888_v40, %v4219_v23  ;;  %v1457_v45 = vpop.f32.mrb[43].mxu0  ;;  %v1300_v23 = vpop.xlane.xlu1 %1299  ;;  %6567 = vst [vmem:[#allocation31_spill] sm:$0xff] %v5909_v16  ;;  %4568 = vrcp.f32 %v1316_v9 }
 0x34f   :  { %v1494_v46 = vmul.f32 %v5891_v6, %v1457_v45  ;;  %v1302_v36 = vpop.xlane.xlu0 %1301  ;;  %v5911_v47 = vpop.eup %4558  ;;  %4570 = vrcp.f32 %v1319_v13  ;;  %v1323_v13 = vmax.f32 %v1300_v23, 1.0 }
 0x350   :  { %6568 = vst [vmem:[#allocation32_spill] sm:$0xff] %v5911_v47  ;;  %v1324_v40 = vmax.f32 %v1302_v36, 1.0 }
 0x351   :  { %v1505_v15 = vpack.c.bf16 %v1494_v46, %v1493_v5  ;;  %v5914_v5 = vpop.eup %4560  ;;  %v1322_v46 = vmax.f32 %v1298_v44, 1.0 }
 0x352   :  { %1660 = vmatmul.mubr.bf16.gmra.mrb[40].mxu1 %v1503_v25  ;;  %6569 = vst [vmem:[#allocation33_spill] sm:$0xff] %v5914_v5  ;;  %v1321_v25 = vmax.f32 %v1296_v63, 1.0  ;;  %v1304_v63 = vpop.xlane.xlu1 %1303  ;;  %v5933_v44 = vpop.eup %4562 }
 0x353   :  { %v4222_v3 = vpop.f32.mrb[44].mxu0  ;;  %1667 = vmatprep.mubr.bf16.mxu1 %v5629_v51 }
 0x354   :  { %v1470_v45 = vpop.f32.mrb[45].mxu0  ;;  %v5917_v14 = vmul.f32 %v5909_v16, %v4222_v3  ;;  %4572 = vrcp.f32 %v1321_v25  ;;  %v1325_v3 = vmax.f32 %v1304_v63, 1.0 }
 0x355   :  { %v4223_v2 = vpop.f32.mrb[46].mxu0  ;;  %v5923_v9 = vmul.f32 %v5906_v27, %v1470_v45  ;;  %4574 = vrcp.f32 %v1322_v46 }
 0x356   :  { %v5920_v20 = vmul.f32 %v5911_v47, %v4223_v2  ;;  %v1473_v51 = vpop.f32.mrb[47].mxu0  ;;  %v1306_v2 = vpop.xlane.xlu0 %1305  ;;  %4576 = vrcp.f32 %v1320_v30 }
 0x357   :  { %v5926_v11 = vmul.f32 %v5914_v5, %v1473_v51  ;;  %v5936_v51 = vpop.eup %4564  ;;  %v1326_v16 = vmax.f32 %v1306_v2, 1.0  ;;  %v1308_v26 = vpop.xlane.xlu1 %1307  ;;  %4578 = vrcp.f32 %v1323_v13 }
 0x358   :  { %v5938_v5 = vpop.eup %4566  ;;  %4580 = vrcp.f32 %v1325_v3 }
 0x359   :  { %v5940_v27 = vpop.eup %4568  ;;  %4582 = vrcp.f32 %v1326_v16 }
 0x35a   :  { %1668 = vmatmul.mubr.bf16.gmra.mrb[44].mxu1 %v1504_v48  ;;  %v1310_v25 = vpop.xlane.xlu0 %1309  ;;  %v5946_v54 = vpop.eup %4570  ;;  %4584 = vrcp.f32 %v1324_v40 }
 0x35b   :  { %v4242_v45 = vpop.f32.mrb[48].mxu0  ;;  %1675 = vmatprep.mubr.bf16.mxu1 %v5653_v24 }
 0x35c   :  { %v1799_v35 = vpop.f32.mrb[49].mxu0  ;;  %v1864_v48 = vmul.f32 %v5936_v51, %v4242_v45 }
 0x35d   :  { %v4243_v6 = vpop.f32.mrb[50].mxu0  ;;  %v1862_v24 = vmul.f32 %v5933_v44, %v1799_v35  ;;  %v1312_v35 = vpop.xlane.xlu1 %1311 }
 0x35e   :  { %v1865_v47 = vmul.f32 %v5938_v5, %v4243_v6  ;;  %v1802_v46 = vpop.f32.mrb[51].mxu0  ;;  %v5949_v6 = vpop.eup %4572  ;;  %v1329_v13 = vmax.f32 %v1312_v35, 1.0 }
 0x35f   :  { %v1863_v30 = vmul.f32 %v5940_v27, %v1802_v46  ;;  %v1314_v2 = vpop.xlane.xlu0 %1313  ;;  %v5952_v36 = vpop.eup %4574 }
 0x360   :  { %v1879_v32 = vpack.c.bf16 %v1865_v47, %v1864_v48  ;;  %v1327_v47 = vmax.f32 %v1308_v26, 1.0  ;;  %v1330_v46 = vmax.f32 %v1314_v2, 1.0  ;;  %v6570_v26 = vpack.c.bf16 %v5898_v55, %v5895_v62 }
 0x361   :  { %v1878_v23 = vpack.c.bf16 %v1863_v30, %v1862_v24  ;;  %v1328_v30 = vmax.f32 %v1310_v25, 1.0 }
 0x362   :  { %1676 = vmatmul.mubr.bf16.gmra.mrb[48].mxu1 %v1505_v15  ;;  %v5954_v15 = vpop.eup %4576  ;;  %4586 = vrcp.f32 %v1327_v47 }
 0x363   :  { %v4246_v63 = vpop.f32.mrb[52].mxu0  ;;  %2021 = vmatmul.mubr.bf16.vlgmr.msra.gmra.mrb[64].mxu0 %v1878_v23  ;;  %1683 = vmatprep.mubr.bf16.mxu1 %v5649_v18  ;;  %4588 = vrcp.f32 %v1329_v13  ;;  %v5963_v35 = vpop.eup %4578 }
 0x364   :  { %v1815_v45 = vpop.f32.mrb[53].mxu0  ;;  %2028 = vmatprep.mubr.bf16.mxu0 %v5590_v58  ;;  %v1868_v16 = vmul.f32 %v5949_v6, %v4246_v63  ;;  %4590 = vrcp.f32 %v1330_v46  ;;  %v5966_v2 = vpop.eup %4580 }
 0x365   :  { %v4247_v3 = vpop.f32.mrb[54].mxu0  ;;  %v1866_v40 = vmul.f32 %v5946_v54, %v1815_v45  ;;  %4592 = vrcp.f32 %v1328_v30  ;;  %v5969_v25 = vpop.eup %4582 }
 0x366   :  { %v1869_v48 = vmul.f32 %v5952_v36, %v4247_v3  ;;  %v1818_v18 = vpop.f32.mrb[55].mxu0  ;;  %v5971_v3 = vpop.eup %4584 }
 0x367   :  { %v1867_v24 = vmul.f32 %v5954_v15, %v1818_v18  ;;  %v6571_v18 = vpack.c.bf16 %v5926_v11, %v5923_v9 }
 0x368   :  { %v1881_v58 = vpack.c.bf16 %v1869_v48, %v1868_v16 }
 0x369   :  { %v1880_v23 = vpack.c.bf16 %v1867_v24, %v1866_v40 }
 0x36a   :  { %1684 = vmatmul.mubr.bf16.gmra.mrb[52].mxu1 %v6570_v26 }
 0x36b   :  { %v4250_v63 = vpop.f32.mrb[56].mxu0  ;;  %2029 = vmatmul.mubr.bf16.gmra.mrb[68].mxu0 %v1879_v32  ;;  %1691 = vmatprep.mubr.bf16.mxu1 %v5666_v10 }
 0x36c   :  { %v1831_v45 = vpop.f32.mrb[57].mxu0  ;;  %2036 = vmatprep.mubr.bf16.mxu0 %v5610_v21  ;;  %v1872_v62 = vmul.f32 %v5966_v2, %v4250_v63  ;;  %v5980_v21 = vpop.eup %4586 }
 0x36d   :  { %v4251_v47 = vpop.f32.mrb[58].mxu0  ;;  %v1870_v32 = vmul.f32 %v5963_v35, %v1831_v45  ;;  %v5983_v40 = vpop.eup %4588 }
 0x36e   :  { %v1873_v55 = vmul.f32 %v5969_v25, %v4251_v47  ;;  %v1834_v13 = vpop.f32.mrb[59].mxu0  ;;  %v5986_v30 = vpop.eup %4590 }
 0x36f   :  { %v1871_v10 = vmul.f32 %v5971_v3, %v1834_v13  ;;  %v5988_v63 = vpop.eup %4592 }
 0x370   :  { %v1883_v16 = vpack.c.bf16 %v1873_v55, %v1872_v62  ;;  %v6572_v55 = vpack.c.bf16 %v5920_v20, %v5917_v14  ;;  %v6003_v14 = vld [vmem:[#allocation7] ss:$0 sm:$0xff] }
 0x371   :  { %v1882_v48 = vpack.c.bf16 %v1871_v10, %v1870_v32 }
 0x372   :  { %1692 = vmatmul.mubr.bf16.gmra.mrb[56].mxu1 %v6571_v18 }
 0x373   :  { %v4254_v46 = vpop.f32.mrb[60].mxu0  ;;  %2037 = vmatmul.mubr.bf16.gmra.mrb[72].mxu0 %v1880_v23  ;;  %1699 = vmatprep.mubr.bf16.mxu1 %v5663_v37 }
 0x374   :  { %v1847_v24 = vpop.f32.mrb[61].mxu0  ;;  %2044 = vmatprep.mubr.bf16.mxu0 %v5605_v19  ;;  %v1876_v45 = vmul.f32 %v5983_v40, %v4254_v46 }
 0x375   :  { %v4255_v26 = vpop.f32.mrb[62].mxu0  ;;  %v1874_v47 = vmul.f32 %v5980_v21, %v1847_v24 }
 0x376   :  { %v1877_v11 = vmul.f32 %v5986_v30, %v4255_v26  ;;  %v1850_v9 = vpop.f32.mrb[63].mxu0 }
 0x377   :  { %v1875_v23 = vmul.f32 %v5988_v63, %v1850_v9 }
 0x378   :  { %v1885_v37 = vpack.c.bf16 %v1877_v11, %v1876_v45 }
 0x379   :  { %v1884_v62 = vpack.c.bf16 %v1875_v23, %v1874_v47 }
 0x37a   :  { %1700 = vmatmul.mubr.bf16.gmra.mrb[60].mxu1 %v6572_v55 }
 0x37b   :  { %2045 = vmatmul.mubr.bf16.gmra.mrb[76].mxu0 %v1881_v58  ;;  %4272 = vmatprep.mubr.bf16.mxu1 %v5670_v43 }
 0x37c   :  { %2052 = vmatprep.mubr.bf16.mxu0 %v5631_v52 }
 0x383   :  { %2053 = vmatmul.mubr.bf16.gmra.mrb[80].mxu0 %v1882_v48 }
 0x384   :  { %2060 = vmatprep.mubr.bf16.mxu0 %v5626_v50 }
 0x38b   :  { %2061 = vmatmul.mubr.bf16.gmra.mrb[84].mxu0 %v1883_v16 }
 0x38c   :  { %2068 = vmatprep.mubr.bf16.mxu0 %v5651_v22 }
 0x393   :  { %2069 = vmatmul.mubr.bf16.gmra.mrb[88].mxu0 %v1884_v62 }
 0x394   :  { %2076 = vmatprep.mubr.bf16.mxu0 %v5646_v17 }
 0x39b   :  { %2077 = vmatmul.mubr.bf16.gmra.mrb[92].mxu0 %v1885_v37 }
 0x39c   :  { %4304 = vmatprep.mubr.bf16.mxu0 %v5705_v12 }
 0x415   :  { %v3718_v19 = vpop.f32.mrb[32].mxu1 }
 0x416   :  { %v3719_v20 = vpop.f32.mrb[33].mxu1 }
 0x417   :  { %v3720_v58 = vadd.f32 %v3719_v20, %v3718_v19  ;;  %v3721_v43 = vpop.f32.mrb[34].mxu1 }
 0x418   :  { %v3722_v13 = vpop.f32.mrb[35].mxu1 }
 0x419   :  { %v1646_v52 = vadd.f32 %v3720_v58, %v6003_v14  ;;  %v3723_v32 = vadd.f32 %v3722_v13, %v3721_v43 }
 0x41b   :  { %v1649_v50 = vadd.f32 %v3723_v32, %v6003_v14  ;;  %v1708_v10 = vmax.f32 %v1646_v52, 0.0 }
 0x41d   :  { %v1709_v22 = vmax.f32 %v1649_v50, 0.0  ;;  %v3724_v16 = vpop.f32.mrb[36].mxu1 }
 0x41e   :  { %v3725_v48 = vpop.f32.mrb[37].mxu1 }
 0x41f   :  { %v3726_v17 = vadd.f32 %v3725_v48, %v3724_v16  ;;  %v3727_v18 = vpop.f32.mrb[38].mxu1  ;;  %v6007_v46 = vpack.c.bf16 %v1709_v22, %v1708_v10 }
 0x420   :  { %v3728_v12 = vpop.f32.mrb[39].mxu1 }
 0x421   :  { %v1654_v24 = vadd.f32 %v3726_v17, %v6003_v14  ;;  %v3729_v26 = vadd.f32 %v3728_v12, %v3727_v18  ;;  %4288 = vmatprep.subr.bf16.mxu0 %v6007_v46 }
 0x422   :  { %4289 = vmatpush3.bf16.msra.mxu0 %v6007_v46 }
 0x423   :  { %v1657_v45 = vadd.f32 %v3729_v26, %v6003_v14  ;;  %v1710_v11 = vmax.f32 %v1654_v24, 0.0 }
 0x425   :  { %v1711_v9 = vmax.f32 %v1657_v45, 0.0  ;;  %v3730_v47 = vpop.f32.mrb[40].mxu1 }
 0x426   :  { %v3731_v23 = vpop.f32.mrb[41].mxu1 }
 0x427   :  { %v3732_v37 = vadd.f32 %v3731_v23, %v3730_v47  ;;  %v3733_v62 = vpop.f32.mrb[42].mxu1  ;;  %v6013_v55 = vpack.c.bf16 %v1711_v9, %v1710_v11  ;;  %v6025_v23 = vld [vmem:[#allocation9] ss:$0 sm:$0xff] }
 0x428   :  { %v3734_v19 = vpop.f32.mrb[43].mxu1 }
 0x429   :  { %v1662_v20 = vadd.f32 %v3732_v37, %v6003_v14  ;;  %v3735_v58 = vadd.f32 %v3734_v19, %v3733_v62  ;;  %4290 = vmatprep.subr.bf16.mxu0 %v6013_v55 }
 0x42a   :  { %4291 = vmatpush3.bf16.msra.mxu0 %v6013_v55 }
 0x42b   :  { %v1665_v43 = vadd.f32 %v3735_v58, %v6003_v14  ;;  %v1712_v13 = vmax.f32 %v1662_v20, 0.0 }
 0x42d   :  { %v1713_v52 = vmax.f32 %v1665_v43, 0.0  ;;  %v3736_v32 = vpop.f32.mrb[44].mxu1 }
 0x42e   :  { %v3737_v50 = vpop.f32.mrb[45].mxu1 }
 0x42f   :  { %v3738_v10 = vadd.f32 %v3737_v50, %v3736_v32  ;;  %v3739_v22 = vpop.f32.mrb[46].mxu1  ;;  %v6019_v16 = vpack.c.bf16 %v1713_v52, %v1712_v13 }
 0x430   :  { %v3740_v48 = vpop.f32.mrb[47].mxu1 }
 0x431   :  { %6573 = vst [vmem:[#allocation34_spill] sm:$0xff] %v6019_v16  ;;  %v1670_v17 = vadd.f32 %v3738_v10, %v6003_v14  ;;  %v3741_v18 = vadd.f32 %v3740_v48, %v3739_v22  ;;  %4292 = vmatprep.subr.bf16.mxu0 %v6019_v16 }
 0x432   :  { %4293 = vmatpush3.bf16.msra.mxu0 %v6019_v16 }
 0x433   :  { %v1673_v12 = vadd.f32 %v3741_v18, %v6003_v14  ;;  %v1714_v24 = vmax.f32 %v1670_v17, 0.0 }
 0x435   :  { %v1715_v26 = vmax.f32 %v1673_v12, 0.0  ;;  %v3742_v45 = vpop.f32.mrb[48].mxu1 }
 0x436   :  { %v3798_v11 = vpop.f32.mrb[64].mxu0  ;;  %v3743_v9 = vpop.f32.mrb[49].mxu1 }
 0x437   :  { %v3744_v47 = vadd.f32 %v3743_v9, %v3742_v45  ;;  %v3799_v37 = vpop.f32.mrb[65].mxu0  ;;  %v3745_v62 = vpop.f32.mrb[50].mxu1  ;;  %v6027_v19 = vpack.c.bf16 %v1715_v26, %v1714_v24 }
 0x438   :  { %v3800_v20 = vadd.f32 %v3799_v37, %v3798_v11  ;;  %v3801_v58 = vpop.f32.mrb[66].mxu0  ;;  %v3746_v43 = vpop.f32.mrb[51].mxu1 }
 0x439   :  { %6574 = vst [vmem:[#allocation35_spill] sm:$0xff] %v6027_v19  ;;  %v1678_v13 = vadd.f32 %v3744_v47, %v6003_v14  ;;  %v3747_v52 = vadd.f32 %v3746_v43, %v3745_v62  ;;  %v3802_v32 = vpop.f32.mrb[67].mxu0  ;;  %4294 = vmatprep.subr.bf16.mxu0 %v6027_v19 }
 0x43a   :  { %v2023_v50 = vadd.f32 %v3800_v20, %v6025_v23  ;;  %v3803_v10 = vadd.f32 %v3802_v32, %v3801_v58  ;;  %4295 = vmatpush3.bf16.msra.mxu0 %v6027_v19 }
 0x43b   :  { %v1681_v22 = vadd.f32 %v3747_v52, %v6003_v14  ;;  %v1716_v17 = vmax.f32 %v1678_v13, 0.0 }
 0x43c   :  { %v2026_v48 = vadd.f32 %v3803_v10, %v6025_v23  ;;  %v2085_v24 = vmax.f32 %v2023_v50, 0.0 }
 0x43d   :  { %v1717_v18 = vmax.f32 %v1681_v22, 0.0  ;;  %v3748_v12 = vpop.f32.mrb[52].mxu1 }
 0x43e   :  { %v2086_v26 = vmax.f32 %v2026_v48, 0.0  ;;  %v3804_v45 = vpop.f32.mrb[68].mxu0  ;;  %v3749_v11 = vpop.f32.mrb[53].mxu1 }
 0x43f   :  { %v3750_v9 = vadd.f32 %v3749_v11, %v3748_v12  ;;  %v3805_v47 = vpop.f32.mrb[69].mxu0  ;;  %v3751_v37 = vpop.f32.mrb[54].mxu1  ;;  %v6035_v62 = vpack.c.bf16 %v1717_v18, %v1716_v17 }
 0x440   :  { %v3806_v20 = vadd.f32 %v3805_v47, %v3804_v45  ;;  %v3807_v58 = vpop.f32.mrb[70].mxu0  ;;  %v3752_v43 = vpop.f32.mrb[55].mxu1  ;;  %v6037_v32 = vpack.c.bf16 %v2086_v26, %v2085_v24 }
 0x441   :  { %6575 = vst [vmem:[#allocation36_spill] sm:$0xff] %v6035_v62  ;;  %v1686_v52 = vadd.f32 %v3750_v9, %v6003_v14  ;;  %v3753_v10 = vadd.f32 %v3752_v43, %v3751_v37  ;;  %v3808_v13 = vpop.f32.mrb[71].mxu0  ;;  %4296 = vmatprep.subr.bf16.mxu0 %v6035_v62 }
 0x442   :  { %v2031_v50 = vadd.f32 %v3806_v20, %v6025_v23  ;;  %v3809_v22 = vadd.f32 %v3808_v13, %v3807_v58  ;;  %4256 = vmatprep.subr.bf16.mxu1 %v6037_v32  ;;  %4297 = vmatpush3.bf16.msra.mxu0 %v6035_v62 }
 0x443   :  { %v1689_v48 = vadd.f32 %v3753_v10, %v6003_v14  ;;  %4257 = vmatpush3.bf16.msra.mxu1 %v6037_v32  ;;  %v1718_v18 = vmax.f32 %v1686_v52, 0.0 }
 0x444   :  { %v2034_v17 = vadd.f32 %v3809_v22, %v6025_v23  ;;  %v2087_v26 = vmax.f32 %v2031_v50, 0.0 }
 0x445   :  { %v1719_v12 = vmax.f32 %v1689_v48, 0.0  ;;  %v3754_v24 = vpop.f32.mrb[56].mxu1 }
 0x446   :  { %v2088_v45 = vmax.f32 %v2034_v17, 0.0  ;;  %v3810_v11 = vpop.f32.mrb[72].mxu0  ;;  %v3755_v9 = vpop.f32.mrb[57].mxu1 }
 0x447   :  { %v3756_v47 = vadd.f32 %v3755_v9, %v3754_v24  ;;  %v3811_v37 = vpop.f32.mrb[73].mxu0  ;;  %v3757_v20 = vpop.f32.mrb[58].mxu1  ;;  %v6047_v58 = vpack.c.bf16 %v1719_v12, %v1718_v18 }
 0x448   :  { %v3812_v43 = vadd.f32 %v3811_v37, %v3810_v11  ;;  %v3813_v13 = vpop.f32.mrb[74].mxu0  ;;  %v3758_v62 = vpop.f32.mrb[59].mxu1  ;;  %v6049_v10 = vpack.c.bf16 %v2088_v45, %v2087_v26 }
 0x449   :  { %6576 = vst [vmem:[#allocation37_spill] sm:$0xff] %v6047_v58  ;;  %v1694_v19 = vadd.f32 %v3756_v47, %v6003_v14  ;;  %v3759_v22 = vadd.f32 %v3758_v62, %v3757_v20  ;;  %v3814_v52 = vpop.f32.mrb[75].mxu0  ;;  %4298 = vmatprep.subr.bf16.mxu0 %v6047_v58 }
 0x44a   :  { %v2039_v50 = vadd.f32 %v3812_v43, %v6025_v23  ;;  %v3815_v48 = vadd.f32 %v3814_v52, %v3813_v13  ;;  %4258 = vmatprep.subr.bf16.mxu1 %v6049_v10  ;;  %4299 = vmatpush3.bf16.msra.mxu0 %v6047_v58 }
 0x44b   :  { %v1697_v17 = vadd.f32 %v3759_v22, %v6003_v14  ;;  %4259 = vmatpush3.bf16.msra.mxu1 %v6049_v10  ;;  %v1720_v12 = vmax.f32 %v1694_v19, 0.0 }
 0x44c   :  { %v2042_v18 = vadd.f32 %v3815_v48, %v6025_v23  ;;  %v2089_v62 = vmax.f32 %v2039_v50, 0.0 }
 0x44d   :  { %v1721_v24 = vmax.f32 %v1697_v17, 0.0  ;;  %v3760_v26 = vpop.f32.mrb[60].mxu1 }
 0x44e   :  { %v2090_v45 = vmax.f32 %v2042_v18, 0.0  ;;  %v3816_v11 = vpop.f32.mrb[76].mxu0  ;;  %v3761_v9 = vpop.f32.mrb[61].mxu1 }
 0x44f   :  { %v3762_v47 = vadd.f32 %v3761_v9, %v3760_v26  ;;  %v3817_v37 = vpop.f32.mrb[77].mxu0  ;;  %v3763_v20 = vpop.f32.mrb[62].mxu1  ;;  %v6059_v43 = vpack.c.bf16 %v1721_v24, %v1720_v12 }
 0x450   :  { %v3818_v13 = vadd.f32 %v3817_v37, %v3816_v11  ;;  %v3819_v52 = vpop.f32.mrb[78].mxu0  ;;  %v3764_v58 = vpop.f32.mrb[63].mxu1  ;;  %v6061_v22 = vpack.c.bf16 %v2090_v45, %v2089_v62 }
 0x451   :  { %v1702_v16 = vadd.f32 %v3762_v47, %v6003_v14  ;;  %v3765_v48 = vadd.f32 %v3764_v58, %v3763_v20  ;;  %v3820_v19 = vpop.f32.mrb[79].mxu0  ;;  %4300 = vmatprep.subr.bf16.mxu0 %v6059_v43  ;;  %v4466_v47 = vld [vmem:[%s6451_s12 + $0x40] sm:$0xff]  }
 0x452   :  { %v2047_v50 = vadd.f32 %v3818_v13, %v6025_v23  ;;  %v3821_v17 = vadd.f32 %v3820_v19, %v3819_v52  ;;  %4260 = vmatprep.subr.bf16.mxu1 %v6061_v22  ;;  %4301 = vmatpush3.bf16.msra.mxu0 %v6059_v43  ;;  %v4468_v19 = vld [vmem:[%s6451_s12 + $0x48] sm:$0xff]  }
 0x453   :  { %v1705_v18 = vadd.f32 %v3765_v48, %v6003_v14  ;;  %4261 = vmatpush3.bf16.msra.mxu1 %v6061_v22  ;;  %v1722_v24 = vmax.f32 %v1702_v16, 0.0  ;;  %v4467_v48 = vld [vmem:[%s6451_s12] sm:$0xff]  }
 0x454   :  { %v2050_v12 = vadd.f32 %v3821_v17, %v6025_v23  ;;  %v2091_v62 = vmax.f32 %v2047_v50, 0.0 }
 0x455   :  { %v1723_v26 = vmax.f32 %v1705_v18, 0.0 }
 0x456   :  { %v2092_v58 = vmax.f32 %v2050_v12, 0.0  ;;  %v3822_v45 = vpop.f32.mrb[80].mxu0 }
 0x457   :  { %v3823_v11 = vpop.f32.mrb[81].mxu0  ;;  %v6071_v9 = vpack.c.bf16 %v1723_v26, %v1722_v24  ;;  %v4469_v24 = vld [vmem:[%s6451_s12 + $0x8] sm:$0xff]  }
 0x458   :  { %v3824_v37 = vadd.f32 %v3823_v11, %v3822_v45  ;;  %v3825_v20 = vpop.f32.mrb[82].mxu0  ;;  %v6076_v13 = vpack.c.bf16 %v2092_v58, %v2091_v62  ;;  %v4470_v62 = vld [vmem:[%s6451_s12 + $0x50] sm:$0xff]  }
 0x459   :  { %v3826_v14 = vpop.f32.mrb[83].mxu0  ;;  %4302 = vmatprep.subr.bf16.mxu0 %v6071_v9 }
 0x45a   :  { %v2055_v16 = vadd.f32 %v3824_v37, %v6025_v23  ;;  %v3827_v52 = vadd.f32 %v3826_v14, %v3825_v20  ;;  %4262 = vmatprep.subr.bf16.mxu1 %v6076_v13  ;;  %4303 = vmatpush3.bf16.msra.mxu0 %v6071_v9  ;;  %v4472_v20 = vld [vmem:[%s6451_s12 + $0x58] sm:$0xff]  }
 0x45b   :  { %4263 = vmatpush3.bf16.msra.mxu1 %v6076_v13  ;;  %3942 = vmatprep.subr.bf16.mxu0 %v4466_v47 }
 0x45c   :  { %v2058_v50 = vadd.f32 %v3827_v52, %v6025_v23  ;;  %v2093_v17 = vmax.f32 %v2055_v16, 0.0 }
 0x45d   :  { %4305 = vmatmul.mubr.bf16.vlgmr.msra.gmra.mrb[96].mxu0 %v5702_v8 }
 0x45e   :  { %v2094_v18 = vmax.f32 %v2058_v50, 0.0  ;;  %v3828_v12 = vpop.f32.mrb[84].mxu0  ;;  %4308 = vmatprep.mubr.bf16.mxu0 %v5714_v34  ;;  %3943 = vmatpush3.bf16.msra.mxu0 %v4467_v48  ;;  %v4471_v34 = vld [vmem:[%s6451_s12 + $0x10] sm:$0xff]  }
 0x45f   :  { %v3829_v26 = vpop.f32.mrb[85].mxu0  ;;  %3944 = vmatprep.subr.bf16.mxu0 %v4468_v19  ;;  %v4473_v19 = vld [vmem:[%s6451_s12 + $0x18] sm:$0xff]  }
 0x460   :  { %v3830_v58 = vadd.f32 %v3829_v26, %v3828_v12  ;;  %v3831_v45 = vpop.f32.mrb[86].mxu0  ;;  %v6098_v11 = vpack.c.bf16 %v2094_v18, %v2093_v17  ;;  %v4474_v17 = vld [vmem:[%s6451_s12 + $0x60] sm:$0xff]  }
 0x461   :  { %v3832_v8 = vpop.f32.mrb[87].mxu0 }
 0x462   :  { %v2063_v47 = vadd.f32 %v3830_v58, %v6025_v23  ;;  %v3833_v37 = vadd.f32 %v3832_v8, %v3831_v45  ;;  %4264 = vmatprep.subr.bf16.mxu1 %v6098_v11  ;;  %3945 = vmatpush3.bf16.msra.mxu0 %v4469_v24  ;;  %v4476_v58 = vld [vmem:[%s6451_s12 + $0x68] sm:$0xff]  }
 0x463   :  { %4265 = vmatpush3.bf16.msra.mxu1 %v6098_v11  ;;  %3946 = vmatprep.subr.bf16.mxu0 %v4470_v62 }
 0x464   :  { %v2066_v14 = vadd.f32 %v3833_v37, %v6025_v23  ;;  %v2095_v16 = vmax.f32 %v2063_v47, 0.0 }
 0x465   :  { %4309 = vmatmul.mubr.bf16.gmra.mrb[100].mxu0 %v5712_v33 }
 0x466   :  { %v2096_v52 = vmax.f32 %v2066_v14, 0.0  ;;  %v3834_v48 = vpop.f32.mrb[88].mxu0  ;;  %4312 = vmatprep.mubr.bf16.mxu0 %v5720_v31  ;;  %3947 = vmatpush3.bf16.msra.mxu0 %v4471_v34  ;;  %v4475_v31 = vld [vmem:[%s6451_s12 + $0x20] sm:$0xff]   ;;  %v4477_v34 = vld [vmem:[%s6451_s12 + $0x28] sm:$0xff]  }
 0x467   :  { %v3835_v50 = vpop.f32.mrb[89].mxu0  ;;  %3948 = vmatprep.subr.bf16.mxu0 %v4472_v20 }
 0x468   :  { %v3836_v18 = vadd.f32 %v3835_v50, %v3834_v48  ;;  %v3837_v12 = vpop.f32.mrb[90].mxu0  ;;  %v6118_v24 = vpack.c.bf16 %v2096_v52, %v2095_v16 }
 0x469   :  { %v3838_v33 = vpop.f32.mrb[91].mxu0 }
 0x46a   :  { %v2071_v26 = vadd.f32 %v3836_v18, %v6025_v23  ;;  %v3839_v62 = vadd.f32 %v3838_v33, %v3837_v12  ;;  %4266 = vmatprep.subr.bf16.mxu1 %v6118_v24  ;;  %3949 = vmatpush3.bf16.msra.mxu0 %v4473_v19  ;;  %v4489_v12 = vld [vmem:[%s6577_s15 + $0x18] sm:$0xff]   ;;  %v4490_v33 = vld [vmem:[%s6577_s15 + $0x60] sm:$0xff]  }
 0x46b   :  { %4267 = vmatpush3.bf16.msra.mxu1 %v6118_v24  ;;  %3950 = vmatprep.subr.bf16.mxu0 %v4474_v17 }
 0x46c   :  { %v2074_v45 = vadd.f32 %v3839_v62, %v6025_v23  ;;  %v2097_v8 = vmax.f32 %v2071_v26, 0.0  ;;  %v4491_v26 = vld [vmem:[%s6577_s15 + $0x20] sm:$0xff]   ;;  %v4492_v62 = vld [vmem:[%s6577_s15 + $0x68] sm:$0xff]  }
 0x46d   :  { %4313 = vmatmul.mubr.bf16.gmra.mrb[104].mxu0 %v5718_v28 }
 0x46e   :  { %v2098_v47 = vmax.f32 %v2074_v45, 0.0  ;;  %v3840_v37 = vpop.f32.mrb[92].mxu0  ;;  %4316 = vmatprep.mubr.bf16.mxu0 %v5726_v29  ;;  %3951 = vmatpush3.bf16.msra.mxu0 %v4475_v31  ;;  %v4493_v31 = vld [vmem:[%s6577_s15 + $0x28] sm:$0xff]   ;;  %v4495_v45 = vld [vmem:[%s6577_s15 + $0x30] sm:$0xff]  }
 0x46f   :  { %v3841_v20 = vpop.f32.mrb[93].mxu0  ;;  %3952 = vmatprep.subr.bf16.mxu0 %v4476_v58  ;;  %v4494_v58 = vld [vmem:[%s6577_s15 + $0x70] sm:$0xff]  }
 0x470   :  { %v3842_v14 = vadd.f32 %v3841_v20, %v3840_v37  ;;  %v3843_v16 = vpop.f32.mrb[94].mxu0  ;;  %v6135_v52 = vpack.c.bf16 %v2098_v47, %v2097_v8  ;;  %v4496_v8 = vld [vmem:[%s6577_s15 + $0x78] sm:$0xff]  }
 0x471   :  { %v3844_v48 = vpop.f32.mrb[95].mxu0  ;;  %v4497_v47 = vld [vmem:[%s6577_s15 + $0x38] sm:$0xff]  }
 0x472   :  { %v2079_v19 = vadd.f32 %v3842_v14, %v6025_v23  ;;  %v3845_v28 = vadd.f32 %v3844_v48, %v3843_v16  ;;  %4268 = vmatprep.subr.bf16.mxu1 %v6135_v52  ;;  %3953 = vmatpush3.bf16.msra.mxu0 %v4477_v34 }
 0x473   :  { %4269 = vmatpush3.bf16.msra.mxu1 %v6135_v52 }
 0x474   :  { %v2082_v29 = vadd.f32 %v3845_v28, %v6025_v23  ;;  %v2099_v50 = vmax.f32 %v2079_v19, 0.0  ;;  %v4487_v23 = vld [vmem:[%s6577_s15 + $0x10] sm:$0xff]  }
 0x475   :  { %4317 = vmatmul.mubr.bf16.gmra.mrb[108].mxu0 %v5724_v7  ;;  %v4478_v7 = vld [vmem:[%s6451_s12 + $0x70] sm:$0xff]  }
 0x476   :  { %v2100_v17 = vmax.f32 %v2082_v29, 0.0  ;;  %2758 = vmatprep.mubr.bf16.mxu0 %v6037_v32  ;;  %3954 = vmatprep.subr.bf16.mxu0 %v4478_v7  ;;  %v4488_v32 = vld [vmem:[%s6577_s15 + $0x58] sm:$0xff]  }
 0x478   :  { %v6143_v18 = vpack.c.bf16 %v2100_v17, %v2099_v50 }
 0x47a   :  { %4270 = vmatprep.subr.bf16.mxu1 %v6143_v18 }
 0x47b   :  { %4271 = vmatpush3.bf16.msra.mxu1 %v6143_v18 }
 0x47e   :  { %4273 = vmatmul.mubr.bf16.vlgmr.msra.gmra.mrb[64].mxu1 %v5668_v41  ;;  %v4479_v41 = vld [vmem:[%s6451_s12 + $0x30] sm:$0xff]  }
 0x47f   :  { %4276 = vmatprep.mubr.bf16.mxu1 %v5678_v56  ;;  %3955 = vmatpush3.bf16.msra.mxu0 %v4479_v41  ;;  %v4481_v56 = vld [vmem:[%s6451_s12 + $0x38] sm:$0xff]  }
 0x486   :  { %4277 = vmatmul.mubr.bf16.gmra.mrb[68].mxu1 %v5676_v49  ;;  %v4480_v49 = vld [vmem:[%s6451_s12 + $0x78] sm:$0xff]  }
 0x487   :  { %4280 = vmatprep.mubr.bf16.mxu1 %v5688_v39  ;;  %3956 = vmatprep.subr.bf16.mxu0 %v4480_v49  ;;  %v4483_v39 = vld [vmem:[%s6577_s15] sm:$0xff]  }
 0x488   :  { %3957 = vmatpush3.bf16.msra.mxu0 %v4481_v56 }
 0x48e   :  { %4281 = vmatmul.mubr.bf16.gmra.mrb[72].mxu1 %v5686_v1  ;;  %v4482_v1 = vld [vmem:[%s6577_s15 + $0x40] sm:$0xff]  }
 0x48f   :  { %4284 = vmatprep.mubr.bf16.mxu1 %v5698_v4  ;;  %3862 = vmatprep.subr.bf16.mxu1 %v4482_v1  ;;  %v4485_v4 = vld [vmem:[%s6577_s15 + $0x8] sm:$0xff]  }
 0x490   :  { %3863 = vmatpush3.bf16.msra.mxu1 %v4483_v39 }
 0x496   :  { %4285 = vmatmul.mubr.bf16.gmra.mrb[76].mxu1 %v5696_v60  ;;  %v4484_v60 = vld [vmem:[%s6577_s15 + $0x48] sm:$0xff]  }
 0x497   :  { %2397 = vmatprep.mubr.bf16.mxu1 %v6007_v46  ;;  %3864 = vmatprep.subr.bf16.mxu1 %v4484_v60  ;;  %v4486_v46 = vld [vmem:[%s6577_s15 + $0x50] sm:$0xff]  }
 0x498   :  { %3865 = vmatpush3.bf16.msra.mxu1 %v4485_v4 }
 0x499   :  { %3866 = vmatprep.subr.bf16.mxu1 %v4486_v46 }
 0x49c   :  { %3867 = vmatpush3.bf16.msra.mxu1 %v4487_v23 }
 0x49d   :  { %3868 = vmatprep.subr.bf16.mxu1 %v4488_v32 }
 0x4a0   :  { %3869 = vmatpush3.bf16.msra.mxu1 %v4489_v12 }
 0x4a1   :  { %3870 = vmatprep.subr.bf16.mxu1 %v4490_v33 }
 0x4a4   :  { %3871 = vmatpush3.bf16.msra.mxu1 %v4491_v26 }
 0x4a5   :  { %3872 = vmatprep.subr.bf16.mxu1 %v4492_v62 }
 0x4a8   :  { %3873 = vmatpush3.bf16.msra.mxu1 %v4493_v31 }
 0x4a9   :  { %3874 = vmatprep.subr.bf16.mxu1 %v4494_v58 }
 0x4ac   :  { %3875 = vmatpush3.bf16.msra.mxu1 %v4495_v45 }
 0x4ad   :  { %3876 = vmatprep.subr.bf16.mxu1 %v4496_v8 }
 0x4b0   :  { %3877 = vmatpush3.bf16.msra.mxu1 %v4497_v47 }
 0x530   :  { %v4306_v37 = vpop.f32.mrb[96].mxu0 }
 0x531   :  { %v2537_v34 = vpop.f32.mrb[97].mxu0  ;;  %v2602_v14 = vmul.f32 %v5936_v51, %v4306_v37 }
 0x532   :  { %v4307_v20 = vpop.f32.mrb[98].mxu0  ;;  %v2600_v19 = vmul.f32 %v5933_v44, %v2537_v34 }
 0x533   :  { %v2603_v16 = vmul.f32 %v5938_v5, %v4307_v20  ;;  %v2540_v48 = vpop.f32.mrb[99].mxu0 }
 0x534   :  { %v2601_v28 = vmul.f32 %v5940_v27, %v2540_v48 }
 0x535   :  { %v2617_v29 = vpack.c.bf16 %v2603_v16, %v2602_v14  ;;  %v6578_v14 = vld [vmem:[#allocation25_spill] sm:$0xff] }
 0x536   :  { %v2616_v50 = vpack.c.bf16 %v2601_v28, %v2600_v19  ;;  %v6579_v28 = vld [vmem:[#allocation34_spill] sm:$0xff] }
 0x538   :  { %v4310_v17 = vpop.f32.mrb[100].mxu0  ;;  %2759 = vmatmul.mubr.bf16.vlgmr.msra.gmra.mrb[112].mxu0 %v2616_v50  ;;  %v6581_v50 = vld [vmem:[#allocation28_spill] sm:$0xff] }
 0x539   :  { %v2553_v7 = vpop.f32.mrb[101].mxu0  ;;  %2766 = vmatprep.mubr.bf16.mxu0 %v6049_v10  ;;  %v2606_v49 = vmul.f32 %v5949_v6, %v4310_v17 }
 0x53a   :  { %v4311_v41 = vpop.f32.mrb[102].mxu0  ;;  %v2604_v5 = vmul.f32 %v5946_v54, %v2553_v7  ;;  %v6582_v7 = vld [vmem:[#allocation26_spill] sm:$0xff] }
 0x53b   :  { %v2607_v56 = vmul.f32 %v5952_v36, %v4311_v41  ;;  %v2556_v51 = vpop.f32.mrb[103].mxu0  ;;  %v6583_v41 = vld [vmem:[#allocation29_spill] sm:$0xff] }
 0x53c   :  { %v2605_v1 = vmul.f32 %v5954_v15, %v2556_v51 }
 0x53d   :  { %v2619_v44 = vpack.c.bf16 %v2607_v56, %v2606_v49 }
 0x53e   :  { %v2618_v39 = vpack.c.bf16 %v2605_v1, %v2604_v5  ;;  %v6584_v1 = vld [vmem:[#allocation35_spill] sm:$0xff] }
 0x540   :  { %v4314_v27 = vpop.f32.mrb[104].mxu0  ;;  %2767 = vmatmul.mubr.bf16.gmra.mrb[116].mxu0 %v2617_v29  ;;  %v6580_v29 = vld [vmem:[#allocation27_spill] sm:$0xff] }
 0x541   :  { %v2569_v60 = vpop.f32.mrb[105].mxu0  ;;  %2774 = vmatprep.mubr.bf16.mxu0 %v6061_v22  ;;  %v2610_v10 = vmul.f32 %v5966_v2, %v4314_v27 }
 0x542   :  { %v4315_v4 = vpop.f32.mrb[106].mxu0  ;;  %v2608_v36 = vmul.f32 %v5963_v35, %v2569_v60  ;;  %v6586_v60 = vld [vmem:[#allocation32_spill] sm:$0xff] }
 0x543   :  { %v2611_v46 = vmul.f32 %v5969_v25, %v4315_v4  ;;  %v2572_v6 = vpop.f32.mrb[107].mxu0 }
 0x544   :  { %v2609_v23 = vmul.f32 %v5971_v3, %v2572_v6 }
 0x545   :  { %v2621_v54 = vpack.c.bf16 %v2611_v46, %v2610_v10  ;;  %v6587_v46 = vld [vmem:[#allocation30_spill] sm:$0xff] }
 0x546   :  { %v2620_v32 = vpack.c.bf16 %v2609_v23, %v2608_v36  ;;  %v6588_v36 = vld [vmem:[#allocation33_spill] sm:$0xff] }
 0x548   :  { %v4318_v15 = vpop.f32.mrb[108].mxu0  ;;  %2775 = vmatmul.mubr.bf16.gmra.mrb[120].mxu0 %v2618_v39  ;;  %v6585_v39 = vld [vmem:[#allocation31_spill] sm:$0xff] }
 0x549   :  { %v2585_v12 = vpop.f32.mrb[109].mxu0  ;;  %2782 = vmatprep.mubr.bf16.mxu0 %v6076_v13  ;;  %v2614_v22 = vmul.f32 %v5983_v40, %v4318_v15  ;;  %v6589_v15 = vld [vmem:[#allocation36_spill] sm:$0xff] }
 0x54a   :  { %v4319_v33 = vpop.f32.mrb[110].mxu0  ;;  %v2612_v25 = vmul.f32 %v5980_v21, %v2585_v12  ;;  %v4840_v12 = vmov 0.0  }
 0x54b   :  { %v2615_v26 = vmul.f32 %v5986_v30, %v4319_v33  ;;  %v2588_v2 = vpop.f32.mrb[111].mxu0  ;;  %4320 = vmatprep.subr.bf16.mxu1 %v4840_v12  ;;  %v4498_v33 = vld [vmem:[%s6453_s14 + $0x40] sm:$0xff]  }
 0x54c   :  { %v2613_v62 = vmul.f32 %v5988_v63, %v2588_v2  ;;  %4024 = vmatprep.subr.bf16.mxu0 %v4498_v33  ;;  %v4503_v2 = vld [vmem:[%s6453_s14 + $0x10] sm:$0xff]  }
 0x54d   :  { %v2623_v35 = vpack.c.bf16 %v2615_v26, %v2614_v22  ;;  %v4499_v22 = vld [vmem:[%s6453_s14] sm:$0xff]   ;;  %v4502_v26 = vld [vmem:[%s6453_s14 + $0x50] sm:$0xff]  }
 0x54e   :  { %v2622_v31 = vpack.c.bf16 %v2613_v62, %v2612_v25  ;;  %4025 = vmatpush3.bf16.msra.mxu0 %v4499_v22 }
 0x550   :  { %2783 = vmatmul.mubr.bf16.gmra.mrb[124].mxu0 %v2619_v44 }
 0x551   :  { %v4274_v3 = vpop.f32.mrb[64].mxu1  ;;  %2790 = vmatprep.mubr.bf16.mxu0 %v6098_v11 }
 0x552   :  { %v2176_v58 = vpop.f32.mrb[65].mxu1  ;;  %v2241_v13 = vmul.f32 %v5854_v38, %v4274_v3  ;;  %v6282_v3 = vld [vmem:[#allocation12] ss:$0 sm:$0xff] }
 0x553   :  { %v4275_v45 = vpop.f32.mrb[66].mxu1  ;;  %v2239_v30 = vmul.f32 %v5852_v53, %v2176_v58 }
 0x554   :  { %v2242_v8 = vmul.f32 %v5856_v42, %v4275_v45  ;;  %v2179_v40 = vpop.f32.mrb[67].mxu1 }
 0x555   :  { %v2240_v47 = vmul.f32 %v5858_v57, %v2179_v40 }
 0x556   :  { %v2256_v21 = vpack.c.bf16 %v2242_v8, %v2241_v13 }
 0x557   :  { %v2255_v37 = vpack.c.bf16 %v2240_v47, %v2239_v30 }
 0x558   :  { %2791 = vmatmul.mubr.bf16.gmra.mrb[128].mxu0 %v2620_v32 }
 0x559   :  { %v4278_v63 = vpop.f32.mrb[68].mxu1  ;;  %2398 = vmatmul.mubr.bf16.vlgmr.msra.gmra.mrb[80].mxu1 %v2255_v37  ;;  %2798 = vmatprep.mubr.bf16.mxu0 %v6118_v24 }
 0x55a   :  { %v2192_v34 = vpop.f32.mrb[69].mxu1  ;;  %2405 = vmatprep.mubr.bf16.mxu1 %v6013_v55  ;;  %v2245_v38 = vmul.f32 %v5867_v0, %v4278_v63 }
 0x55b   :  { %v4279_v11 = vpop.f32.mrb[70].mxu1  ;;  %v2243_v53 = vmul.f32 %v5864_v59, %v2192_v34 }
 0x55c   :  { %v2246_v42 = vmul.f32 %v5869_v61, %v4279_v11  ;;  %v2195_v20 = vpop.f32.mrb[71].mxu1 }
 0x55d   :  { %v2244_v57 = vmul.f32 %v6578_v14, %v2195_v20 }
 0x55e   :  { %v2258_v16 = vpack.c.bf16 %v2246_v42, %v2245_v38 }
 0x55f   :  { %v2257_v48 = vpack.c.bf16 %v2244_v57, %v2243_v53 }
 0x560   :  { %2799 = vmatmul.mubr.bf16.gmra.mrb[132].mxu0 %v2621_v54 }
 0x561   :  { %v4282_v19 = vpop.f32.mrb[72].mxu1  ;;  %2406 = vmatmul.mubr.bf16.gmra.mrb[84].mxu1 %v2256_v21  ;;  %2806 = vmatprep.mubr.bf16.mxu0 %v6135_v52 }
 0x562   :  { %v2208_v24 = vpop.f32.mrb[73].mxu1  ;;  %2413 = vmatprep.mubr.bf16.mxu1 %v6579_v28  ;;  %v2249_v0 = vmul.f32 %v6580_v29, %v4282_v19 }
 0x563   :  { %v4283_v55 = vpop.f32.mrb[74].mxu1  ;;  %v2247_v59 = vmul.f32 %v6582_v7, %v2208_v24 }
 0x564   :  { %v2250_v61 = vmul.f32 %v6581_v50, %v4283_v55  ;;  %v2211_v17 = vpop.f32.mrb[75].mxu1 }
 0x565   :  { %v2248_v49 = vmul.f32 %v6583_v41, %v2211_v17 }
 0x566   :  { %v2260_v56 = vpack.c.bf16 %v2250_v61, %v2249_v0 }
 0x567   :  { %v2259_v51 = vpack.c.bf16 %v2248_v49, %v2247_v59 }
 0x568   :  { %2807 = vmatmul.mubr.bf16.gmra.mrb[136].mxu0 %v2622_v31 }
 0x569   :  { %v4286_v5 = vpop.f32.mrb[76].mxu1  ;;  %2414 = vmatmul.mubr.bf16.gmra.mrb[88].mxu1 %v2257_v48  ;;  %2814 = vmatprep.mubr.bf16.mxu0 %v6143_v18  ;;  %v6590_v18 = vld [vmem:[#allocation37_spill] sm:$0xff] }
 0x56a   :  { %v2224_v52 = vpop.f32.mrb[77].mxu1  ;;  %2421 = vmatprep.mubr.bf16.mxu1 %v6584_v1  ;;  %v2253_v27 = vmul.f32 %v6585_v39, %v4286_v5 }
 0x56b   :  { %v4287_v44 = vpop.f32.mrb[78].mxu1  ;;  %v2251_v6 = vmul.f32 %v6587_v46, %v2224_v52 }
 0x56c   :  { %v2254_v4 = vmul.f32 %v6586_v60, %v4287_v44  ;;  %v2227_v10 = vpop.f32.mrb[79].mxu1  ;;  %v6296_v60 = vld [vmem:[#allocation10] ss:$0 sm:$0xff] }
 0x56d   :  { %v2252_v23 = vmul.f32 %v6588_v36, %v2227_v10 }
 0x56e   :  { %v2262_v54 = vpack.c.bf16 %v2254_v4, %v2253_v27 }
 0x56f   :  { %v2261_v32 = vpack.c.bf16 %v2252_v23, %v2251_v6 }
 0x570   :  { %2815 = vmatmul.mubr.bf16.gmra.mrb[140].mxu0 %v2623_v35 }
 0x571   :  { %2422 = vmatmul.mubr.bf16.gmra.mrb[92].mxu1 %v2258_v16 }
 0x572   :  { %2429 = vmatprep.mubr.bf16.mxu1 %v6589_v15 }
 0x579   :  { %2430 = vmatmul.mubr.bf16.gmra.mrb[96].mxu1 %v2259_v51 }
 0x57a   :  { %2437 = vmatprep.mubr.bf16.mxu1 %v6590_v18 }
 0x581   :  { %2438 = vmatmul.mubr.bf16.gmra.mrb[100].mxu1 %v2260_v56 }
 0x582   :  { %2445 = vmatprep.mubr.bf16.mxu1 %v6059_v43  ;;  %v4500_v43 = vld [vmem:[%s6453_s14 + $0x48] sm:$0xff]  }
 0x583   :  { %4026 = vmatprep.subr.bf16.mxu0 %v4500_v43 }
 0x589   :  { %2446 = vmatmul.mubr.bf16.gmra.mrb[104].mxu1 %v2261_v32 }
 0x58a   :  { %2453 = vmatprep.mubr.bf16.mxu1 %v6071_v9  ;;  %v4501_v9 = vld [vmem:[%s6453_s14 + $0x8] sm:$0xff]  }
 0x58b   :  { %4027 = vmatpush3.bf16.msra.mxu0 %v4501_v9 }
 0x58c   :  { %4028 = vmatprep.subr.bf16.mxu0 %v4502_v26 }
 0x58f   :  { %4029 = vmatpush3.bf16.msra.mxu0 %v4503_v2 }
 0x591   :  { %2454 = vmatmul.mubr.bf16.gmra.mrb[108].mxu1 %v2262_v54 }
 0x592   :  { %4336 = vmatprep.mubr.msk.bf16.mxu1 %vm4841_vm14, %v4840_v12 }
 0x60b   :  { %v3958_v25 = vpop.f32.mrb[112].mxu0 }
 0x60c   :  { %v3959_v62 = vpop.f32.mrb[113].mxu0 }
 0x60d   :  { %v3960_v35 = vadd.f32 %v3959_v62, %v3958_v25  ;;  %v3961_v31 = vpop.f32.mrb[114].mxu0 }
 0x60e   :  { %v3962_v58 = vpop.f32.mrb[115].mxu0 }
 0x60f   :  { %v3963_v45 = vadd.f32 %v3962_v58, %v3961_v31  ;;  %v2761_v13 = vadd.f32 %v3960_v35, %v6282_v3 }
 0x611   :  { %v2764_v8 = vadd.f32 %v3963_v45, %v6282_v3 }
 0x613   :  { %v2823_v40 = vpack.c.bf16 %v2764_v8, %v2761_v13  ;;  %v3964_v30 = vpop.f32.mrb[116].mxu0 }
 0x614   :  { %v3965_v47 = vpop.f32.mrb[117].mxu0 }
 0x615   :  { %v3966_v21 = vadd.f32 %v3965_v47, %v3964_v30  ;;  %v3967_v37 = vpop.f32.mrb[118].mxu0  ;;  %4321 = vmatpush3.bf16.msra.mxu1 %v2823_v40 }
 0x616   :  { %v3968_v63 = vpop.f32.mrb[119].mxu0  ;;  %4322 = vmatprep.subr.bf16.mxu1 %v4840_v12 }
 0x617   :  { %v3969_v34 = vadd.f32 %v3968_v63, %v3967_v37  ;;  %v2769_v11 = vadd.f32 %v3966_v21, %v6282_v3 }
 0x619   :  { %v2772_v38 = vadd.f32 %v3969_v34, %v6282_v3 }
 0x61b   :  { %v2824_v42 = vpack.c.bf16 %v2772_v38, %v2769_v11  ;;  %v3970_v20 = vpop.f32.mrb[120].mxu0 }
 0x61c   :  { %v3971_v53 = vpop.f32.mrb[121].mxu0 }
 0x61d   :  { %v3972_v14 = vadd.f32 %v3971_v53, %v3970_v20  ;;  %v3973_v57 = vpop.f32.mrb[122].mxu0  ;;  %4323 = vmatpush3.bf16.msra.mxu1 %v2824_v42 }
 0x61e   :  { %v3974_v16 = vpop.f32.mrb[123].mxu0  ;;  %4324 = vmatprep.subr.bf16.mxu1 %v4840_v12 }
 0x61f   :  { %v3975_v48 = vadd.f32 %v3974_v16, %v3973_v57  ;;  %v2777_v19 = vadd.f32 %v3972_v14, %v6282_v3 }
 0x621   :  { %v2780_v24 = vadd.f32 %v3975_v48, %v6282_v3 }
 0x623   :  { %v2825_v28 = vpack.c.bf16 %v2780_v24, %v2777_v19  ;;  %v3976_v55 = vpop.f32.mrb[124].mxu0 }
 0x624   :  { %v3977_v29 = vpop.f32.mrb[125].mxu0 }
 0x625   :  { %v3978_v0 = vadd.f32 %v3977_v29, %v3976_v55  ;;  %v3979_v50 = vpop.f32.mrb[126].mxu0  ;;  %4325 = vmatpush3.bf16.msra.mxu1 %v2825_v28 }
 0x626   :  { %v3980_v61 = vpop.f32.mrb[127].mxu0  ;;  %4326 = vmatprep.subr.bf16.mxu1 %v4840_v12 }
 0x627   :  { %v3981_v17 = vadd.f32 %v3980_v61, %v3979_v50  ;;  %v2785_v7 = vadd.f32 %v3978_v0, %v6282_v3 }
 0x629   :  { %v2788_v59 = vadd.f32 %v3981_v17, %v6282_v3 }
 0x62b   :  { %v2826_v41 = vpack.c.bf16 %v2788_v59, %v2785_v7  ;;  %v3982_v49 = vpop.f32.mrb[128].mxu0 }
 0x62c   :  { %v3878_v56 = vpop.f32.mrb[80].mxu1  ;;  %v3983_v51 = vpop.f32.mrb[129].mxu0 }
 0x62d   :  { %v3879_v5 = vpop.f32.mrb[81].mxu1  ;;  %v3984_v52 = vadd.f32 %v3983_v51, %v3982_v49  ;;  %v3985_v1 = vpop.f32.mrb[130].mxu0  ;;  %4327 = vmatpush3.bf16.msra.mxu1 %v2826_v41 }
 0x62e   :  { %v3880_v44 = vadd.f32 %v3879_v5, %v3878_v56  ;;  %v3881_v39 = vpop.f32.mrb[82].mxu1  ;;  %v3986_v27 = vpop.f32.mrb[131].mxu0  ;;  %4328 = vmatprep.subr.bf16.mxu1 %v4840_v12 }
 0x62f   :  { %v3882_v4 = vpop.f32.mrb[83].mxu1  ;;  %v3987_v10 = vadd.f32 %v3986_v27, %v3985_v1  ;;  %v2793_v6 = vadd.f32 %v3984_v52, %v6282_v3  ;;  %v2838_v1 = vpop.permute.xlu0 %2837 }
 0x630   :  { %v3883_v46 = vadd.f32 %v3882_v4, %v3881_v39  ;;  %v6301_v23 = vadd.f32 %v3880_v44, %v6296_v60 }
 0x631   :  { %v2796_v36 = vadd.f32 %v3987_v10, %v6282_v3  ;;  %v2835_v10 = vpop.permute.xlu1 %2834 }
 0x632   :  { %v6304_v54 = vadd.f32 %v3883_v46, %v6296_v60 }
 0x633   :  { %v2827_v32 = vpack.c.bf16 %v2796_v36, %v2793_v6  ;;  %v3988_v15 = vpop.f32.mrb[132].mxu0  ;;  %v6591_v6 = vld [vmem:[#allocation24_spill] sm:$0xff] }
 0x634   :  { %v2462_v18 = vpack.c.bf16 %v6304_v54, %v6301_v23  ;;  %v3884_v33 = vpop.f32.mrb[84].mxu1  ;;  %v3989_v22 = vpop.f32.mrb[133].mxu0  ;;  %vm2840_vm1 = vcmp.eq.s32.totalorder %v6591_v6, %v2838_v1  ;;  %vm2839_vm4 = vcmp.eq.s32.totalorder %v6591_v6, %v2835_v10 }
 0x635   :  { %v3885_v43 = vpop.f32.mrb[85].mxu1  ;;  %v3990_v9 = vadd.f32 %v3989_v22, %v3988_v15  ;;  %v3991_v26 = vpop.f32.mrb[134].mxu0  ;;  %4329 = vmatpush3.bf16.msra.mxu1 %v2827_v32  ;;  %vm3583_vm11 = vmpackc.low %vm2840_vm1, %vm2839_vm4 }
 0x636   :  { %v3886_v2 = vadd.f32 %v3885_v43, %v3884_v33  ;;  %v3887_v25 = vpop.f32.mrb[86].mxu1  ;;  %v3992_v62 = vpop.f32.mrb[135].mxu0  ;;  %4330 = vmatprep.subr.bf16.mxu1 %v4840_v12 }
 0x637   :  { %v3888_v35 = vpop.f32.mrb[87].mxu1  ;;  %v3993_v31 = vadd.f32 %v3992_v62, %v3991_v26  ;;  %v2801_v45 = vadd.f32 %v3990_v9, %v6282_v3  ;;  %v6592_v9 = vmov 1.0|1.0  }
 0x638   :  { %v3889_v58 = vadd.f32 %v3888_v35, %v3887_v25  ;;  %v6312_v8 = vadd.f32 %v3886_v2, %v6296_v60 }
 0x639   :  { %v2804_v13 = vadd.f32 %v3993_v31, %v6282_v3 }
 0x63a   :  { %v6315_v40 = vadd.f32 %v3889_v58, %v6296_v60 }
 0x63b   :  { %v2828_v30 = vpack.c.bf16 %v2804_v13, %v2801_v45  ;;  %v3994_v47 = vpop.f32.mrb[136].mxu0 }
 0x63c   :  { %v2463_v21 = vpack.c.bf16 %v6315_v40, %v6312_v8  ;;  %v3890_v37 = vpop.f32.mrb[88].mxu1  ;;  %v3995_v63 = vpop.f32.mrb[137].mxu0 }
 0x63d   :  { %v3891_v34 = vpop.f32.mrb[89].mxu1  ;;  %v3996_v11 = vadd.f32 %v3995_v63, %v3994_v47  ;;  %v3997_v38 = vpop.f32.mrb[138].mxu0  ;;  %4331 = vmatpush3.bf16.msra.mxu1 %v2828_v30 }
 0x63e   :  { %v3892_v42 = vadd.f32 %v3891_v34, %v3890_v37  ;;  %v3893_v20 = vpop.f32.mrb[90].mxu1  ;;  %v3998_v53 = vpop.f32.mrb[139].mxu0  ;;  %4332 = vmatprep.subr.bf16.mxu1 %v4840_v12 }
 0x63f   :  { %v3894_v14 = vpop.f32.mrb[91].mxu1  ;;  %v3999_v57 = vadd.f32 %v3998_v53, %v3997_v38  ;;  %v2809_v48 = vadd.f32 %v3996_v11, %v6282_v3  ;;  %v2850_v11 = vpop.permute.xlu1 %2849 }
 0x640   :  { %v3895_v16 = vadd.f32 %v3894_v14, %v3893_v20  ;;  %v2416_v24 = vadd.f32 %v3892_v42, %v6296_v60  ;;  %vm2854_vm6 = vcmp.eq.s32.totalorder %v6591_v6, %v2850_v11 }
 0x641   :  { %v2812_v19 = vadd.f32 %v3999_v57, %v6282_v3 }
 0x642   :  { %v2419_v28 = vadd.f32 %v3895_v16, %v6296_v60 }
 0x643   :  { %v2829_v55 = vpack.c.bf16 %v2812_v19, %v2809_v48  ;;  %v4000_v29 = vpop.f32.mrb[140].mxu0  ;;  %v2853_v48 = vpop.permute.xlu1 %2852 }
 0x644   :  { %v2464_v0 = vpack.c.bf16 %v2419_v28, %v2416_v24  ;;  %v3896_v50 = vpop.f32.mrb[92].mxu1  ;;  %v4001_v61 = vpop.f32.mrb[141].mxu0  ;;  %vm2855_vm15 = vcmp.eq.s32.totalorder %v6591_v6, %v2853_v48 }
 0x645   :  { %v3897_v17 = vpop.f32.mrb[93].mxu1  ;;  %v4002_v7 = vadd.f32 %v4001_v61, %v4000_v29  ;;  %v4003_v59 = vpop.f32.mrb[142].mxu0  ;;  %4333 = vmatpush3.bf16.msra.mxu1 %v2829_v55  ;;  %vm3585_vm0 = vmpackc.low %vm2855_vm15, %vm2854_vm6  ;;  %v4505_v55 = vld [vmem:[%s6453_s14 + $0x18] sm:$0xff]   ;;  %v4506_v29 = vld [vmem:[%s6453_s14 + $0x60] sm:$0xff]  }
 0x646   :  { %v3898_v41 = vadd.f32 %v3897_v17, %v3896_v50  ;;  %v3899_v49 = vpop.f32.mrb[94].mxu1  ;;  %v4004_v56 = vpop.f32.mrb[143].mxu0  ;;  %4334 = vmatprep.subr.bf16.mxu1 %v4840_v12  ;;  %v4508_v50 = vld [vmem:[%s6453_s14 + $0x68] sm:$0xff]   ;;  %v4510_v17 = vld [vmem:[%s6453_s14 + $0x70] sm:$0xff]  }
 0x647   :  { %v3900_v51 = vpop.f32.mrb[95].mxu1  ;;  %v4005_v5 = vadd.f32 %v4004_v56, %v4003_v59  ;;  %v2817_v44 = vadd.f32 %v4002_v7, %v6282_v3  ;;  %v4509_v61 = vld [vmem:[%s6453_s14 + $0x28] sm:$0xff]   ;;  %v4511_v7 = vld [vmem:[%s6453_s14 + $0x30] sm:$0xff]   ;;  %v4512_v59 = vld [vmem:[%s6453_s14 + $0x78] sm:$0xff]  }
 0x648   :  { %v3901_v52 = vadd.f32 %v3900_v51, %v3899_v49  ;;  %v2424_v27 = vadd.f32 %v3898_v41, %v6296_v60  ;;  %v4513_v41 = vld [vmem:[%s6453_s14 + $0x38] sm:$0xff]   ;;  %v4514_v49 = vld [vmem:[%s6593_s1] sm:$0xff]   ;;  %v4515_v56 = vld [vmem:[%s6593_s1 + $0x8] sm:$0xff]  }
 0x649   :  { %v2820_v39 = vadd.f32 %v4005_v5, %v6282_v3  ;;  %v4516_v51 = vld [vmem:[%s6593_s1 + $0x10] sm:$0xff]   ;;  %v4517_v5 = vld [vmem:[%s6593_s1 + $0x18] sm:$0xff]  }
 0x64a   :  { %v2427_v4 = vadd.f32 %v3901_v52, %v6296_v60  ;;  %v4518_v52 = vld [vmem:[%s6593_s1 + $0x20] sm:$0xff]  }
 0x64b   :  { %v2830_v46 = vpack.c.bf16 %v2820_v39, %v2817_v44 }
 0x64c   :  { %v2465_v36 = vpack.c.bf16 %v2427_v4, %v2424_v27  ;;  %v3902_v32 = vpop.f32.mrb[96].mxu1 }
 0x64d   :  { %v3903_v15 = vpop.f32.mrb[97].mxu1  ;;  %4335 = vmatpush3.bf16.msra.mxu1 %v2830_v46 }
 0x64e   :  { %v3904_v33 = vadd.f32 %v3903_v15, %v3902_v32  ;;  %v3905_v22 = vpop.f32.mrb[98].mxu1  ;;  %4340 = vmatprep.subr.bf16.mxu1 %v4840_v12  ;;  %v4519_v15 = vld [vmem:[%s6593_s1 + $0x28] sm:$0xff]  }
 0x64f   :  { %v3906_v3 = vpop.f32.mrb[99].mxu1 }
 0x650   :  { %v3907_v43 = vadd.f32 %v3906_v3, %v3905_v22  ;;  %4337 = vmatmul.mubr.msk.bf16.vlgmr.msra.gmra.mrb[112].mxu1 %vm3583_vm11, %v6592_v9  ;;  %v2432_v26 = vadd.f32 %v3904_v33, %v6296_v60  ;;  %v4520_v33 = vld [vmem:[%s6593_s1 + $0x30] sm:$0xff]   ;;  %v4521_v22 = vld [vmem:[%s6593_s1 + $0x38] sm:$0xff]  }
 0x651   :  { %4341 = vmatpush3.bf16.msra.mxu1 %v2462_v18  ;;  %4356 = vmatprep.mubr.msk.bf16.mxu1 %vm4841_vm14, %v4840_v12  ;;  %v4522_v3 = vld [vmem:[#allocation15] sm:$0xff]  }
 0x652   :  { %v2435_v2 = vadd.f32 %v3907_v43, %v6296_v60  ;;  %4342 = vmatprep.subr.bf16.mxu1 %v4840_v12  ;;  %v4523_v43 = vld [vmem:[#allocation15 + $0x8] sm:$0xff]  }
 0x654   :  { %v2466_v25 = vpack.c.bf16 %v2435_v2, %v2432_v26  ;;  %v3908_v62 = vpop.f32.mrb[100].mxu1  ;;  %v4525_v26 = vld [vmem:[#allocation15 + $0x18] sm:$0xff]   ;;  %v4526_v2 = vld [vmem:[#allocation15 + $0x20] sm:$0xff]  }
 0x655   :  { %v3909_v35 = vpop.f32.mrb[101].mxu1  ;;  %4343 = vmatpush3.bf16.msra.mxu1 %v2463_v21 }
 0x656   :  { %v3910_v31 = vadd.f32 %v3909_v35, %v3908_v62  ;;  %v3911_v58 = vpop.f32.mrb[102].mxu1  ;;  %4344 = vmatprep.subr.bf16.mxu1 %v4840_v12  ;;  %v3587_v35 = vld [vmem:[#allocation13] ss:$0 sm:$0xff] }
 0x657   :  { %v3912_v45 = vpop.f32.mrb[103].mxu1 }
 0x658   :  { %v3913_v23 = vadd.f32 %v3912_v45, %v3911_v58  ;;  %v2440_v54 = vadd.f32 %v3910_v31, %v6296_v60 }
 0x659   :  { %4345 = vmatpush3.bf16.msra.mxu1 %v2464_v0  ;;  %v4507_v0 = vld [vmem:[%s6453_s14 + $0x20] sm:$0xff]  }
 0x65a   :  { %v2443_v18 = vadd.f32 %v3913_v23, %v6296_v60  ;;  %4346 = vmatprep.subr.bf16.mxu1 %v4840_v12 }
 0x65c   :  { %v2467_v13 = vpack.c.bf16 %v2443_v18, %v2440_v54  ;;  %v3914_v8 = vpop.f32.mrb[104].mxu1 }
 0x65d   :  { %v3915_v40 = vpop.f32.mrb[105].mxu1  ;;  %4347 = vmatpush3.bf16.msra.mxu1 %v2465_v36 }
 0x65e   :  { %v3916_v30 = vadd.f32 %v3915_v40, %v3914_v8  ;;  %v3917_v47 = vpop.f32.mrb[106].mxu1  ;;  %4348 = vmatprep.subr.bf16.mxu1 %v4840_v12 }
 0x65f   :  { %v3918_v21 = vpop.f32.mrb[107].mxu1 }
 0x660   :  { %v3919_v37 = vadd.f32 %v3918_v21, %v3917_v47  ;;  %v2448_v63 = vadd.f32 %v3916_v30, %v6296_v60  ;;  %v4528_v47 = vld [vmem:[#allocation15 + $0x30] sm:$0xff]   ;;  %v4529_v21 = vld [vmem:[#allocation15 + $0x38] sm:$0xff]  }
 0x661   :  { %4349 = vmatpush3.bf16.msra.mxu1 %v2466_v25  ;;  %v4527_v25 = vld [vmem:[#allocation15 + $0x28] sm:$0xff]  }
 0x662   :  { %v2451_v34 = vadd.f32 %v3919_v37, %v6296_v60  ;;  %4350 = vmatprep.subr.bf16.mxu1 %v4840_v12  ;;  %v3604_v37 = vld [vmem:[%s6594_s19] ss:$0 sm:$0xff] }
 0x664   :  { %v2468_v38 = vpack.c.bf16 %v2451_v34, %v2448_v63  ;;  %v3920_v42 = vpop.f32.mrb[108].mxu1 }
 0x665   :  { %v3921_v20 = vpop.f32.mrb[109].mxu1  ;;  %4351 = vmatpush3.bf16.msra.mxu1 %v2467_v13 }
 0x666   :  { %v3922_v53 = vadd.f32 %v3921_v20, %v3920_v42  ;;  %v3923_v14 = vpop.f32.mrb[110].mxu1  ;;  %4352 = vmatprep.subr.bf16.mxu1 %v4840_v12 }
 0x667   :  { %v3924_v57 = vpop.f32.mrb[111].mxu1 }
 0x668   :  { %v3925_v16 = vadd.f32 %v3924_v57, %v3923_v14  ;;  %v2456_v19 = vadd.f32 %v3922_v53, %v6296_v60 }
 0x669   :  { %4353 = vmatpush3.bf16.msra.mxu1 %v2468_v38 }
 0x66a   :  { %v2459_v24 = vadd.f32 %v3925_v16, %v6296_v60  ;;  %4354 = vmatprep.subr.bf16.mxu1 %v4840_v12  ;;  %v4504_v60 = vld [vmem:[%s6453_s14 + $0x58] sm:$0xff]   ;;  %v3613_v16 = vld [vmem:[#allocation16] ss:$0 sm:$0xff] }
 0x66b   :  { %4030 = vmatprep.subr.bf16.mxu0 %v4504_v60 }
 0x66c   :  { %v2469_v28 = vpack.c.bf16 %v2459_v24, %v2456_v19  ;;  %4031 = vmatpush3.bf16.msra.mxu0 %v4505_v55 }
 0x66d   :  { %4032 = vmatprep.subr.bf16.mxu0 %v4506_v29 }
 0x66e   :  { %4355 = vmatpush3.bf16.msra.mxu1 %v2469_v28 }
 0x66f   :  { %4360 = vmatprep.subr.bf16.mxu1 %v4840_v12 }
 0x670   :  { %4033 = vmatpush3.bf16.msra.mxu0 %v4507_v0 }
 0x671   :  { %4357 = vmatmul.mubr.msk.bf16.vlgmr.msra.gmra.mrb[116].mxu1 %vm3585_vm0, %v6592_v9  ;;  %4034 = vmatprep.subr.bf16.mxu0 %v4508_v50  ;;  %v4524_v9 = vld [vmem:[#allocation15 + $0x10] sm:$0xff]  }
 0x672   :  { %4376 = vmatprep.mubr.msk.bf16.mxu1 %vm4841_vm14, %v4840_v12  ;;  %4361 = vmatpush3.bf16.msra.mxu1 %v4514_v49 }
 0x673   :  { %4362 = vmatprep.subr.bf16.mxu1 %v4840_v12 }
 0x674   :  { %4035 = vmatpush3.bf16.msra.mxu0 %v4509_v61 }
 0x675   :  { %4036 = vmatprep.subr.bf16.mxu0 %v4510_v17 }
 0x676   :  { %4363 = vmatpush3.bf16.msra.mxu1 %v4515_v56 }
 0x677   :  { %4364 = vmatprep.subr.bf16.mxu1 %v4840_v12 }
 0x678   :  { %4037 = vmatpush3.bf16.msra.mxu0 %v4511_v7 }
 0x679   :  { %4038 = vmatprep.subr.bf16.mxu0 %v4512_v59 }
 0x67a   :  { %4365 = vmatpush3.bf16.msra.mxu1 %v4516_v51 }
 0x67b   :  { %4366 = vmatprep.subr.bf16.mxu1 %v4840_v12 }
 0x67c   :  { %4039 = vmatpush3.bf16.msra.mxu0 %v4513_v41 }
 0x67d   :  { %4380 = vmatprep.subr.bf16.mxu0 %v4840_v12 }
 0x67e   :  { %4367 = vmatpush3.bf16.msra.mxu1 %v4517_v5 }
 0x67f   :  { %4368 = vmatprep.subr.bf16.mxu1 %v4840_v12 }
 0x682   :  { %4369 = vmatpush3.bf16.msra.mxu1 %v4518_v52 }
 0x683   :  { %4370 = vmatprep.subr.bf16.mxu1 %v4840_v12 }
 0x686   :  { %4371 = vmatpush3.bf16.msra.mxu1 %v4519_v15 }
 0x687   :  { %4372 = vmatprep.subr.bf16.mxu1 %v4840_v12 }
 0x68a   :  { %4373 = vmatpush3.bf16.msra.mxu1 %v4520_v33 }
 0x68b   :  { %4374 = vmatprep.subr.bf16.mxu1 %v4840_v12 }
 0x68e   :  { %4375 = vmatpush3.bf16.msra.mxu1 %v4521_v22 }
 0x723   :  { %v2895_v1 = vpop.f32.mrb[112].mxu1 }
 0x724   :  { %v4338_v44 = vpop.f32.mrb[113].mxu1 }
 0x725   :  { %v2898_v39 = vpop.f32.mrb[114].mxu1 }
 0x726   :  { %v2943_v27 = vpack.c.bf16 %v2898_v39, %v2895_v1  ;;  %v4339_v4 = vpop.f32.mrb[115].mxu1 }
 0x744   :  { %v2936_v10 = vpop.f32.mrb[116].mxu1 }
 0x745   :  { %v4358_v46 = vpop.f32.mrb[117].mxu1 }
 0x746   :  { %v2939_v6 = vpop.f32.mrb[118].mxu1 }
 0x747   :  { %v2944_v36 = vpack.c.bf16 %v2939_v6, %v2936_v10  ;;  %v4359_v32 = vpop.f32.mrb[119].mxu1 }
 0x749   :  { %3112 = vmatprep.mubr.bf16.mxu0 %v2944_v36 }
 0x74a   :  { %3113 = vmatmul.mubr.bf16.vlgmr.msra.gmra.mrb[144].mxu0 %v2943_v27 }
 0x74b   :  { %4396 = vmatprep.mubr.msk.bf16.mxu0 %vm4841_vm14, %v4840_v12  ;;  %4381 = vmatpush3.bf16.msra.mxu0 %v4522_v3 }
 0x74c   :  { %4382 = vmatprep.subr.bf16.mxu0 %v4840_v12 }
 0x74f   :  { %4383 = vmatpush3.bf16.msra.mxu0 %v4523_v43 }
 0x750   :  { %4384 = vmatprep.subr.bf16.mxu0 %v4840_v12 }
 0x753   :  { %4385 = vmatpush3.bf16.msra.mxu0 %v4524_v9 }
 0x754   :  { %4386 = vmatprep.subr.bf16.mxu0 %v4840_v12 }
 0x757   :  { %4387 = vmatpush3.bf16.msra.mxu0 %v4525_v26 }
 0x758   :  { %4388 = vmatprep.subr.bf16.mxu0 %v4840_v12 }
 0x75b   :  { %4389 = vmatpush3.bf16.msra.mxu0 %v4526_v2 }
 0x75c   :  { %4390 = vmatprep.subr.bf16.mxu0 %v4840_v12 }
 0x75f   :  { %4391 = vmatpush3.bf16.msra.mxu0 %v4527_v25 }
 0x760   :  { %4392 = vmatprep.subr.bf16.mxu0 %v4840_v12 }
 0x763   :  { %4393 = vmatpush3.bf16.msra.mxu0 %v4528_v47 }
 0x764   :  { %4394 = vmatprep.subr.bf16.mxu0 %v4840_v12 }
 0x767   :  { %4395 = vmatpush3.bf16.msra.mxu0 %v4529_v21 }
 0x81d   :  { %v4040_v62 = vpop.f32.mrb[144].mxu0 }
 0x81e   :  { %v4041_v31 = vpop.f32.mrb[145].mxu0 }
 0x81f   :  { %v4042_v58 = vadd.f32 %v4041_v31, %v4040_v62  ;;  %v4043_v45 = vpop.f32.mrb[146].mxu0 }
 0x820   :  { %v4044_v23 = vpop.f32.mrb[147].mxu0 }
 0x821   :  { %v3115_v54 = vadd.f32 %v4042_v58, %v3587_v35  ;;  %v4045_v18 = vadd.f32 %v4044_v23, %v4043_v45 }
 0x823   :  { %v3118_v13 = vadd.f32 %v4045_v18, %v3587_v35  ;;  %v3121_v8 = vmax.f32 %v3115_v54, 0.0 }
 0x825   :  { %v3122_v40 = vmax.f32 %v3118_v13, 0.0 }
 0x827   :  { %v3123_v30 = vpack.c.bf16 %v3122_v40, %v3121_v8 }
 0x829   :  { %4377 = vmatmul.mubr.bf16.vlgmr.msra.gmra.mrb[120].mxu1 %v3123_v30 }
 0x8fc   :  { %v3229_v63 = vpop.f32.mrb[120].mxu1 }
 0x8fd   :  { %v3230_v34 = vadd.f32 %v3604_v37, %v3229_v63  ;;  %v4378_v11 = vpop.f32.mrb[121].mxu1 }
 0x8fe   :  { %v3232_v38 = vpop.f32.mrb[122].mxu1 }
 0x8ff   :  { %v3233_v42 = vadd.f32 %v3604_v37, %v3232_v38  ;;  %v4379_v20 = vpop.f32.mrb[123].mxu1  ;;  %v3236_v53 = vmax.f32 %v3230_v34, 0.0 }
 0x901   :  { %v3237_v14 = vmax.f32 %v3233_v42, 0.0 }
 0x903   :  { %v3238_v57 = vpack.c.bf16 %v3237_v14, %v3236_v53 }
 0x905   :  { %4397 = vmatmul.mubr.bf16.vlgmr.msra.gmra.mrb[148].mxu0 %v3238_v57 }
 0x9d8   :  { %v3344_v48 = vpop.f32.mrb[148].mxu0 }
 0x9d9   :  { %v3345_v19 = vadd.f32 %v3613_v16, %v3344_v48  ;;  %v4398_v12 = vpop.f32.mrb[149].mxu0 }
 0x9da   :  { %v3347_v24 = vpop.f32.mrb[150].mxu0 }
 0x9db   :  { %3351 = vst [vmem:[%s6595_s29] sm:$0xff] %v3345_v19  ;;  %v3348_v28 = vadd.f32 %v3613_v16, %v3347_v24  ;;  %v4399_v60 = vpop.f32.mrb[151].mxu0 }
 0x9dd   :  { %3352 = vst [vmem:[%s6595_s29 + $0x8] sm:$0xff] %v3348_v28 }
 0x9de   :  { %3357 = vsyncpa [#allocation3], 1 }
 0x9df   :  { %3358 = vsyncpa [#allocation5], 1 }
 0x9e0   :  { %3359 = vsyncpa [#allocation8], 1 }
 0x9e1   :  { %3360 = vsyncpa [#allocation11], 1 }
 0x9e2   :  { %3361 = vsyncpa [#allocation14], 1 }
 0x9e3   :  { %3362 = vsyncpa [#allocation17], 1 }

</bundles_post_ra>
